<compile_context>
chip_gen: v6e
topology: v6e:2x2x1
jax: 0.10.0
libtpu: 0.0.40
codegen_flags: <defaults>
</compile_context>

<pallas_src>
import jax
import jax.numpy as jnp
from jax.experimental import pallas as pl
from jax.experimental.pallas import tpu as pltpu

NUM_ACTIONS = 43
STATE_LEN = 1052
HIDDEN = 512

OUT_PAD = 128      # lane-dense padded output width (43 -> 128)
TB = 128           # batch tile (sublane-aligned)
NEG_INF = -1e30    # finite "-inf" bias for padded logit columns


def mlp_kernel(x_ref, w1_ref, b1_ref, w2_ref, b2_ref, w3_ref, b3_ref, o_ref):
    # layer 1: bf16 x bf16 -> f32 accumulate, + bias, ReLU
    h = jnp.dot(x_ref[...], w1_ref[...], preferred_element_type=jnp.float32)
    h = jnp.maximum(h + b1_ref[...], 0.0)
    # hidden layer
    h = jnp.dot(h.astype(jnp.bfloat16), w2_ref[...],
                preferred_element_type=jnp.float32)
    h = jnp.maximum(h + b2_ref[...], 0.0)
    # output layer (padded to OUT_PAD lanes; padded columns carry NEG_INF bias)
    logits = jnp.dot(h.astype(jnp.bfloat16), w3_ref[...],
                     preferred_element_type=jnp.float32) + b3_ref[...]
    # numerically stable softmax over the 128-wide padded row
    m = jnp.max(logits, axis=-1, keepdims=True)
    e = jnp.exp(logits - m)
    s = jnp.sum(e, axis=-1, keepdims=True)
    o_ref[...] = e * pl.reciprocal(s, approx=True)


def mlp_forward(x, params):
    """x: (B, STATE_LEN) f32; params: f32 (w:(in,out), b:(out,)) tuples."""
    w1, b1, w2, b2, w3, b3 = params
    B = x.shape[0]

    # bf16 weights/activations (f32 accumulation happens inside the kernel)
    x_bf = x.astype(jnp.bfloat16)
    w1_bf = w1.astype(jnp.bfloat16)
    w2_bf = w2.astype(jnp.bfloat16)
    w3_bf = w3.astype(jnp.bfloat16)

    # lane-dense output: zero-pad w3 columns, -1e30 bias on padded columns
    w3_p = jnp.zeros((HIDDEN, OUT_PAD), jnp.bfloat16).at[:, :NUM_ACTIONS].set(w3_bf)
    b3_p = jnp.full((1, OUT_PAD), NEG_INF, jnp.float32).at[:, :NUM_ACTIONS].set(
        b3.reshape(1, NUM_ACTIONS).astype(jnp.float32))
    b1_r = b1.reshape(1, HIDDEN).astype(jnp.float32)
    b2_r = b2.reshape(1, HIDDEN).astype(jnp.float32)

    # pad batch to a multiple of the batch tile; padded rows are harmless
    Bp = ((B + TB - 1) // TB) * TB
    if Bp != B:
        x_bf = jnp.pad(x_bf, ((0, Bp - B), (0, 0)))
    n_tiles = Bp // TB

    flops = 2 * Bp * (STATE_LEN * HIDDEN + HIDDEN * HIDDEN + HIDDEN * OUT_PAD)
    bytes_accessed = (
        Bp * STATE_LEN * 2                      # x (bf16)
        + (STATE_LEN * HIDDEN + HIDDEN * HIDDEN + HIDDEN * OUT_PAD) * 2  # weights
        + (HIDDEN + HIDDEN + OUT_PAD) * 4       # biases (f32)
        + Bp * OUT_PAD * 4)                     # output (f32)

    out = pl.pallas_call(
        mlp_kernel,
        out_shape=jax.ShapeDtypeStruct((Bp, OUT_PAD), jnp.float32),
        grid_spec=pltpu.PrefetchScalarGridSpec(
            num_scalar_prefetch=0,
            grid=(n_tiles,),
            in_specs=[
                pl.BlockSpec((TB, STATE_LEN), lambda i: (i, 0)),      # x streams
                pl.BlockSpec((STATE_LEN, HIDDEN), lambda i: (0, 0)),  # w1 resident
                pl.BlockSpec((1, HIDDEN), lambda i: (0, 0)),          # b1 resident
                pl.BlockSpec((HIDDEN, HIDDEN), lambda i: (0, 0)),     # w2 resident
                pl.BlockSpec((1, HIDDEN), lambda i: (0, 0)),          # b2 resident
                pl.BlockSpec((HIDDEN, OUT_PAD), lambda i: (0, 0)),    # w3 resident
                pl.BlockSpec((1, OUT_PAD), lambda i: (0, 0)),         # b3 resident
            ],
            out_specs=pl.BlockSpec((TB, OUT_PAD), lambda i: (i, 0)),
        ),
        compiler_params=pltpu.CompilerParams(
            dimension_semantics=("parallel",)),
        cost_estimate=pl.CostEstimate(
            flops=flops,
            transcendentals=Bp * OUT_PAD,
            bytes_accessed=bytes_accessed),
    )(x_bf, w1_bf, b1_r, w2_bf, b2_r, w3_p, b3_p)

    return out[:B, :NUM_ACTIONS]


def xavier_uniform(key, fan_in, fan_out):
    limit = (6.0 / (fan_in + fan_out)) ** 0.5
    # stored as (in, out) so the kernel computes x @ W (f32 init, cast later)
    return jax.random.uniform(key, (fan_in, fan_out), jnp.float32, -limit, limit)


def init_params(key):
    k1, k2, k3 = jax.random.split(key, 3)
    w1 = xavier_uniform(k1, STATE_LEN, HIDDEN)
    b1 = jnp.zeros((HIDDEN,), jnp.float32)
    w2 = xavier_uniform(k2, HIDDEN, HIDDEN)
    b2 = jnp.zeros((HIDDEN,), jnp.float32)
    w3 = xavier_uniform(k3, HIDDEN, NUM_ACTIONS)
    b3 = jnp.zeros((NUM_ACTIONS,), jnp.float32)
    return (w1, b1, w2, b2, w3, b3)


if __name__ == "__main__":
    key = jax.random.PRNGKey(0)
    kx, kp = jax.random.split(key)
    B = 200  # exercises batch padding (200 -> 256) and a 2-step grid
    x = jax.random.normal(kx, (B, STATE_LEN), jnp.float32)
    params = init_params(kp)

    out = jax.block_until_ready(mlp_forward(x, params))

    # plain-JAX reference using the same bf16-cast inputs/weights
    w1, b1, w2, b2, w3, b3 = params
    xf = x.astype(jnp.bfloat16).astype(jnp.float32)
    w1f = w1.astype(jnp.bfloat16).astype(jnp.float32)
    w2f = w2.astype(jnp.bfloat16).astype(jnp.float32)
    w3f = w3.astype(jnp.bfloat16).astype(jnp.float32)
    h = jnp.maximum(xf @ w1f + b1, 0.0)
    h = jnp.maximum(h @ w2f + b2, 0.0)
    ref = jax.nn.softmax(h @ w3f + b3, axis=-1)

    assert out.shape == (B, NUM_ACTIONS)
    assert jnp.allclose(out, ref, atol=2e-2, rtol=2e-2), float(jnp.max(jnp.abs(out - ref)))
    assert jnp.allclose(jnp.sum(out, axis=-1), 1.0, atol=1e-2)
    print("KERNEL_OK")
</pallas_src>

<mosaic_0001>
module attributes {stable_mosaic.version = 11 : i64} {
  func.func @mlp_kernel(%arg0: i32, %arg1: memref<128x1052xbf16, #tpu.memory_space<vmem>>, %arg2: memref<1052x512xbf16, #tpu.memory_space<vmem>>, %arg3: memref<1x512xf32, #tpu.memory_space<vmem>>, %arg4: memref<512x512xbf16, #tpu.memory_space<vmem>>, %arg5: memref<1x512xf32, #tpu.memory_space<vmem>>, %arg6: memref<512x128xbf16, #tpu.memory_space<vmem>>, %arg7: memref<1x128xf32, #tpu.memory_space<vmem>>, %arg8: memref<128x128xf32, #tpu.memory_space<vmem>>) attributes {dimension_semantics = [#tpu.dimension_semantics<parallel>], iteration_bounds = array<i64: 2>, scalar_prefetch = 0 : i64, scratch_operands = 0 : i64, tpu.core_type = #tpu.core_type<tc>, window_params = [{transform_indices = @transform_0, window_bounds = array<i64: 128, 1052>}, {pipeline_mode = #tpu.pipeline_mode<synchronous>, transform_indices = @transform_1, window_bounds = array<i64: 1052, 512>}, {pipeline_mode = #tpu.pipeline_mode<synchronous>, transform_indices = @transform_2, window_bounds = array<i64: 1, 512>}, {pipeline_mode = #tpu.pipeline_mode<synchronous>, transform_indices = @transform_3, window_bounds = array<i64: 512, 512>}, {pipeline_mode = #tpu.pipeline_mode<synchronous>, transform_indices = @transform_4, window_bounds = array<i64: 1, 512>}, {pipeline_mode = #tpu.pipeline_mode<synchronous>, transform_indices = @transform_5, window_bounds = array<i64: 512, 128>}, {pipeline_mode = #tpu.pipeline_mode<synchronous>, transform_indices = @transform_6, window_bounds = array<i64: 1, 128>}, {transform_indices = @transform_7, window_bounds = array<i64: 128, 128>}]} {
    %c0 = arith.constant 0 : index
    %c0_0 = arith.constant 0 : index
    %0 = vector.load %arg1[%c0, %c0_0] : memref<128x1052xbf16, #tpu.memory_space<vmem>>, vector<128x1052xbf16>
    %c0_1 = arith.constant 0 : index
    %c0_2 = arith.constant 0 : index
    %1 = vector.load %arg2[%c0_1, %c0_2] : memref<1052x512xbf16, #tpu.memory_space<vmem>>, vector<1052x512xbf16>
    %cst = arith.constant dense<0.000000e+00> : vector<128x512xf32>
    %2 = tpu.matmul %0, %1, %cst {dimension_numbers = #tpu.dot_dimension_numbers<[1], [0], [0], [1], [0, 0, 1, 1], [], []>} : vector<128x1052xbf16>, vector<1052x512xbf16>, vector<128x512xf32> -> vector<128x512xf32>
    %c0_3 = arith.constant 0 : index
    %c0_4 = arith.constant 0 : index
    %3 = vector.load %arg3[%c0_3, %c0_4] : memref<1x512xf32, #tpu.memory_space<vmem>>, vector<1x512xf32>
    %4 = vector.broadcast %3 : vector<1x512xf32> to vector<128x512xf32>
    %5 = arith.addf %2, %4 : vector<128x512xf32>
    %cst_5 = arith.constant 0.000000e+00 : f32
    %6 = vector.broadcast %cst_5 : f32 to vector<128x512xf32>
    %7 = arith.maximumf %5, %6 : vector<128x512xf32>
    %8 = arith.truncf %7 : vector<128x512xf32> to vector<128x512xbf16>
    %c0_6 = arith.constant 0 : index
    %c0_7 = arith.constant 0 : index
    %9 = vector.load %arg4[%c0_6, %c0_7] : memref<512x512xbf16, #tpu.memory_space<vmem>>, vector<512x512xbf16>
    %cst_8 = arith.constant dense<0.000000e+00> : vector<128x512xf32>
    %10 = tpu.matmul %8, %9, %cst_8 {dimension_numbers = #tpu.dot_dimension_numbers<[1], [0], [0], [1], [0, 0, 1, 1], [], []>} : vector<128x512xbf16>, vector<512x512xbf16>, vector<128x512xf32> -> vector<128x512xf32>
    %c0_9 = arith.constant 0 : index
    %c0_10 = arith.constant 0 : index
    %11 = vector.load %arg5[%c0_9, %c0_10] : memref<1x512xf32, #tpu.memory_space<vmem>>, vector<1x512xf32>
    %12 = vector.broadcast %11 : vector<1x512xf32> to vector<128x512xf32>
    %13 = arith.addf %10, %12 : vector<128x512xf32>
    %cst_11 = arith.constant 0.000000e+00 : f32
    %14 = vector.broadcast %cst_11 : f32 to vector<128x512xf32>
    %15 = arith.maximumf %13, %14 : vector<128x512xf32>
    %16 = arith.truncf %15 : vector<128x512xf32> to vector<128x512xbf16>
    %c0_12 = arith.constant 0 : index
    %c0_13 = arith.constant 0 : index
    %17 = vector.load %arg6[%c0_12, %c0_13] : memref<512x128xbf16, #tpu.memory_space<vmem>>, vector<512x128xbf16>
    %cst_14 = arith.constant dense<0.000000e+00> : vector<128x128xf32>
    %18 = tpu.matmul %16, %17, %cst_14 {dimension_numbers = #tpu.dot_dimension_numbers<[1], [0], [0], [1], [0, 0, 1, 1], [], []>} : vector<128x512xbf16>, vector<512x128xbf16>, vector<128x128xf32> -> vector<128x128xf32>
    %c0_15 = arith.constant 0 : index
    %c0_16 = arith.constant 0 : index
    %19 = vector.load %arg7[%c0_15, %c0_16] : memref<1x128xf32, #tpu.memory_space<vmem>>, vector<1x128xf32>
    %20 = vector.broadcast %19 : vector<1x128xf32> to vector<128x128xf32>
    %21 = arith.addf %18, %20 : vector<128x128xf32>
    %cst_17 = arith.constant dense<0xFF800000> : vector<128xf32>
    %22 = vector.multi_reduction <maximumf>, %21, %cst_17 [1] : vector<128x128xf32> to vector<128xf32>
    %23 = vector.shape_cast %22 : vector<128xf32> to vector<128x1xf32>
    %24 = vector.broadcast %23 : vector<128x1xf32> to vector<128x128xf32>
    %25 = arith.subf %21, %24 : vector<128x128xf32>
    %26 = math.exp %25 : vector<128x128xf32>
    %cst_18 = arith.constant dense<0.000000e+00> : vector<128xf32>
    %27 = vector.multi_reduction <add>, %26, %cst_18 [1] : vector<128x128xf32> to vector<128xf32>
    %28 = vector.shape_cast %27 : vector<128xf32> to vector<128x1xf32>
    %29 = tpu.reciprocal %28 {approx = true} : vector<128x1xf32> -> vector<128x1xf32>
    %30 = vector.broadcast %29 : vector<128x1xf32> to vector<128x128xf32>
    %31 = arith.mulf %26, %30 : vector<128x128xf32>
    %c0_19 = arith.constant 0 : index
    %c0_20 = arith.constant 0 : index
    %32 = vector.load %arg8[%c0_19, %c0_20] : memref<128x128xf32, #tpu.memory_space<vmem>>, vector<128x128xf32>
    tpu.vector_store %arg8[%c0_19, %c0_20], %31 {strides = array<i32>} : memref<128x128xf32, #tpu.memory_space<vmem>>, vector<128x128xf32>,
    return
  }
  func.func @transform_0(%arg0: i32) -> (i32, i32) {
    %c0_i32 = arith.constant 0 : i32
    %c0_i32_0 = arith.constant 0 : i32
    return %arg0, %c0_i32 : i32, i32
  }
  func.func @transform_1(%arg0: i32) -> (i32, i32) {
    %c0_i32 = arith.constant 0 : i32
    %c0_i32_0 = arith.constant 0 : i32
    %c0_i32_1 = arith.constant 0 : i32
    return %c0_i32, %c0_i32_0 : i32, i32
  }
  func.func @transform_2(%arg0: i32) -> (i32, i32) {
    %c0_i32 = arith.constant 0 : i32
    %c0_i32_0 = arith.constant 0 : i32
    %c0_i32_1 = arith.constant 0 : i32
    return %c0_i32, %c0_i32_0 : i32, i32
  }
  func.func @transform_3(%arg0: i32) -> (i32, i32) {
    %c0_i32 = arith.constant 0 : i32
    %c0_i32_0 = arith.constant 0 : i32
    %c0_i32_1 = arith.constant 0 : i32
    return %c0_i32, %c0_i32_0 : i32, i32
  }
  func.func @transform_4(%arg0: i32) -> (i32, i32) {
    %c0_i32 = arith.constant 0 : i32
    %c0_i32_0 = arith.constant 0 : i32
    %c0_i32_1 = arith.constant 0 : i32
    return %c0_i32, %c0_i32_0 : i32, i32
  }
  func.func @transform_5(%arg0: i32) -> (i32, i32) {
    %c0_i32 = arith.constant 0 : i32
    %c0_i32_0 = arith.constant 0 : i32
    %c0_i32_1 = arith.constant 0 : i32
    return %c0_i32, %c0_i32_0 : i32, i32
  }
  func.func @transform_6(%arg0: i32) -> (i32, i32) {
    %c0_i32 = arith.constant 0 : i32
    %c0_i32_0 = arith.constant 0 : i32
    %c0_i32_1 = arith.constant 0 : i32
    return %c0_i32, %c0_i32_0 : i32, i32
  }
  func.func @transform_7(%arg0: i32) -> (i32, i32) {
    %c0_i32 = arith.constant 0 : i32
    %c0_i32_0 = arith.constant 0 : i32
    return %arg0, %c0_i32 : i32, i32
  }
}

</mosaic_0001>

<bundles_post_ra>
// kernel: tpu_custom_call.1
= control target key start
LH: loop header
LB: loop body
LE: loop exit
PB: predicated region body
PF: predicated region fallthrough
CT: control target
= control target key end

     0   :  { %12 = vsyncpa [#allocation3], 0  ;;  %s9673_s0 = inlined_call_operand.vmem [shape: bf16[256,1052], index: 0, kind: input, shape index: {}]   ;;  %s9674_s1 = inlined_call_operand.vmem [shape: bf16[1052,512], index: 1, kind: input, shape index: {}]   ;;  %s9675_s2 = inlined_call_operand.vmem [shape: f32[1,512], index: 2, kind: input, shape index: {}]   ;;  %s9676_s3 = inlined_call_operand.hbm [shape: bf16[512,512], index: 3, kind: input, shape index: {}]   ;;  %s9677_s4 = inlined_call_operand.vmem [shape: f32[1,512], index: 4, kind: input, shape index: {}]   ;;  %s9678_s5 = inlined_call_operand.hbm [shape: bf16[512,128], index: 5, kind: input, shape index: {}]   ;;  %s9679_s6 = inlined_call_operand.vmem [shape: f32[1,128], index: 6, kind: input, shape index: {}]   ;;  %s9680_s7 = inlined_call_operand.hbm [shape: f32[256,128], index: 7, kind: output, shape index: {}]  }
   0x1   :  { %13 = vsyncpa [#allocation6], 0 }
   0x2   :  { %14 = vsyncpa [#allocation4], 0 }
   0x3   :  { %16 = vsyncpa [#allocation4 + $0x1], 0  ;;  %s7434_s24 = smov 0   ;;  %s7436_s25 = smov 0  }
   0x4   :  { %s7438_s26 = smov 0   ;;  %s7440_s27 = smov 0  }
   0x5 LB: > { %s7455_s28 = sadd.s32 4294967295, %s7382_s27   ;;  %s5673_s29 = sadd.s32 4294967294, %s7382_s27   ;;  %s7382_s27 = sphi %s7440_s27, %s9777_s27   ;;  %s7378_s26 = sphi %s7438_s26, %s9776_s26   ;;  %s7374_s25 = sphi %s7436_s25, %s9775_s25   ;;  %s7370_s24 = sphi %s7434_s24, %s9774_s24  }
   0x6   : > { %s7459_s30 = sadd.s32 1, %s7382_s27   ;;  %s181_s8 = sadd.s32 1, %s7378_s26 }
   0x7   : > { %s178_s9 = ssub.s32 %s7382_s27, %s7459_s30  ;;  %p191_p0 = scmp.ne.s32.totalorder %s7378_s26, %s7374_s25 }
   0x8   : > { %p179_p1 = scmp.eq.s32.totalorder %s178_s9, 0  ;;  %p192_p2 = scmp.eq.s32.totalorder %s7455_s28, 1 }
   0x9   : > { %p197_p3 = scmp.ne.s32.totalorder %s7374_s25, %s7370_s24  ;;  %p198_p4 = scmp.eq.s32.totalorder %s5673_s29, 1 }
   0xa   : > { %s7470_s10 = scalar_select %p179_p1, %s7378_s26, %s181_s8  }
   0xb   : > { %p7472_p5 = por %p192_p2, %p191_p0  ;;  %p7476_p6 = por %p198_p4, %p197_p3 }
   0xc   : > { %p5674_p7 = scmp.ge.s32.totalorder %s7382_s27, 1  ;;  %p205_p8 = scmp.lt.s32.totalorder %s7382_s27, 3 }
   0xd   : > { %s9691_s12 = scalar_select %p7476_p6, 1, 0 }
   0xe   : > { %p9681_p9 = scmp.eq.s32.totalorder %s7455_s28, 0  ;;  %p7483_p10 = pnand %p5674_p7, %p205_p8 }
   0xf   : > { %s7384_s14 = smov [#allocation2]   ;;  %s7385_s17 = smov [#allocation5]  }
  0x10   : > { %s223_s15 = sshll.u32 %s7384_s14, 4  ;;  %p6344_p11 = pneg %p7483_p10  ;;  %s224_s15 = int_to_ptr.vmem [resolvable:$true] %s223_s15 }
  0x11   : > { %s239_s18 = sshll.u32 %s7385_s17, 4  ;;  %s7273_s19 = scalar_lea.vmem %s224_s15, 16384  ;;  %s240_s18 = int_to_ptr.vmem [resolvable:$true] %s239_s18 }
  0x12   : > { %p7491_p12 = pnand %p9681_p9, %p6344_p11  ;;  %p7274_p0 = scmp.ne.s32.totalorder %s224_s15, %s7273_s19 }
  0x13   : > { %p7281_p3 = scmp.lt.s32.totalorder %s224_s15, %s224_s15  ;;  %p7282_p4 = scmp.lt.s32.totalorder %s7273_s19, %s7273_s19 }
  0x14   : > { %p7264_p13 = pneg %p7491_p12 }
  0x15   : > { %p7283_p7 = por %p7282_p4, %p7281_p3 }
  0x16   : > { %p7276_p1 = pnand %p7274_p0, %p7264_p13 }
  0x18   : > { %p7277_p2 = pneg %p7276_p1 }
  0x1a   : > { %p7284_p8 = pnand %p7283_p7, %p7277_p2 }
  0x1c   : > { %7287 = shalt.err (!%p7284_p8)
}
  0x1d   : > { %s7386_s20 = smov 256   ;;  %s7387_s21 = smov 16  }
  0x1e   : > { %6347 = dma.hbm_to_vmem [thread:$0]  (!%p7491_p12), %s9676_s3, 16384, %s224_s15, [#allocation3], %s7386_s20, %s7386_s20, %s7387_s21  }
  0x1f   : > { %s7299_s29 = scalar_lea.vmem %s240_s18, 4096  ;;  %p7307_p9 = scmp.lt.s32.totalorder %s240_s18, %s240_s18 }
  0x20   : > { %p7300_p11 = scmp.ne.s32.totalorder %s240_s18, %s7299_s29  ;;  %p7308_p6 = scmp.lt.s32.totalorder %s7299_s29, %s7299_s29 }
  0x22   : > { %p7302_p0 = pnand %p7300_p11, %p7264_p13  ;;  %p7309_p3 = por %p7308_p6, %p7307_p9 }
  0x24   : > { %p7303_p1 = pneg %p7302_p0 }
  0x26   : > { %p7310_p2 = pnand %p7309_p3, %p7303_p1 }
  0x28   : > { %7313 = shalt.err (!%p7310_p2)
}
  0x29   : > { %s7388_s8 = smov 64   ;;  %s7389_s9 = smov 4  }
  0x2a   : > { %6350 = dma.hbm_to_vmem [thread:$0]  (!%p7491_p12), %s9678_s5, 4096, %s240_s18, [#allocation6], %s7388_s8, %s7388_s8, %s7389_s9  }
  0x2b   : > { %268 = sbr.rel (%p7483_p10) target bundleno = 1436 (0x59c), region = 48 }
  0x30   : > { %p9694_p4 = scmp.eq.s32.totalorder %s7455_s28, 0 }
  0x32   : > { %7357 = dma.done.wait (%p9694_p4), [#allocation3], 16384   ;;  %p9695_p13 = pmov %p9694_p4 }
  0x33   : > { %p9696_p6 = pmov %p9694_p4 }
  0x34   : > { %7359 = vsyncadd (%p9695_p13), [#allocation3], 4294950912 }
  0x35   : > { %7361 = dma.done.wait (%p9696_p6), [#allocation6], 4096   ;;  %p9697_p9 = pmov %p9694_p4 }
  0x36   : > { %v6401_v0 = vld [vmem:[%s9674_s1 + $0xe4] ss:$16 sps:$4 sm:$0xff]   ;;  %v6405_v2 = vld [vmem:[%s9674_s1 + $0xe0] ss:$16 sps:$4 sm:$0xff]   ;;  %s5682_s13 = sshll.u32 %s7455_s28, 4  ;;  %vm2381_vm0 = vcmask 1045504  }
  0x37   : > { %7363 = vsyncadd (%p9697_p9), [#allocation6], 4294963200  ;;  %v6403_v1 = vld [vmem:[%s9674_s1 + $0x2e4] ss:$16 sps:$4 sm:$0xff]   ;;  %2394 = vmatprep.subr.bf16.mxu0 %v6401_v0  ;;  %v6406_v3 = vld [vmem:[%s9674_s1 + $0x2e0] ss:$16 sps:$4 sm:$0xff]  }
  0x38   : > { %2507 = vmatprep.subr.bf16.mxu1 %v6403_v1  ;;  %v6407_v4 = vld [vmem:[%s9674_s1 + $0xc4] ss:$16 sps:$4 sm:$0xff]   ;;  %2395 = vmatpush1.bf16.msra.mxu0 %v6405_v2  ;;  %v6411_v6 = vld [vmem:[%s9674_s1 + $0xc0] ss:$16 sps:$4 sm:$0xff]   ;;  %p306_p10 = scmp.lt.s32.totalorder %s5682_s13, 31  ;;  %vm2356_vm1 = vcmask 228352  }
  0x39   : > { %2508 = vmatpush1.bf16.msra.mxu1 %v6406_v3  ;;  %v6409_v5 = vld [vmem:[%s9674_s1 + $0x2c4] ss:$16 sps:$4 sm:$0xff]   ;;  %2396 = vmatprep.subr.bf16.mxu0 %v6407_v4  ;;  %v6412_v7 = vld [vmem:[%s9674_s1 + $0x2c0] ss:$16 sps:$4 sm:$0xff]   ;;  %s302_s18 = sand.u32 1, %s7374_s25   ;;  %s6204_s21 = sshll.u32 %s7455_s28, 11 }
  0x3a   : > { %2509 = vmatprep.subr.bf16.mxu1 %v6409_v5  ;;  %v6413_v8 = vld [vmem:[%s9674_s1 + $0xa4] ss:$16 sps:$4 sm:$0xff]   ;;  %v6417_v10 = vld [vmem:[%s9674_s1 + $0xa0] ss:$16 sps:$4 sm:$0xff]   ;;  %s9779_s13 = smov (!%p306_p10, %s5682_s13), 31  ;;  %s5681_s19 = sshll.u32 %s302_s18, 7 }
  0x3b   : > { %v6415_v9 = vld [vmem:[%s9674_s1 + $0x2a4] ss:$16 sps:$4 sm:$0xff]   ;;  %v6418_v11 = vld [vmem:[%s9674_s1 + $0x2a0] ss:$16 sps:$4 sm:$0xff]   ;;  %s6333_s15 = smul.u32 36, %s9779_s13  ;;  %s9589_s20 = scalar_lea.vmem [#allocation7], %s5681_s19 }
  0x3c   : > { %2397 = vmatpush1.bf16.msra.mxu0 %v6411_v6  ;;  %v6419_v12 = vld [vmem:[%s9674_s1 + $0x84] ss:$16 sps:$4 sm:$0xff]   ;;  %v6423_v14 = vld [vmem:[%s9674_s1 + $0x80] ss:$16 sps:$4 sm:$0xff]   ;;  %s5589_s22 = sshll.u32 %s9589_s20, 4  ;;  %s9625_s29 = scalar_lea.hbm %s9680_s7, %s6204_s21  ;;  %s9627_s22 = int_to_ptr.vmem [resolvable:$true] %s5589_s22 }
  0x3d   : > { %2510 = vmatpush1.bf16.msra.mxu1 %v6412_v7  ;;  %2398 = vmatprep.subr.bf16.mxu0 %v6413_v8  ;;  %v6421_v13 = vld [vmem:[%s9674_s1 + $0x284] ss:$16 sps:$4 sm:$0xff]   ;;  %v6424_v15 = vld [vmem:[%s9674_s1 + $0x280] ss:$16 sps:$4 sm:$0xff]   ;;  %s7662_s9 = scalar_lea.vmem %s9673_s0, %s6333_s15  ;;  %s7314_s28 = scalar_lea.vmem %s9627_s22, 2048 }
  0x3e   : > { %2511 = vmatprep.subr.bf16.mxu1 %v6415_v9  ;;  %v6425_v16 = vld [vmem:[%s9674_s1 + $0x64] ss:$16 sps:$4 sm:$0xff]   ;;  %v6429_v18 = vld [vmem:[%s9674_s1 + $0x60] ss:$16 sps:$4 sm:$0xff]   ;;  %v6500_v5 = vld [vmem:[%s7662_s9 + $0x8] ss:$36 sps:$4 sm:$0xff]   ;;  %p7315_p12 = scmp.ne.s32.totalorder %s9627_s22, %s7314_s28 }
  0x3f   : > { %v6427_v17 = vld [vmem:[%s9674_s1 + $0x264] ss:$16 sps:$4 sm:$0xff]   ;;  %v6430_v19 = vld [vmem:[%s9674_s1 + $0x260] ss:$16 sps:$4 sm:$0xff]   ;;  %s7391_s13 = smov [#allocation7]  }
  0x40   : > { %2399 = vmatpush1.bf16.msra.mxu0 %v6417_v10  ;;  %v6431_v20 = vld [vmem:[%s9674_s1 + $0x44] ss:$16 sps:$4 sm:$0xff]   ;;  %v6435_v22 = vld [vmem:[%s9674_s1 + $0x40] ss:$16 sps:$4 sm:$0xff]   ;;  %p7316_p7 = pnand %p7315_p12, %p7472_p5  ;;  %s7318_s8 = sshll.u32 %s7391_s13, 4  ;;  %s7319_s8 = int_to_ptr.vmem [resolvable:$false] %s7318_s8 }
  0x41   : > { %2512 = vmatpush1.bf16.msra.mxu1 %v6418_v11  ;;  %2400 = vmatprep.subr.bf16.mxu0 %v6419_v12  ;;  %v6433_v21 = vld [vmem:[%s9674_s1 + $0x244] ss:$16 sps:$4 sm:$0xff]   ;;  %v6436_v23 = vld [vmem:[%s9674_s1 + $0x240] ss:$16 sps:$4 sm:$0xff]   ;;  %s7320_s14 = scalar_lea.vmem %s7319_s8, 4096  ;;  %p7321_p11 = scmp.lt.s32.totalorder %s9627_s22, %s7319_s8 }
  0x42   : > { %2513 = vmatprep.subr.bf16.mxu1 %v6421_v13  ;;  %v6437_v24 = vld [vmem:[%s9674_s1 + $0x24] ss:$16 sps:$4 sm:$0xff]   ;;  %v6441_v26 = vld [vmem:[%s9674_s1 + $0x20] ss:$16 sps:$4 sm:$0xff]   ;;  %p7317_p8 = pneg %p7316_p7  ;;  %p7322_p0 = scmp.lt.s32.totalorder %s7320_s14, %s7314_s28 }
  0x43   : > { %v6439_v25 = vld [vmem:[%s9674_s1 + $0x224] ss:$16 sps:$4 sm:$0xff]   ;;  %v6442_v27 = vld [vmem:[%s9674_s1 + $0x220] ss:$16 sps:$4 sm:$0xff]  }
  0x44   : > { %2401 = vmatpush1.bf16.msra.mxu0 %v6423_v14  ;;  %v6443_v28 = vld [vmem:[%s9674_s1 + $0x4] ss:$16 sps:$4 sm:$0xff]   ;;  %v6447_v30 = vld [vmem:[%s9674_s1] ss:$16 sps:$4 sm:$0xff]   ;;  %p7323_p1 = por %p7322_p0, %p7321_p11 }
  0x45   : > { %2514 = vmatpush1.bf16.msra.mxu1 %v6424_v15  ;;  %2402 = vmatprep.subr.bf16.mxu0 %v6425_v16  ;;  %v6445_v29 = vld [vmem:[%s9674_s1 + $0x204] ss:$16 sps:$4 sm:$0xff]   ;;  %v6448_v31 = vld [vmem:[%s9674_s1 + $0x200] ss:$16 sps:$4 sm:$0xff]   ;;  %v6519_v16 = vld [vmem:[%s7662_s9 + $0x48] ss:$36 sps:$4 sm:$0xff]  }
  0x46   : > { %2515 = vmatprep.subr.bf16.mxu1 %v6427_v17  ;;  %v6449_v32 = vld [vmem:[%s9674_s1 + $0x1e4] ss:$16 sps:$4 sm:$0xff]   ;;  %v6453_v34 = vld [vmem:[%s9674_s1 + $0x1e0] ss:$16 sps:$4 sm:$0xff]   ;;  %p7324_p3 = pnand %p7323_p1, %p7317_p8 }
  0x47   : > { %v6451_v33 = vld [vmem:[%s9674_s1 + $0x3e4] ss:$16 sps:$4 sm:$0xff]   ;;  %v6454_v35 = vld [vmem:[%s9674_s1 + $0x3e0] ss:$16 sps:$4 sm:$0xff]  }
  0x48   : > { %2403 = vmatpush1.bf16.msra.mxu0 %v6429_v18  ;;  %v6455_v36 = vld [vmem:[%s9674_s1 + $0x1c4] ss:$16 sps:$4 sm:$0xff]   ;;  %v6459_v38 = vld [vmem:[%s9674_s1 + $0x1c0] ss:$16 sps:$4 sm:$0xff]  }
  0x49   : > { %2516 = vmatpush1.bf16.msra.mxu1 %v6430_v19  ;;  %2404 = vmatprep.subr.bf16.mxu0 %v6431_v20  ;;  %v6457_v37 = vld [vmem:[%s9674_s1 + $0x3c4] ss:$16 sps:$4 sm:$0xff]   ;;  %v6460_v39 = vld [vmem:[%s9674_s1 + $0x3c0] ss:$16 sps:$4 sm:$0xff]  }
  0x4a   : > { %2517 = vmatprep.subr.bf16.mxu1 %v6433_v21  ;;  %v6461_v40 = vld [vmem:[%s9674_s1 + $0x1a4] ss:$16 sps:$4 sm:$0xff]   ;;  %v6465_v42 = vld [vmem:[%s9674_s1 + $0x1a0] ss:$16 sps:$4 sm:$0xff]  }
  0x4b   : > { %v6463_v41 = vld [vmem:[%s9674_s1 + $0x3a4] ss:$16 sps:$4 sm:$0xff]   ;;  %v6466_v43 = vld [vmem:[%s9674_s1 + $0x3a0] ss:$16 sps:$4 sm:$0xff]  }
  0x4c   : > { %2405 = vmatpush1.bf16.msra.mxu0 %v6435_v22  ;;  %v6467_v44 = vld [vmem:[%s9674_s1 + $0x184] ss:$16 sps:$4 sm:$0xff]   ;;  %v6471_v46 = vld [vmem:[%s9674_s1 + $0x180] ss:$16 sps:$4 sm:$0xff]  }
  0x4d   : > { %2518 = vmatpush1.bf16.msra.mxu1 %v6436_v23  ;;  %2406 = vmatprep.subr.bf16.mxu0 %v6437_v24  ;;  %v6469_v45 = vld [vmem:[%s9674_s1 + $0x384] ss:$16 sps:$4 sm:$0xff]   ;;  %v6472_v47 = vld [vmem:[%s9674_s1 + $0x380] ss:$16 sps:$4 sm:$0xff]  }
  0x4e   : > { %2519 = vmatprep.subr.bf16.mxu1 %v6439_v25  ;;  %v6473_v48 = vld [vmem:[%s9674_s1 + $0x164] ss:$16 sps:$4 sm:$0xff]   ;;  %v6502_v51 = vld [vmem:[%s7662_s9 + $0xc] ss:$36 sps:$4 sm:$0xff]   ;;  %v6535_v23 = vld [vmem:[%s7662_s9 + $0x9c] ss:$36 sps:$4 sm:$0xff]  }
  0x4f   : > { %v6499_v49 = vld [vmem:[%s7662_s9 + $0x4] ss:$36 sps:$4 sm:$0xff]   ;;  %v6477_v52 = vld [vmem:[%s9674_s1 + $0x160] ss:$16 sps:$4 sm:$0xff]   ;;  %2539 = vmatprep.mubr.bf16.mxu1 %v6502_v51  ;;  %v6517_v11 = vld [vmem:[%s7662_s9 + $0x54] ss:$36 sps:$4 sm:$0xff]  }
  0x50   : > { %2407 = vmatpush1.bf16.msra.mxu0 %v6441_v26  ;;  %v6475_v50 = vld [vmem:[%s9674_s1 + $0x364] ss:$16 sps:$4 sm:$0xff]   ;;  %2426 = vmatprep.mubr.bf16.mxu0 %v6499_v49  ;;  %v6478_v53 = vld [vmem:[%s9674_s1 + $0x360] ss:$16 sps:$4 sm:$0xff]  }
  0x51   : > { %2520 = vmatpush1.bf16.msra.mxu1 %v6442_v27  ;;  %2408 = vmatprep.subr.bf16.mxu0 %v6443_v28  ;;  %v6479_v54 = vld [vmem:[%s9674_s1 + $0x144] ss:$16 sps:$4 sm:$0xff]   ;;  %v6483_v56 = vld [vmem:[%s9674_s1 + $0x140] ss:$16 sps:$4 sm:$0xff]  }
  0x52   : > { %2521 = vmatprep.subr.bf16.mxu1 %v6445_v29  ;;  %v6481_v55 = vld [vmem:[%s9674_s1 + $0x344] ss:$16 sps:$4 sm:$0xff]   ;;  %v6484_v57 = vld [vmem:[%s9674_s1 + $0x340] ss:$16 sps:$4 sm:$0xff]   ;;  %v6538_v29 = vld [vmem:[%s7662_s9 + $0x98] ss:$36 sps:$4 sm:$0xff]  }
  0x53   : > { %v6485_v58 = vld [vmem:[%s9674_s1 + $0x124] ss:$16 sps:$4 sm:$0xff]   ;;  %v6489_v60 = vld [vmem:[%s9674_s1 + $0x120] ss:$16 sps:$4 sm:$0xff]  }
  0x54   : > { %2409 = vmatpush1.bf16.msra.mxu0 %v6447_v30  ;;  %v6487_v59 = vld [vmem:[%s9674_s1 + $0x324] ss:$16 sps:$4 sm:$0xff]   ;;  %v6490_v61 = vld [vmem:[%s9674_s1 + $0x320] ss:$16 sps:$4 sm:$0xff]  }
  0x55   : > { %2522 = vmatpush1.bf16.msra.mxu1 %v6448_v31  ;;  %2410 = vmatprep.subr.bf16.mxu0 %v6449_v32  ;;  %v6491_v62 = vld [vmem:[%s9674_s1 + $0x104] ss:$16 sps:$4 sm:$0xff]   ;;  %v6495_v0 = vld [vmem:[%s9674_s1 + $0x100] ss:$16 sps:$4 sm:$0xff]  }
  0x56   : > { %2523 = vmatprep.subr.bf16.mxu1 %v6451_v33  ;;  %v6493_v63 = vld [vmem:[%s9674_s1 + $0x304] ss:$16 sps:$4 sm:$0xff]   ;;  %v6496_v1 = vld [vmem:[%s9674_s1 + $0x300] ss:$16 sps:$4 sm:$0xff]  }
  0x57   : > { %v6505_v2 = vld [vmem:[%s9674_s1 + $0x4e4] ss:$16 sps:$4 sm:$0xff]   ;;  %v6503_v6 = vld [vmem:[%s9674_s1 + $0x4e0] ss:$16 sps:$4 sm:$0xff]  }
  0x58   : > { %2411 = vmatpush2.bf16.msra.mxu0 %v6453_v34  ;;  %v6508_v3 = vld [vmem:[%s9674_s1 + $0x6e4] ss:$16 sps:$4 sm:$0xff]   ;;  %v6506_v7 = vld [vmem:[%s9674_s1 + $0x6e0] ss:$16 sps:$4 sm:$0xff]  }
  0x59   : > { %2524 = vmatpush2.bf16.msra.mxu1 %v6454_v35  ;;  %2412 = vmatprep.subr.bf16.mxu0 %v6455_v36  ;;  %v6497_v4 = vld [vmem:[%s7662_s9] ss:$36 sps:$4 sm:$0xff]   ;;  %v6515_v10 = vld [vmem:[%s7662_s9 + $0x4c] ss:$36 sps:$4 sm:$0xff]   ;;  %v6533_v22 = vld [vmem:[%s7662_s9 + $0x94] ss:$36 sps:$4 sm:$0xff]  }
  0x5a   : > { %2525 = vmatprep.subr.bf16.mxu1 %v6457_v37  ;;  %v6511_v8 = vld [vmem:[%s9674_s1 + $0x4c4] ss:$16 sps:$4 sm:$0xff]   ;;  %v6509_v12 = vld [vmem:[%s9674_s1 + $0x4c0] ss:$16 sps:$4 sm:$0xff]  }
  0x5b   : > { %v6514_v9 = vld [vmem:[%s9674_s1 + $0x6c4] ss:$16 sps:$4 sm:$0xff]   ;;  %v6512_v13 = vld [vmem:[%s9674_s1 + $0x6c0] ss:$16 sps:$4 sm:$0xff]  }
  0x5c   : > { %2413 = vmatpush2.bf16.msra.mxu0 %v6459_v38  ;;  %v6523_v14 = vld [vmem:[%s9674_s1 + $0x4a4] ss:$16 sps:$4 sm:$0xff]   ;;  %v6521_v18 = vld [vmem:[%s9674_s1 + $0x4a0] ss:$16 sps:$4 sm:$0xff]  }
  0x5d   : > { %2526 = vmatpush2.bf16.msra.mxu1 %v6460_v39  ;;  %2414 = vmatprep.subr.bf16.mxu0 %v6461_v40  ;;  %v6526_v15 = vld [vmem:[%s9674_s1 + $0x6a4] ss:$16 sps:$4 sm:$0xff]   ;;  %v6524_v19 = vld [vmem:[%s9674_s1 + $0x6a0] ss:$16 sps:$4 sm:$0xff]   ;;  %v6555_v40 = vld [vmem:[%s7662_s9 + $0xd8] ss:$36 sps:$4 sm:$0xff]  }
  0x5e   : > { %2527 = vmatprep.subr.bf16.mxu1 %v6463_v41  ;;  %v6520_v17 = vld [vmem:[%s7662_s9 + $0x50] ss:$36 sps:$4 sm:$0xff]   ;;  %v6551_v34 = vld [vmem:[%s7662_s9 + $0xdc] ss:$36 sps:$4 sm:$0xff]   ;;  %v6553_v35 = vld [vmem:[%s7662_s9 + $0xe4] ss:$36 sps:$4 sm:$0xff]  }
  0x5f   : > { %v6529_v20 = vld [vmem:[%s9674_s1 + $0x484] ss:$16 sps:$4 sm:$0xff]   ;;  %v6527_v24 = vld [vmem:[%s9674_s1 + $0x480] ss:$16 sps:$4 sm:$0xff]  }
  0x60   : > { %2415 = vmatpush2.bf16.msra.mxu0 %v6465_v42  ;;  %v6532_v21 = vld [vmem:[%s9674_s1 + $0x684] ss:$16 sps:$4 sm:$0xff]   ;;  %v6530_v25 = vld [vmem:[%s9674_s1 + $0x680] ss:$16 sps:$4 sm:$0xff]  }
  0x61   : > { %2528 = vmatpush2.bf16.msra.mxu1 %v6466_v43  ;;  %2416 = vmatprep.subr.bf16.mxu0 %v6467_v44  ;;  %v6541_v26 = vld [vmem:[%s9674_s1 + $0x464] ss:$16 sps:$4 sm:$0xff]   ;;  %v6539_v30 = vld [vmem:[%s9674_s1 + $0x460] ss:$16 sps:$4 sm:$0xff]  }
  0x62   : > { %2529 = vmatprep.subr.bf16.mxu1 %v6469_v45  ;;  %v6544_v27 = vld [vmem:[%s9674_s1 + $0x664] ss:$16 sps:$4 sm:$0xff]   ;;  %v6542_v31 = vld [vmem:[%s9674_s1 + $0x660] ss:$16 sps:$4 sm:$0xff]  }
  0x63   : > { %v6537_v28 = vld [vmem:[%s7662_s9 + $0x90] ss:$36 sps:$4 sm:$0xff]   ;;  %v6556_v41 = vld [vmem:[%s7662_s9 + $0xe0] ss:$36 sps:$4 sm:$0xff]  }
  0x64   : > { %2417 = vmatpush2.bf16.msra.mxu0 %v6471_v46  ;;  %v6547_v32 = vld [vmem:[%s9674_s1 + $0x444] ss:$16 sps:$4 sm:$0xff]   ;;  %v6545_v36 = vld [vmem:[%s9674_s1 + $0x440] ss:$16 sps:$4 sm:$0xff]  }
  0x65   : > { %2530 = vmatpush2.bf16.msra.mxu1 %v6472_v47  ;;  %2418 = vmatprep.subr.bf16.mxu0 %v6473_v48  ;;  %v6550_v33 = vld [vmem:[%s9674_s1 + $0x644] ss:$16 sps:$4 sm:$0xff]   ;;  %v6548_v37 = vld [vmem:[%s9674_s1 + $0x640] ss:$16 sps:$4 sm:$0xff]  }
  0x66   : > { %2531 = vmatprep.subr.bf16.mxu1 %v6475_v50  ;;  %v6559_v38 = vld [vmem:[%s9674_s1 + $0x424] ss:$16 sps:$4 sm:$0xff]   ;;  %v6557_v42 = vld [vmem:[%s9674_s1 + $0x420] ss:$16 sps:$4 sm:$0xff]  }
  0x67   : > { %v6562_v39 = vld [vmem:[%s9674_s1 + $0x624] ss:$16 sps:$4 sm:$0xff]   ;;  %v6560_v43 = vld [vmem:[%s9674_s1 + $0x620] ss:$16 sps:$4 sm:$0xff]  }
  0x68   : > { %2419 = vmatpush2.bf16.msra.mxu0 %v6477_v52  ;;  %v6565_v44 = vld [vmem:[%s9674_s1 + $0x404] ss:$16 sps:$4 sm:$0xff]   ;;  %v6571_v47 = vld [vmem:[%s7662_s9 + $0x12c] ss:$36 sps:$4 sm:$0xff]  }
  0x69   : > { %2532 = vmatpush2.bf16.msra.mxu1 %v6478_v53  ;;  %2420 = vmatprep.subr.bf16.mxu0 %v6479_v54  ;;  %v6568_v45 = vld [vmem:[%s9674_s1 + $0x604] ss:$16 sps:$4 sm:$0xff]   ;;  %v6563_v48 = vld [vmem:[%s9674_s1 + $0x400] ss:$16 sps:$4 sm:$0xff]   ;;  %v6574_v53 = vld [vmem:[%s7662_s9 + $0x128] ss:$36 sps:$4 sm:$0xff]  }
  0x6a   : > { %2533 = vmatprep.subr.bf16.mxu1 %v6481_v55  ;;  %v6569_v46 = vld [vmem:[%s7662_s9 + $0x124] ss:$36 sps:$4 sm:$0xff]   ;;  %v6566_v49 = vld [vmem:[%s9674_s1 + $0x600] ss:$16 sps:$4 sm:$0xff]  }
  0x6b   : > { %v6577_v50 = vld [vmem:[%s9674_s1 + $0x5e4] ss:$16 sps:$4 sm:$0xff]   ;;  %v6575_v54 = vld [vmem:[%s9674_s1 + $0x5e0] ss:$16 sps:$4 sm:$0xff]  }
  0x6c   : > { %2421 = vmatpush2.bf16.msra.mxu0 %v6483_v56  ;;  %v6580_v51 = vld [vmem:[%s9674_s1 + $0x7e4] ss:$16 sps:$4 sm:$0xff]   ;;  %v6578_v55 = vld [vmem:[%s9674_s1 + $0x7e0] ss:$16 sps:$4 sm:$0xff]  }
  0x6d   : > { %2534 = vmatpush2.bf16.msra.mxu1 %v6484_v57  ;;  %2422 = vmatprep.subr.bf16.mxu0 %v6485_v58  ;;  %v6573_v52 = vld [vmem:[%s7662_s9 + $0x120] ss:$36 sps:$4 sm:$0xff]   ;;  %v6587_v58 = vld [vmem:[%s7662_s9 + $0x16c] ss:$36 sps:$4 sm:$0xff]  }
  0x6e   : > { %2535 = vmatprep.subr.bf16.mxu1 %v6487_v59  ;;  %v6583_v56 = vld [vmem:[%s9674_s1 + $0x5c4] ss:$16 sps:$4 sm:$0xff]  }
  0x6f   : > { %v6586_v57 = vld [vmem:[%s9674_s1 + $0x7c4] ss:$16 sps:$4 sm:$0xff]  }
  0x70   : > { %2423 = vmatpush2.bf16.msra.mxu0 %v6489_v60  ;;  %v6589_v59 = vld [vmem:[%s7662_s9 + $0x174] ss:$36 sps:$4 sm:$0xff]   ;;  %v6581_v60 = vld [vmem:[%s9674_s1 + $0x5c0] ss:$16 sps:$4 sm:$0xff]  }
  0x71   : > { %2536 = vmatpush2.bf16.msra.mxu1 %v6490_v61  ;;  %2424 = vmatprep.subr.bf16.mxu0 %v6491_v62  ;;  %v6584_v61 = vld [vmem:[%s9674_s1 + $0x7c0] ss:$16 sps:$4 sm:$0xff]   ;;  %v6595_v62 = vld [vmem:[%s9674_s1 + $0x5a4] ss:$16 sps:$4 sm:$0xff]  }
  0x72   : > { %2537 = vmatprep.subr.bf16.mxu1 %v6493_v63  ;;  %v6598_v63 = vld [vmem:[%s9674_s1 + $0x7a4] ss:$16 sps:$4 sm:$0xff]  }
  0x74   : > { %2425 = vmatpush2.bf16.msra.mxu0 %v6495_v0  ;;  %v6591_v0 = vld [vmem:[%s7662_s9 + $0x168] ss:$36 sps:$4 sm:$0xff]  }
  0x75   : > { %2538 = vmatpush2.bf16.msra.mxu1 %v6496_v1  ;;  %2620 = vmatprep.subr.bf16.mxu0 %v6505_v2  ;;  %v6592_v1 = vld [vmem:[%s7662_s9 + $0x170] ss:$36 sps:$4 sm:$0xff]  }
  0x76   : > { %2733 = vmatprep.subr.bf16.mxu1 %v6508_v3  ;;  %v6593_v2 = vld [vmem:[%s9674_s1 + $0x5a0] ss:$16 sps:$4 sm:$0xff]  }
  0x77   : > { %2427 = vmatmul.mubr.bf16.vlgmr.msra.gmra.mxu0 %v6497_v4  ;;  %v6596_v3 = vld [vmem:[%s9674_s1 + $0x7a0] ss:$16 sps:$4 sm:$0xff]   ;;  %v6601_v4 = vld [vmem:[%s9674_s1 + $0x584] ss:$16 sps:$4 sm:$0xff]  }
  0x78   : > { %2540 = vmatmul.mubr.bf16.vlgmr.msra.gmra.mxu1 %v6500_v5  ;;  %2621 = vmatpush1.bf16.msra.mxu0 %v6503_v6  ;;  %v6604_v5 = vld [vmem:[%s9674_s1 + $0x784] ss:$16 sps:$4 sm:$0xff]  }
  0x79   : > { %2734 = vmatpush1.bf16.msra.mxu1 %v6506_v7  ;;  %2622 = vmatprep.subr.bf16.mxu0 %v6511_v8  ;;  %v6605_v6 = vld [vmem:[%s7662_s9 + $0x1b4] ss:$36 sps:$4 sm:$0xff]   ;;  %v6607_v7 = vld [vmem:[%s7662_s9 + $0x1bc] ss:$36 sps:$4 sm:$0xff]  }
  0x7a   : > { %2735 = vmatprep.subr.bf16.mxu1 %v6514_v9  ;;  %2436 = vmatprep.mubr.bf16.mxu0 %v6515_v10  ;;  %v6599_v8 = vld [vmem:[%s9674_s1 + $0x580] ss:$16 sps:$4 sm:$0xff]   ;;  %v6613_v10 = vld [vmem:[%s9674_s1 + $0x564] ss:$16 sps:$4 sm:$0xff]  }
  0x7b   : > { %2549 = vmatprep.mubr.bf16.mxu1 %v6517_v11  ;;  %v6602_v9 = vld [vmem:[%s9674_s1 + $0x780] ss:$16 sps:$4 sm:$0xff]  }
  0x7c   : > { %2623 = vmatpush1.bf16.msra.mxu0 %v6509_v12  ;;  %v6609_v11 = vld [vmem:[%s7662_s9 + $0x1b0] ss:$36 sps:$4 sm:$0xff]  }
  0x7d   : > { %2736 = vmatpush1.bf16.msra.mxu1 %v6512_v13  ;;  %2624 = vmatprep.subr.bf16.mxu0 %v6523_v14  ;;  %v6616_v12 = vld [vmem:[%s9674_s1 + $0x764] ss:$16 sps:$4 sm:$0xff]   ;;  %v6610_v13 = vld [vmem:[%s7662_s9 + $0x1b8] ss:$36 sps:$4 sm:$0xff]   ;;  %v6611_v14 = vld [vmem:[%s9674_s1 + $0x560] ss:$16 sps:$4 sm:$0xff]  }
  0x7e   : > { %2737 = vmatprep.subr.bf16.mxu1 %v6526_v15  ;;  %v6614_v15 = vld [vmem:[%s9674_s1 + $0x760] ss:$16 sps:$4 sm:$0xff]  }
  0x7f   : > { %2437 = vmatmul.mubr.bf16.gmra.mxu0 %v6519_v16  ;;  %v6619_v16 = vld [vmem:[%s9674_s1 + $0x544] ss:$16 sps:$4 sm:$0xff]  }
  0x80   : > { %2550 = vmatmul.mubr.bf16.gmra.mxu1 %v6520_v17  ;;  %2625 = vmatpush1.bf16.msra.mxu0 %v6521_v18  ;;  %v6622_v17 = vld [vmem:[%s9674_s1 + $0x744] ss:$16 sps:$4 sm:$0xff]   ;;  %v6623_v18 = vld [vmem:[%s7662_s9 + $0x1fc] ss:$36 sps:$4 sm:$0xff]  }
  0x81   : > { %2738 = vmatpush1.bf16.msra.mxu1 %v6524_v19  ;;  %2626 = vmatprep.subr.bf16.mxu0 %v6529_v20  ;;  %v6625_v19 = vld [vmem:[%s7662_s9 + $0x204] ss:$36 sps:$4 sm:$0xff]   ;;  %v6617_v20 = vld [vmem:[%s9674_s1 + $0x540] ss:$16 sps:$4 sm:$0xff]  }
  0x82   : > { %2739 = vmatprep.subr.bf16.mxu1 %v6532_v21  ;;  %2446 = vmatprep.mubr.bf16.mxu0 %v6533_v22  ;;  %v6620_v21 = vld [vmem:[%s9674_s1 + $0x740] ss:$16 sps:$4 sm:$0xff]   ;;  %v6631_v22 = vld [vmem:[%s9674_s1 + $0x524] ss:$16 sps:$4 sm:$0xff]  }
  0x83   : > { %2559 = vmatprep.mubr.bf16.mxu1 %v6535_v23  ;;  %v6634_v23 = vld [vmem:[%s9674_s1 + $0x724] ss:$16 sps:$4 sm:$0xff]  }
  0x84   : > { %2627 = vmatpush1.bf16.msra.mxu0 %v6527_v24  ;;  %v6627_v24 = vld [vmem:[%s7662_s9 + $0x1f8] ss:$36 sps:$4 sm:$0xff]  }
  0x85   : > { %2740 = vmatpush1.bf16.msra.mxu1 %v6530_v25  ;;  %2628 = vmatprep.subr.bf16.mxu0 %v6541_v26  ;;  %v6628_v25 = vld [vmem:[%s7662_s9 + $0x200] ss:$36 sps:$4 sm:$0xff]  }
  0x86   : > { %2741 = vmatprep.subr.bf16.mxu1 %v6544_v27  ;;  %v6629_v26 = vld [vmem:[%s9674_s1 + $0x520] ss:$16 sps:$4 sm:$0xff]  }
  0x87   : > { %2447 = vmatmul.mubr.bf16.gmra.mxu0 %v6537_v28  ;;  %v6632_v27 = vld [vmem:[%s9674_s1 + $0x720] ss:$16 sps:$4 sm:$0xff]   ;;  %v6637_v28 = vld [vmem:[%s9674_s1 + $0x504] ss:$16 sps:$4 sm:$0xff]  }
  0x88   : > { %2560 = vmatmul.mubr.bf16.gmra.mxu1 %v6538_v29  ;;  %2629 = vmatpush1.bf16.msra.mxu0 %v6539_v30  ;;  %v6640_v29 = vld [vmem:[%s9674_s1 + $0x704] ss:$16 sps:$4 sm:$0xff]   ;;  %v6635_v30 = vld [vmem:[%s9674_s1 + $0x500] ss:$16 sps:$4 sm:$0xff]  }
  0x89   : > { %2742 = vmatpush1.bf16.msra.mxu1 %v6542_v31  ;;  %2630 = vmatprep.subr.bf16.mxu0 %v6547_v32  ;;  %v6643_v31 = vld [vmem:[%s7662_s9 + $0x14] ss:$36 sps:$4 sm:$0xff]   ;;  %v6646_v32 = vld [vmem:[%s7662_s9 + $0x1c] ss:$36 sps:$4 sm:$0xff]  }
  0x8a   : > { %2743 = vmatprep.subr.bf16.mxu1 %v6550_v33  ;;  %2456 = vmatprep.mubr.bf16.mxu0 %v6551_v34  ;;  %v6638_v33 = vld [vmem:[%s9674_s1 + $0x700] ss:$16 sps:$4 sm:$0xff]   ;;  %v6647_v34 = vld [vmem:[%s9674_s1 + $0x824] ss:$16 sps:$4 sm:$0x3f]  }
  0x8b   : > { %2569 = vmatprep.mubr.bf16.mxu1 %v6553_v35  ;;  %v6651_v35 = vld [vmem:[%s9674_s1 + $0xec] ss:$16 sps:$4 sm:$0xff]  }
  0x8c   : > { %2631 = vmatpush1.bf16.msra.mxu0 %v6545_v36  ;;  %v6652_v36 = vld [vmem:[%s9674_s1 + $0x820] ss:$16 sps:$4 sm:$0x3f]  }
  0x8d   : > { %2744 = vmatpush1.bf16.msra.mxu1 %v6548_v37  ;;  %2632 = vmatprep.subr.bf16.mxu0 %v6559_v38  ;;  %v6641_v37 = vld [vmem:[%s7662_s9 + $0x10] ss:$36 sps:$4 sm:$0xff]   ;;  %v6644_v38 = vld [vmem:[%s7662_s9 + $0x18] ss:$36 sps:$4 sm:$0xff]  }
  0x8e   : > { %2745 = vmatprep.subr.bf16.mxu1 %v6562_v39  ;;  %v6649_v39 = vld [vmem:[%s9674_s1 + $0xe8] ss:$16 sps:$4 sm:$0xff]  }
  0x8f   : > { %2457 = vmatmul.mubr.bf16.gmra.mxu0 %v6555_v40  ;;  %v6655_v40 = vld [vmem:[%s9674_s1 + $0xcc] ss:$16 sps:$4 sm:$0xff]  }
  0x90   : > { %2570 = vmatmul.mubr.bf16.gmra.mxu1 %v6556_v41  ;;  %2633 = vmatpush1.bf16.msra.mxu0 %v6557_v42  ;;  %v2383_v41 = vsel %vm2381_vm0, %v6652_v36, 0  ;;  %v6656_v42 = vld [vmem:[%s7662_s9 + $0x5c] ss:$36 sps:$4 sm:$0xff]  }
  0x91   : > { %2746 = vmatpush1.bf16.msra.mxu1 %v6560_v43  ;;  %2634 = vmatprep.subr.bf16.mxu0 %v6565_v44  ;;  %v6658_v43 = vld [vmem:[%s7662_s9 + $0x64] ss:$36 sps:$4 sm:$0xff]   ;;  %v6742_v36 = vld [vmem:[%s9674_s1 + $0x10c] ss:$16 sps:$4 sm:$0xff]  }
  0x92   : > { %2747 = vmatprep.subr.bf16.mxu1 %v6568_v45  ;;  %2466 = vmatprep.mubr.bf16.mxu0 %v6569_v46  ;;  %v6653_v44 = vld [vmem:[%s9674_s1 + $0xc8] ss:$16 sps:$4 sm:$0xff]   ;;  %v6664_v45 = vld [vmem:[%s9674_s1 + $0xac] ss:$16 sps:$4 sm:$0xff]   ;;  %v6698_v46 = vld [vmem:[%s9674_s1 + $0x800] ss:$16 sps:$4 sm:$0xff]  }
  0x93   : > { %2579 = vmatprep.mubr.bf16.mxu1 %v6571_v47  ;;  %v6700_v47 = vld [vmem:[%s9674_s1 + $0x804] ss:$16 sps:$4 sm:$0xff]  }
  0x94   : > { %2635 = vmatpush1.bf16.msra.mxu0 %v6563_v48  ;;  %v6660_v48 = vld [vmem:[%s7662_s9 + $0x58] ss:$36 sps:$4 sm:$0xff]  }
  0x95   : > { %2748 = vmatpush1.bf16.msra.mxu1 %v6566_v49  ;;  %2636 = vmatprep.subr.bf16.mxu0 %v6577_v50  ;;  %v6661_v49 = vld [vmem:[%s7662_s9 + $0x60] ss:$36 sps:$4 sm:$0xff]   ;;  %v6662_v50 = vld [vmem:[%s9674_s1 + $0xa8] ss:$16 sps:$4 sm:$0xff]  }
  0x96   : > { %2749 = vmatprep.subr.bf16.mxu1 %v6580_v51  ;;  %v6667_v51 = vld [vmem:[%s9674_s1 + $0x8c] ss:$16 sps:$4 sm:$0xff]  }
  0x97   : > { %2467 = vmatmul.mubr.bf16.gmra.mxu0 %v6573_v52  ;;  %v6668_v52 = vld [vmem:[%s7662_s9 + $0xa4] ss:$36 sps:$4 sm:$0xff]  }
  0x98   : > { %2580 = vmatmul.mubr.bf16.gmra.mxu1 %v6574_v53  ;;  %2637 = vmatpush2.bf16.msra.mxu0 %v6575_v54  ;;  %v6670_v53 = vld [vmem:[%s7662_s9 + $0xac] ss:$36 sps:$4 sm:$0xff]   ;;  %v6665_v54 = vld [vmem:[%s9674_s1 + $0x88] ss:$16 sps:$4 sm:$0xff]  }
  0x99   : > { %2750 = vmatpush2.bf16.msra.mxu1 %v6578_v55  ;;  %2638 = vmatprep.subr.bf16.mxu0 %v6583_v56  ;;  %v6676_v55 = vld [vmem:[%s9674_s1 + $0x6c] ss:$16 sps:$4 sm:$0xff]   ;;  %v6672_v56 = vld [vmem:[%s7662_s9 + $0xa0] ss:$36 sps:$4 sm:$0xff]  }
  0x9a   : > { %2751 = vmatprep.subr.bf16.mxu1 %v6586_v57  ;;  %2476 = vmatprep.mubr.bf16.mxu0 %v6587_v58  ;;  %v6673_v57 = vld [vmem:[%s7662_s9 + $0xa8] ss:$36 sps:$4 sm:$0xff]  }
  0x9b   : > { %2589 = vmatprep.mubr.bf16.mxu1 %v6589_v59  ;;  %v6674_v58 = vld [vmem:[%s9674_s1 + $0x68] ss:$16 sps:$4 sm:$0xff]   ;;  %v6679_v59 = vld [vmem:[%s9674_s1 + $0x4c] ss:$16 sps:$4 sm:$0xff]  }
  0x9c   : > { %2639 = vmatpush2.bf16.msra.mxu0 %v6581_v60  ;;  %v6680_v60 = vld [vmem:[%s7662_s9 + $0xec] ss:$36 sps:$4 sm:$0xff]  }
  0x9d   : > { %2752 = vmatpush2.bf16.msra.mxu1 %v6584_v61  ;;  %2640 = vmatprep.subr.bf16.mxu0 %v6595_v62  ;;  %v6682_v61 = vld [vmem:[%s7662_s9 + $0xf4] ss:$36 sps:$4 sm:$0xff]  }
  0x9e   : > { %2753 = vmatprep.subr.bf16.mxu1 %v6598_v63  ;;  %v6677_v62 = vld [vmem:[%s9674_s1 + $0x48] ss:$16 sps:$4 sm:$0xff]   ;;  %v6688_v63 = vld [vmem:[%s9674_s1 + $0x2c] ss:$16 sps:$4 sm:$0xff]  }
  0x9f   : > { %2477 = vmatmul.mubr.bf16.gmra.mxu0 %v6591_v0  ;;  %v6684_v0 = vld [vmem:[%s7662_s9 + $0xe8] ss:$36 sps:$4 sm:$0xff]  }
  0xa0   : > { %2590 = vmatmul.mubr.bf16.gmra.mxu1 %v6592_v1  ;;  %2641 = vmatpush2.bf16.msra.mxu0 %v6593_v2  ;;  %v6685_v1 = vld [vmem:[%s7662_s9 + $0xf0] ss:$36 sps:$4 sm:$0xff]   ;;  %v6686_v2 = vld [vmem:[%s9674_s1 + $0x28] ss:$16 sps:$4 sm:$0xff]  }
  0xa1   : > { %2754 = vmatpush2.bf16.msra.mxu1 %v6596_v3  ;;  %2642 = vmatprep.subr.bf16.mxu0 %v6601_v4  ;;  %v6691_v3 = vld [vmem:[%s9674_s1 + $0xc] ss:$16 sps:$4 sm:$0xff]   ;;  %v6692_v4 = vld [vmem:[%s7662_s9 + $0x134] ss:$36 sps:$4 sm:$0xff]  }
  0xa2   : > { %2755 = vmatprep.subr.bf16.mxu1 %v6604_v5  ;;  %2486 = vmatprep.mubr.bf16.mxu0 %v6605_v6  ;;  %v6694_v5 = vld [vmem:[%s7662_s9 + $0x13c] ss:$36 sps:$4 sm:$0xff]  }
  0xa3   : > { %2599 = vmatprep.mubr.bf16.mxu1 %v6607_v7  ;;  %v6746_v6 = vld [vmem:[%s9674_s1 + $0x2ec] ss:$16 sps:$4 sm:$0xff]   ;;  %v6689_v7 = vld [vmem:[%s9674_s1 + $0x8] ss:$16 sps:$4 sm:$0xff]  }
  0xa4   : > { %2643 = vmatpush2.bf16.msra.mxu0 %v6599_v8  ;;  %v6703_v8 = vld [vmem:[%s9674_s1 + $0x1ec] ss:$16 sps:$4 sm:$0xff]  }
  0xa5   : > { %2756 = vmatpush2.bf16.msra.mxu1 %v6602_v9  ;;  %2644 = vmatprep.subr.bf16.mxu0 %v6613_v10  ;;  %v6696_v9 = vld [vmem:[%s7662_s9 + $0x130] ss:$36 sps:$4 sm:$0xff]   ;;  %v6697_v10 = vld [vmem:[%s7662_s9 + $0x138] ss:$36 sps:$4 sm:$0xff]  }
  0xa6   : > { %2757 = vmatprep.subr.bf16.mxu1 %v6616_v12  ;;  %v6707_v12 = vld [vmem:[%s7662_s9 + $0x17c] ss:$36 sps:$4 sm:$0xff]  }
  0xa7   : > { %2487 = vmatmul.mubr.bf16.gmra.mxu0 %v6609_v11  ;;  %v6701_v11 = vld [vmem:[%s9674_s1 + $0x1e8] ss:$16 sps:$4 sm:$0xff]  }
  0xa8   : > { %2600 = vmatmul.mubr.bf16.gmra.mxu1 %v6610_v13  ;;  %2645 = vmatpush2.bf16.msra.mxu0 %v6611_v14  ;;  %v6706_v13 = vld [vmem:[%s9674_s1 + $0x1cc] ss:$16 sps:$4 sm:$0xff]   ;;  %v6709_v14 = vld [vmem:[%s7662_s9 + $0x184] ss:$36 sps:$4 sm:$0xff]  }
  0xa9   : > { %2758 = vmatpush2.bf16.msra.mxu1 %v6614_v15  ;;  %2646 = vmatprep.subr.bf16.mxu0 %v6619_v16  ;;  %v6704_v15 = vld [vmem:[%s9674_s1 + $0x1c8] ss:$16 sps:$4 sm:$0xff]   ;;  %v6715_v16 = vld [vmem:[%s9674_s1 + $0x1ac] ss:$16 sps:$4 sm:$0xff]  }
  0xaa   : > { %2759 = vmatprep.subr.bf16.mxu1 %v6622_v17  ;;  %2496 = vmatprep.mubr.bf16.mxu0 %v6623_v18  ;;  %v6711_v17 = vld [vmem:[%s7662_s9 + $0x178] ss:$36 sps:$4 sm:$0xff]   ;;  %v6712_v18 = vld [vmem:[%s7662_s9 + $0x180] ss:$36 sps:$4 sm:$0xff]  }
  0xab   : > { %2609 = vmatprep.mubr.bf16.mxu1 %v6625_v19  ;;  %v6713_v19 = vld [vmem:[%s9674_s1 + $0x1a8] ss:$16 sps:$4 sm:$0xff]  }
  0xac   : > { %2647 = vmatpush2.bf16.msra.mxu0 %v6617_v20  ;;  %v6719_v20 = vld [vmem:[%s7662_s9 + $0x1c4] ss:$36 sps:$4 sm:$0xff]  }
  0xad   : > { %2760 = vmatpush2.bf16.msra.mxu1 %v6620_v21  ;;  %2648 = vmatprep.subr.bf16.mxu0 %v6631_v22  ;;  %v6718_v21 = vld [vmem:[%s9674_s1 + $0x18c] ss:$16 sps:$4 sm:$0xff]  }
  0xae   : > { %2761 = vmatprep.subr.bf16.mxu1 %v6634_v23  ;;  %v6721_v22 = vld [vmem:[%s7662_s9 + $0x1cc] ss:$36 sps:$4 sm:$0xff]   ;;  %v6716_v23 = vld [vmem:[%s9674_s1 + $0x188] ss:$16 sps:$4 sm:$0xff]  }
  0xaf   : > { %2497 = vmatmul.mubr.bf16.gmra.mxu0 %v6627_v24  ;;  %v6727_v24 = vld [vmem:[%s9674_s1 + $0x16c] ss:$16 sps:$4 sm:$0xff]  }
  0xb0   : > { %2610 = vmatmul.mubr.bf16.gmra.mxu1 %v6628_v25  ;;  %2649 = vmatpush2.bf16.msra.mxu0 %v6629_v26  ;;  %v6723_v25 = vld [vmem:[%s7662_s9 + $0x1c0] ss:$36 sps:$4 sm:$0xff]   ;;  %v6724_v26 = vld [vmem:[%s7662_s9 + $0x1c8] ss:$36 sps:$4 sm:$0xff]  }
  0xb1   : > { %2762 = vmatpush2.bf16.msra.mxu1 %v6632_v27  ;;  %2650 = vmatprep.subr.bf16.mxu0 %v6637_v28  ;;  %v6725_v27 = vld [vmem:[%s9674_s1 + $0x168] ss:$16 sps:$4 sm:$0xff]   ;;  %v6730_v28 = vld [vmem:[%s9674_s1 + $0x14c] ss:$16 sps:$4 sm:$0xff]  }
  0xb2   : > { %2763 = vmatprep.subr.bf16.mxu1 %v6640_v29  ;;  %2652 = vmatprep.mubr.bf16.mxu0 %v6643_v31  ;;  %v6731_v29 = vld [vmem:[%s7662_s9 + $0x20c] ss:$36 sps:$4 sm:$0xff]   ;;  %v6728_v31 = vld [vmem:[%s9674_s1 + $0x148] ss:$16 sps:$4 sm:$0xff]  }
  0xb3   : > { %2765 = vmatprep.mubr.bf16.mxu1 %v6646_v32  ;;  %v6739_v32 = vld [vmem:[%s9674_s1 + $0x12c] ss:$16 sps:$4 sm:$0xff]  }
  0xb4   : > { %2651 = vmatpush2.bf16.msra.mxu0 %v6635_v30  ;;  %v6733_v30 = vld [vmem:[%s7662_s9 + $0x214] ss:$36 sps:$4 sm:$0xff]  }
  0xb5   : > { %2764 = vmatpush2.bf16.msra.mxu1 %v6638_v33  ;;  %6020 = vmatprep.subr.msk.bf16.mxu0 %vm2381_vm0, %v6647_v34  ;;  %v6735_v33 = vld [vmem:[%s7662_s9 + $0x208] ss:$36 sps:$4 sm:$0xff]   ;;  %v6736_v34 = vld [vmem:[%s7662_s9 + $0x210] ss:$36 sps:$4 sm:$0xff]  }
  0xb6   : > { %2959 = vmatprep.subr.bf16.mxu1 %v6651_v35  ;;  %v6737_v35 = vld [vmem:[%s9674_s1 + $0x128] ss:$16 sps:$4 sm:$0xff]  }
  0xb7   : > { %2653 = vmatmul.mubr.bf16.vlgmr.msra.gmra.mxu0 %v6641_v37  ;;  %v6740_v37 = vld [vmem:[%s9674_s1 + $0x108] ss:$16 sps:$4 sm:$0xff]  }
  0xb8   : > { %2766 = vmatmul.mubr.bf16.vlgmr.msra.gmra.mxu1 %v6644_v38  ;;  %2859 = vmatpush1.bf16.msra.mxu0 %v2383_v41  ;;  %v9684_v38 = vmov 0   ;;  %v6743_v41 = vld [vmem:[%s7662_s9 + $0x20] ss:$36 sps:$4 sm:$0xff]  }
  0xb9   : > { %2960 = vmatpush1.bf16.msra.mxu1 %v6649_v39  ;;  %2662 = vmatprep.mubr.bf16.mxu0 %v6656_v42  ;;  %v7189_v39 = vld [vmem:[%s7662_s9 + $0x4] ss:$36 sps:$4 sm:$0xff]  }
  0xba   : > { %2961 = vmatprep.subr.bf16.mxu1 %v6655_v40  ;;  %2775 = vmatprep.mubr.bf16.mxu1 %v6658_v43  ;;  %v6749_v40 = vld [vmem:[%s9674_s1 + $0x4ec] ss:$16 sps:$4 sm:$0xff]   ;;  %v6744_v42 = vld [vmem:[%s9674_s1 + $0x2e8] ss:$16 sps:$4 sm:$0xff]  }
  0xbb   : > { %2860 = vmatprep.subr.bf16.mxu0 %v6700_v47  ;;  %v6747_v43 = vld [vmem:[%s9674_s1 + $0x4e8] ss:$16 sps:$4 sm:$0xff]   ;;  %v7190_v47 = vld [vmem:[%s7662_s9] ss:$36 sps:$4 sm:$0xff]  }
  0xbc   : > { %2861 = vmatpush1.bf16.msra.mxu0 %v6698_v46  ;;  %v6750_v46 = vld [vmem:[%s9674_s1 + $0x2c8] ss:$16 sps:$4 sm:$0xff]  }
  0xbd   : > { %2962 = vmatpush1.bf16.msra.mxu1 %v6653_v44  ;;  %3072 = vmatprep.subr.bf16.mxu0 %v6746_v6  ;;  %v6752_v44 = vld [vmem:[%s9674_s1 + $0x2cc] ss:$16 sps:$4 sm:$0xff]   ;;  %v6779_v6 = vld [vmem:[%s9674_s1 + $0x448] ss:$16 sps:$4 sm:$0xff]  }
  0xbe   : > { %2963 = vmatprep.subr.bf16.mxu1 %v6664_v45  ;;  %v6755_v45 = vld [vmem:[%s9674_s1 + $0x4cc] ss:$16 sps:$4 sm:$0xff]  }
  0xbf   : > { %2663 = vmatmul.mubr.bf16.gmra.mxu0 %v6660_v48  ;;  %v6753_v48 = vld [vmem:[%s9674_s1 + $0x4c8] ss:$16 sps:$4 sm:$0xff]  }
  0xc0   : > { %2776 = vmatmul.mubr.bf16.gmra.mxu1 %v6661_v49  ;;  %2672 = vmatprep.mubr.bf16.mxu0 %v6668_v52  ;;  %v6759_v49 = vld [vmem:[%s9674_s1 + $0x2ac] ss:$16 sps:$4 sm:$0xff]  }
  0xc1   : > { %2964 = vmatpush1.bf16.msra.mxu1 %v6662_v50  ;;  %2785 = vmatprep.mubr.bf16.mxu1 %v6670_v53  ;;  %v6762_v50 = vld [vmem:[%s9674_s1 + $0x4ac] ss:$16 sps:$4 sm:$0xff]   ;;  %v6757_v53 = vld [vmem:[%s9674_s1 + $0x2a8] ss:$16 sps:$4 sm:$0xff]  }
  0xc2   : > { %2965 = vmatprep.subr.bf16.mxu1 %v6667_v51  ;;  %v7191_v51 = vld [vmem:[%s7662_s9 + $0x4c] ss:$36 sps:$4 sm:$0xff]  }
  0xc3   : > { %v6756_v52 = vld [vmem:[%s7662_s9 + $0x68] ss:$36 sps:$4 sm:$0xff]  }
  0xc5   : > { %2966 = vmatpush1.bf16.msra.mxu1 %v6665_v54  ;;  %v6760_v54 = vld [vmem:[%s9674_s1 + $0x4a8] ss:$16 sps:$4 sm:$0xff]  }
  0xc6   : > { %2967 = vmatprep.subr.bf16.mxu1 %v6676_v55  ;;  %v6765_v55 = vld [vmem:[%s9674_s1 + $0x28c] ss:$16 sps:$4 sm:$0xff]  }
  0xc7   : > { %2673 = vmatmul.mubr.bf16.gmra.mxu0 %v6672_v56  ;;  %v6768_v56 = vld [vmem:[%s9674_s1 + $0x48c] ss:$16 sps:$4 sm:$0xff]  }
  0xc8   : > { %2786 = vmatmul.mubr.bf16.gmra.mxu1 %v6673_v57  ;;  %2682 = vmatprep.mubr.bf16.mxu0 %v6680_v60  ;;  %v7192_v57 = vld [vmem:[%s7662_s9 + $0x48] ss:$36 sps:$4 sm:$0xff]  }
  0xc9   : > { %2968 = vmatpush1.bf16.msra.mxu1 %v6674_v58  ;;  %2795 = vmatprep.mubr.bf16.mxu1 %v6682_v61  ;;  %v6763_v58 = vld [vmem:[%s9674_s1 + $0x288] ss:$16 sps:$4 sm:$0xff]   ;;  %v6772_v60 = vld [vmem:[%s9674_s1 + $0x26c] ss:$16 sps:$4 sm:$0xff]  }
  0xca   : > { %2969 = vmatprep.subr.bf16.mxu1 %v6679_v59  ;;  %v6766_v59 = vld [vmem:[%s9674_s1 + $0x488] ss:$16 sps:$4 sm:$0xff]   ;;  %v6775_v61 = vld [vmem:[%s9674_s1 + $0x46c] ss:$16 sps:$4 sm:$0xff]  }
  0xcd   : > { %2970 = vmatpush1.bf16.msra.mxu1 %v6677_v62  ;;  %v7193_v62 = vld [vmem:[%s7662_s9 + $0x94] ss:$36 sps:$4 sm:$0xff]  }
  0xce   : > { %2971 = vmatprep.subr.bf16.mxu1 %v6688_v63  ;;  %v6769_v63 = vld [vmem:[%s7662_s9 + $0xb0] ss:$36 sps:$4 sm:$0xff]  }
  0xcf   : > { %2683 = vmatmul.mubr.bf16.gmra.mxu0 %v6684_v0  ;;  %v6770_v0 = vld [vmem:[%s9674_s1 + $0x268] ss:$16 sps:$4 sm:$0xff]  }
  0xd0   : > { %2796 = vmatmul.mubr.bf16.gmra.mxu1 %v6685_v1  ;;  %2692 = vmatprep.mubr.bf16.mxu0 %v6692_v4  ;;  %v6773_v1 = vld [vmem:[%s9674_s1 + $0x468] ss:$16 sps:$4 sm:$0xff]   ;;  %v7194_v4 = vld [vmem:[%s7662_s9 + $0x90] ss:$36 sps:$4 sm:$0xff]  }
  0xd1   : > { %2972 = vmatpush1.bf16.msra.mxu1 %v6686_v2  ;;  %2805 = vmatprep.mubr.bf16.mxu1 %v6694_v5  ;;  %v6778_v2 = vld [vmem:[%s9674_s1 + $0x24c] ss:$16 sps:$4 sm:$0xff]   ;;  %v6776_v5 = vld [vmem:[%s9674_s1 + $0x248] ss:$16 sps:$4 sm:$0xff]  }
  0xd2   : > { %2973 = vmatprep.subr.bf16.mxu1 %v6691_v3  ;;  %v6781_v3 = vld [vmem:[%s9674_s1 + $0x44c] ss:$16 sps:$4 sm:$0xff]  }
  0xd5   : > { %2974 = vmatpush1.bf16.msra.mxu1 %v6689_v7  ;;  %v6785_v7 = vld [vmem:[%s9674_s1 + $0x22c] ss:$16 sps:$4 sm:$0xff]  }
  0xd6   : > { %2975 = vmatprep.subr.bf16.mxu1 %v6703_v8  ;;  %v6788_v8 = vld [vmem:[%s9674_s1 + $0x42c] ss:$16 sps:$4 sm:$0xff]  }
  0xd7   : > { %2693 = vmatmul.mubr.bf16.gmra.mxu0 %v6696_v9  ;;  %v7195_v9 = vld [vmem:[%s7662_s9 + $0xdc] ss:$36 sps:$4 sm:$0xff]  }
  0xd8   : > { %2806 = vmatmul.mubr.bf16.gmra.mxu1 %v6697_v10  ;;  %2702 = vmatprep.mubr.bf16.mxu0 %v6707_v12  ;;  %v6782_v10 = vld [vmem:[%s7662_s9 + $0xf8] ss:$36 sps:$4 sm:$0xff]  }
  0xd9   : > { %2976 = vmatpush2.bf16.msra.mxu1 %v6701_v11  ;;  %2815 = vmatprep.mubr.bf16.mxu1 %v6709_v14  ;;  %v6783_v11 = vld [vmem:[%s9674_s1 + $0x228] ss:$16 sps:$4 sm:$0xff]   ;;  %v6794_v14 = vld [vmem:[%s9674_s1 + $0x40c] ss:$16 sps:$4 sm:$0xff]  }
  0xda   : > { %2977 = vmatprep.subr.bf16.mxu1 %v6706_v13  ;;  %v6786_v12 = vld [vmem:[%s9674_s1 + $0x428] ss:$16 sps:$4 sm:$0xff]   ;;  %v6791_v13 = vld [vmem:[%s9674_s1 + $0x20c] ss:$16 sps:$4 sm:$0xff]  }
  0xdd   : > { %2978 = vmatpush2.bf16.msra.mxu1 %v6704_v15  ;;  %v7196_v15 = vld [vmem:[%s7662_s9 + $0xd8] ss:$36 sps:$4 sm:$0xff]  }
  0xde   : > { %2979 = vmatprep.subr.bf16.mxu1 %v6715_v16  ;;  %v6789_v16 = vld [vmem:[%s9674_s1 + $0x208] ss:$16 sps:$4 sm:$0xff]  }
  0xdf   : > { %2703 = vmatmul.mubr.bf16.gmra.mxu0 %v6711_v17  ;;  %v6792_v17 = vld [vmem:[%s9674_s1 + $0x408] ss:$16 sps:$4 sm:$0xff]  }
  0xe0   : > { %2816 = vmatmul.mubr.bf16.gmra.mxu1 %v6712_v18  ;;  %2712 = vmatprep.mubr.bf16.mxu0 %v6719_v20  ;;  %v6798_v18 = vld [vmem:[%s9674_s1 + $0x3ec] ss:$16 sps:$4 sm:$0xff]   ;;  %v7197_v20 = vld [vmem:[%s7662_s9 + $0x124] ss:$36 sps:$4 sm:$0xff]  }
  0xe1   : > { %2980 = vmatpush2.bf16.msra.mxu1 %v6713_v19  ;;  %2825 = vmatprep.mubr.bf16.mxu1 %v6721_v22  ;;  %v6801_v19 = vld [vmem:[%s9674_s1 + $0x5ec] ss:$16 sps:$4 sm:$0xff]   ;;  %v6796_v22 = vld [vmem:[%s9674_s1 + $0x3e8] ss:$16 sps:$4 sm:$0xff]  }
  0xe2   : > { %2981 = vmatprep.subr.bf16.mxu1 %v6718_v21  ;;  %v6795_v21 = vld [vmem:[%s7662_s9 + $0x140] ss:$36 sps:$4 sm:$0xff]  }
  0xe5   : > { %2982 = vmatpush2.bf16.msra.mxu1 %v6716_v23  ;;  %v6799_v23 = vld [vmem:[%s9674_s1 + $0x5e8] ss:$16 sps:$4 sm:$0xff]  }
  0xe6   : > { %2983 = vmatprep.subr.bf16.mxu1 %v6727_v24  ;;  %v6804_v24 = vld [vmem:[%s9674_s1 + $0x3cc] ss:$16 sps:$4 sm:$0xff]  }
  0xe7   : > { %2713 = vmatmul.mubr.bf16.gmra.mxu0 %v6723_v25  ;;  %v6807_v25 = vld [vmem:[%s9674_s1 + $0x5cc] ss:$16 sps:$4 sm:$0xff]  }
  0xe8   : > { %2826 = vmatmul.mubr.bf16.gmra.mxu1 %v6724_v26  ;;  %2722 = vmatprep.mubr.bf16.mxu0 %v6731_v29  ;;  %v7198_v26 = vld [vmem:[%s7662_s9 + $0x120] ss:$36 sps:$4 sm:$0xff]   ;;  %v6811_v29 = vld [vmem:[%s9674_s1 + $0x3ac] ss:$16 sps:$4 sm:$0xff]  }
  0xe9   : > { %2984 = vmatpush2.bf16.msra.mxu1 %v6725_v27  ;;  %2835 = vmatprep.mubr.bf16.mxu1 %v6733_v30  ;;  %v6802_v27 = vld [vmem:[%s9674_s1 + $0x3c8] ss:$16 sps:$4 sm:$0xff]   ;;  %v6814_v30 = vld [vmem:[%s9674_s1 + $0x5ac] ss:$16 sps:$4 sm:$0xff]  }
  0xea   : > { %2985 = vmatprep.subr.bf16.mxu1 %v6730_v28  ;;  %v6805_v28 = vld [vmem:[%s9674_s1 + $0x5c8] ss:$16 sps:$4 sm:$0xff]  }
  0xed   : > { %2986 = vmatpush2.bf16.msra.mxu1 %v6728_v31  ;;  %v7199_v31 = vld [vmem:[%s7662_s9 + $0x16c] ss:$36 sps:$4 sm:$0xff]  }
  0xee   : > { %2987 = vmatprep.subr.bf16.mxu1 %v6739_v32  ;;  %v6808_v32 = vld [vmem:[%s7662_s9 + $0x188] ss:$36 sps:$4 sm:$0xff]  }
  0xef   : > { %2723 = vmatmul.mubr.bf16.gmra.mxu0 %v6735_v33  ;;  %v6809_v33 = vld [vmem:[%s9674_s1 + $0x3a8] ss:$16 sps:$4 sm:$0xff]  }
  0xf0   : > { %2836 = vmatmul.mubr.bf16.gmra.mxu1 %v6736_v34  ;;  %2878 = vmatprep.mubr.bf16.mxu0 %v9684_v38  ;;  %v6812_v34 = vld [vmem:[%s9674_s1 + $0x5a8] ss:$16 sps:$4 sm:$0xff]  }
  0xf1   : > { %2988 = vmatpush2.bf16.msra.mxu1 %v6737_v35  ;;  %2991 = vmatprep.mubr.bf16.mxu1 %v7189_v39  ;;  %v6817_v35 = vld [vmem:[%s9674_s1 + $0x38c] ss:$16 sps:$4 sm:$0xff]   ;;  %v6815_v39 = vld [vmem:[%s9674_s1 + $0x388] ss:$16 sps:$4 sm:$0xff]  }
  0xf2   : > { %2989 = vmatprep.subr.bf16.mxu1 %v6742_v36  ;;  %v6820_v36 = vld [vmem:[%s9674_s1 + $0x58c] ss:$16 sps:$4 sm:$0xff]  }
  0xf5   : > { %2990 = vmatpush2.bf16.msra.mxu1 %v6740_v37  ;;  %v7200_v37 = vld [vmem:[%s7662_s9 + $0x168] ss:$36 sps:$4 sm:$0xff]  }
  0xf6   : > { %3185 = vmatprep.subr.bf16.mxu1 %v6749_v40  ;;  %v6818_v40 = vld [vmem:[%s9674_s1 + $0x588] ss:$16 sps:$4 sm:$0xff]  }
  0xf7   : > { %6021 = vmatmul.mubr.msk.bf16.vlgmr.msra.gmra.mxu0 %vm2356_vm1, %v6743_v41  ;;  %v6821_v41 = vld [vmem:[%s7662_s9 + $0x1d0] ss:$36 sps:$4 sm:$0xff]  }
  0xf8   : > { %2992 = vmatmul.mubr.bf16.vlgmr.msra.gmra.mxu1 %v7190_v47  ;;  %3073 = vmatpush1.bf16.msra.mxu0 %v6744_v42  ;;  %v6824_v42 = vld [vmem:[%s9674_s1 + $0x36c] ss:$16 sps:$4 sm:$0xff]  }
  0xf9   : > { %3186 = vmatpush1.bf16.msra.mxu1 %v6747_v43  ;;  %3074 = vmatprep.subr.bf16.mxu0 %v6752_v44  ;;  %v6827_v43 = vld [vmem:[%s9674_s1 + $0x56c] ss:$16 sps:$4 sm:$0xff]   ;;  %v7201_v44 = vld [vmem:[%s7662_s9 + $0x1b4] ss:$36 sps:$4 sm:$0xff]  }
  0xfa   : > { %3187 = vmatprep.subr.bf16.mxu1 %v6755_v45  ;;  %2888 = vmatprep.mubr.bf16.mxu0 %v9684_v38  ;;  %v6822_v45 = vld [vmem:[%s9674_s1 + $0x368] ss:$16 sps:$4 sm:$0xff]   ;;  %v6830_v47 = vld [vmem:[%s9674_s1 + $0x34c] ss:$16 sps:$4 sm:$0xff]  }
  0xfb   : > { %3001 = vmatprep.mubr.bf16.mxu1 %v7191_v51  ;;  %v7202_v51 = vld [vmem:[%s7662_s9 + $0x1b0] ss:$36 sps:$4 sm:$0xff]  }
  0xfc   : > { %3075 = vmatpush1.bf16.msra.mxu0 %v6750_v46  ;;  %v6825_v46 = vld [vmem:[%s9674_s1 + $0x568] ss:$16 sps:$4 sm:$0xff]  }
  0xfd   : > { %3188 = vmatpush1.bf16.msra.mxu1 %v6753_v48  ;;  %3076 = vmatprep.subr.bf16.mxu0 %v6759_v49  ;;  %v6833_v48 = vld [vmem:[%s9674_s1 + $0x54c] ss:$16 sps:$4 sm:$0xff]   ;;  %v6828_v49 = vld [vmem:[%s9674_s1 + $0x348] ss:$16 sps:$4 sm:$0xff]  }
  0xfe   : > { %3189 = vmatprep.subr.bf16.mxu1 %v6762_v50  ;;  %v6831_v50 = vld [vmem:[%s9674_s1 + $0x548] ss:$16 sps:$4 sm:$0xff]  }
  0xff   : > { %6022 = vmatmul.mubr.msk.bf16.gmra.mxu0 %vm2356_vm1, %v6756_v52  ;;  %v6837_v52 = vld [vmem:[%s9674_s1 + $0x32c] ss:$16 sps:$4 sm:$0xff]  }
 0x100   : > { %3002 = vmatmul.mubr.bf16.gmra.mxu1 %v7192_v57  ;;  %3077 = vmatpush1.bf16.msra.mxu0 %v6757_v53  ;;  %v6840_v53 = vld [vmem:[%s9674_s1 + $0x52c] ss:$16 sps:$4 sm:$0xff]   ;;  %v6835_v57 = vld [vmem:[%s9674_s1 + $0x328] ss:$16 sps:$4 sm:$0xff]  }
 0x101   : > { %3190 = vmatpush1.bf16.msra.mxu1 %v6760_v54  ;;  %3078 = vmatprep.subr.bf16.mxu0 %v6765_v55  ;;  %v660_v54 = vlaneseq  ;;  %v6834_v55 = vld [vmem:[%s7662_s9 + $0x218] ss:$36 sps:$4 sm:$0xff]  }
 0x102   : > { %3191 = vmatprep.subr.bf16.mxu1 %v6768_v56  ;;  %2898 = vmatprep.mubr.bf16.mxu0 %v9684_v38  ;;  %v7203_v56 = vld [vmem:[%s7662_s9 + $0x1fc] ss:$36 sps:$4 sm:$0xff]  }
 0x103   : > { %3011 = vmatprep.mubr.bf16.mxu1 %v7193_v62  ;;  %v6841_v62 = vld [vmem:[%s9674_s1 + $0x308] ss:$16 sps:$4 sm:$0xff]  }
 0x104   : > { %3079 = vmatpush1.bf16.msra.mxu0 %v6763_v58  ;;  %v6838_v58 = vld [vmem:[%s9674_s1 + $0x528] ss:$16 sps:$4 sm:$0xff]  }
 0x105   : > { %3192 = vmatpush1.bf16.msra.mxu1 %v6766_v59  ;;  %3080 = vmatprep.subr.bf16.mxu0 %v6772_v60  ;;  %v6843_v59 = vld [vmem:[%s9674_s1 + $0x30c] ss:$16 sps:$4 sm:$0xff]  }
 0x106   : > { %3193 = vmatprep.subr.bf16.mxu1 %v6775_v61  ;;  %v6846_v60 = vld [vmem:[%s9674_s1 + $0x50c] ss:$16 sps:$4 sm:$0xff]   ;;  %v8311_v61 = vshrl.u32 %v660_v54, 7 }
 0x107   : > { %6023 = vmatmul.mubr.msk.bf16.gmra.mxu0 %vm2356_vm1, %v6769_v63  ;;  %v6844_v63 = vld [vmem:[%s9674_s1 + $0x508] ss:$16 sps:$4 sm:$0xff]  }
 0x108   : > { %3012 = vmatmul.mubr.bf16.gmra.mxu1 %v7194_v4  ;;  %3081 = vmatpush1.bf16.msra.mxu0 %v6770_v0  ;;  %9698 = vst [vmem:[#allocation11_spill] sm:$0xff] %v8311_v61  ;;  %v7204_v0 = vld [vmem:[%s7662_s9 + $0x1f8] ss:$36 sps:$4 sm:$0xff]   ;;  %v9682_v4 = vsub.s32 0, %v8311_v61 }
 0x109   : > { %3194 = vmatpush1.bf16.msra.mxu1 %v6773_v1  ;;  %3082 = vmatprep.subr.bf16.mxu0 %v6778_v2  ;;  %v658_v1 = vld [vmem:[%s9675_s2] sm:$0xf]  ;;  %v6849_v2 = vld [vmem:[%s9674_s1 + $0x6ec] ss:$16 sps:$4 sm:$0xff]  }
 0x10a   : > { %3195 = vmatprep.subr.bf16.mxu1 %v6781_v3  ;;  %2908 = vmatprep.mubr.bf16.mxu0 %v9684_v38  ;;  %v6850_v3 = vld [vmem:[%s9674_s1 + $0x82c] ss:$16 sps:$4 sm:$0x3f]  }
 0x10b   : > { %3021 = vmatprep.mubr.bf16.mxu1 %v7195_v9  ;;  %v9683_v9 = vsub.s32 1, %v8311_v61 }
 0x10c   : > { %3083 = vmatpush1.bf16.msra.mxu0 %v6776_v5  ;;  %v6852_v5 = vld [vmem:[%s9674_s1 + $0x828] ss:$16 sps:$4 sm:$0x3f]  }
 0x10d   : > { %3196 = vmatpush1.bf16.msra.mxu1 %v6779_v6  ;;  %3084 = vmatprep.subr.bf16.mxu0 %v6785_v7  ;;  %v7205_v6 = vld [vmem:[%s7662_s9 + $0xc] ss:$36 sps:$4 sm:$0xff]   ;;  %v7206_v7 = vld [vmem:[%s7662_s9 + $0x14] ss:$36 sps:$4 sm:$0xff]  }
 0x10e   : > { %3197 = vmatprep.subr.bf16.mxu1 %v6788_v8  ;;  %v6847_v8 = vld [vmem:[%s9674_s1 + $0x6e8] ss:$16 sps:$4 sm:$0xff]  }
 0x10f   : > { %6024 = vmatmul.mubr.msk.bf16.gmra.mxu0 %vm2356_vm1, %v6782_v10  ;;  %v6855_v10 = vld [vmem:[%s9674_s1 + $0x6cc] ss:$16 sps:$4 sm:$0xff]  }
 0x110   : > { %3022 = vmatmul.mubr.bf16.gmra.mxu1 %v7196_v15  ;;  %3085 = vmatpush1.bf16.msra.mxu0 %v6783_v11  ;;  %v8345_v11 = vrot.slane %v658_v1, %v9682_v4  ;;  %v6853_v15 = vld [vmem:[%s9674_s1 + $0x6c8] ss:$16 sps:$4 sm:$0xff]  }
 0x111   : > { %3198 = vmatpush1.bf16.msra.mxu1 %v6786_v12  ;;  %3086 = vmatprep.subr.bf16.mxu0 %v6791_v13  ;;  %v6879_v12 = vld [vmem:[%s9674_s1 + $0x80c] ss:$16 sps:$4 sm:$0xff]   ;;  %v2389_v13 = vsel %vm2381_vm0, %v6852_v5, 0  ;;  %v7216_v5 = vld [vmem:[%s7662_s9 + $0xa0] ss:$36 sps:$4 sm:$0xff]  }
 0x112   : > { %3199 = vmatprep.subr.bf16.mxu1 %v6794_v14  ;;  %2918 = vmatprep.mubr.bf16.mxu0 %v9684_v38  ;;  %v8354_v14 = vrot.slane %v658_v1, %v9683_v9  ;;  %v7250_v4 = vld [vmem:[%s7662_s9 + $0x138] ss:$36 sps:$4 sm:$0xff]   ;;  %v7251_v9 = vld [vmem:[%s7662_s9 + $0x140] ss:$36 sps:$4 sm:$0xff]  }
 0x113   : > { %3031 = vmatprep.mubr.bf16.mxu1 %v7197_v20  ;;  %v6858_v20 = vld [vmem:[%s9674_s1 + $0x6ac] ss:$16 sps:$4 sm:$0xff]  }
 0x114   : > { %3087 = vmatpush1.bf16.msra.mxu0 %v6789_v16 }
 0x115   : > { %3200 = vmatpush1.bf16.msra.mxu1 %v6792_v17  ;;  %3088 = vmatprep.subr.bf16.mxu0 %v6798_v18  ;;  %v7207_v18 = vld [vmem:[%s7662_s9 + $0x8] ss:$36 sps:$4 sm:$0xff]  }
 0x116   : > { %3201 = vmatprep.subr.bf16.mxu1 %v6801_v19  ;;  %v7208_v19 = vld [vmem:[%s7662_s9 + $0x10] ss:$36 sps:$4 sm:$0xff]  }
 0x117   : > { %6025 = vmatmul.mubr.msk.bf16.gmra.mxu0 %vm2356_vm1, %v6795_v21 }
 0x118   : > { %3032 = vmatmul.mubr.bf16.gmra.mxu1 %v7198_v26  ;;  %3089 = vmatpush2.bf16.msra.mxu0 %v6796_v22  ;;  %v6877_v22 = vld [vmem:[%s9674_s1 + $0x808] ss:$16 sps:$4 sm:$0xff]  }
 0x119   : > { %3202 = vmatpush2.bf16.msra.mxu1 %v6799_v23  ;;  %3090 = vmatprep.subr.bf16.mxu0 %v6804_v24 }
 0x11a   : > { %3203 = vmatprep.subr.bf16.mxu1 %v6807_v25  ;;  %2928 = vmatprep.mubr.bf16.mxu0 %v9684_v38  ;;  %v7209_v25 = vld [vmem:[%s7662_s9 + $0x54] ss:$36 sps:$4 sm:$0xff]  }
 0x11b   : > { %3041 = vmatprep.mubr.bf16.mxu1 %v7199_v31  ;;  %v6856_v31 = vld [vmem:[%s9674_s1 + $0x6a8] ss:$16 sps:$4 sm:$0xff]  }
 0x11c   : > { %3091 = vmatpush2.bf16.msra.mxu0 %v6802_v27 }
 0x11d   : > { %3204 = vmatpush2.bf16.msra.mxu1 %v6805_v28  ;;  %3092 = vmatprep.subr.bf16.mxu0 %v6811_v29  ;;  %v7210_v28 = vld [vmem:[%s7662_s9 + $0x5c] ss:$36 sps:$4 sm:$0xff]  }
 0x11e   : > { %3205 = vmatprep.subr.bf16.mxu1 %v6814_v30 }
 0x11f   : > { %6026 = vmatmul.mubr.msk.bf16.gmra.mxu0 %vm2356_vm1, %v6808_v32 }
 0x120   : > { %3042 = vmatmul.mubr.bf16.gmra.mxu1 %v7200_v37  ;;  %3093 = vmatpush2.bf16.msra.mxu0 %v6809_v33 }
 0x121   : > { %3206 = vmatpush2.bf16.msra.mxu1 %v6812_v34  ;;  %3094 = vmatprep.subr.bf16.mxu0 %v6817_v35  ;;  %v6861_v34 = vld [vmem:[%s9674_s1 + $0x68c] ss:$16 sps:$4 sm:$0xff]  }
 0x122   : > { %3207 = vmatprep.subr.bf16.mxu1 %v6820_v36  ;;  %2938 = vmatprep.mubr.bf16.mxu0 %v9684_v38 }
 0x123   : > { %3051 = vmatprep.mubr.bf16.mxu1 %v7201_v44  ;;  %v6859_v44 = vld [vmem:[%s9674_s1 + $0x688] ss:$16 sps:$4 sm:$0xff]  }
 0x124   : > { %3095 = vmatpush2.bf16.msra.mxu0 %v6815_v39 }
 0x125   : > { %3208 = vmatpush2.bf16.msra.mxu1 %v6818_v40  ;;  %3096 = vmatprep.subr.bf16.mxu0 %v6824_v42  ;;  %v7211_v42 = vld [vmem:[%s7662_s9 + $0x50] ss:$36 sps:$4 sm:$0xff]  }
 0x126   : > { %3209 = vmatprep.subr.bf16.mxu1 %v6827_v43  ;;  %v7212_v43 = vld [vmem:[%s7662_s9 + $0x58] ss:$36 sps:$4 sm:$0xff]  }
 0x127   : > { %6027 = vmatmul.mubr.msk.bf16.gmra.mxu0 %vm2356_vm1, %v6821_v41 }
 0x128   : > { %3052 = vmatmul.mubr.bf16.gmra.mxu1 %v7202_v51  ;;  %3097 = vmatpush2.bf16.msra.mxu0 %v6822_v45  ;;  %v7214_v51 = vld [vmem:[%s7662_s9 + $0xa4] ss:$36 sps:$4 sm:$0xff]  }
 0x129   : > { %3210 = vmatpush2.bf16.msra.mxu1 %v6825_v46  ;;  %3098 = vmatprep.subr.bf16.mxu0 %v6830_v47  ;;  %v7213_v47 = vld [vmem:[%s7662_s9 + $0x9c] ss:$36 sps:$4 sm:$0xff]  }
 0x12a   : > { %3211 = vmatprep.subr.bf16.mxu1 %v6833_v48  ;;  %2948 = vmatprep.mubr.bf16.mxu0 %v9684_v38  ;;  %v6864_v48 = vld [vmem:[%s9674_s1 + $0x66c] ss:$16 sps:$4 sm:$0xff]  }
 0x12b   : > { %3061 = vmatprep.mubr.bf16.mxu1 %v7203_v56  ;;  %v6862_v56 = vld [vmem:[%s9674_s1 + $0x668] ss:$16 sps:$4 sm:$0xff]  }
 0x12c   : > { %3099 = vmatpush2.bf16.msra.mxu0 %v6828_v49 }
 0x12d   : > { %3212 = vmatpush2.bf16.msra.mxu1 %v6831_v50  ;;  %3100 = vmatprep.subr.bf16.mxu0 %v6837_v52 }
 0x12e   : > { %3213 = vmatprep.subr.bf16.mxu1 %v6840_v53 }
 0x12f   : > { %6028 = vmatmul.mubr.msk.bf16.gmra.mxu0 %vm2356_vm1, %v6834_v55 }
 0x130   : > { %3062 = vmatmul.mubr.bf16.gmra.mxu1 %v7204_v0  ;;  %3101 = vmatpush2.bf16.msra.mxu0 %v6835_v57 }
 0x131   : > { %3214 = vmatpush2.bf16.msra.mxu1 %v6838_v58  ;;  %3102 = vmatprep.subr.bf16.mxu0 %v6843_v59  ;;  %v6867_v59 = vld [vmem:[%s9674_s1 + $0x64c] ss:$16 sps:$4 sm:$0xff]  }
 0x132   : > { %3215 = vmatprep.subr.bf16.mxu1 %v6846_v60  ;;  %3104 = vmatprep.mubr.bf16.mxu0 %v7205_v6  ;;  %v6865_v6 = vld [vmem:[%s9674_s1 + $0x648] ss:$16 sps:$4 sm:$0xff]  }
 0x133   : > { %3217 = vmatprep.mubr.bf16.mxu1 %v7206_v7 }
 0x134   : > { %3103 = vmatpush2.bf16.msra.mxu0 %v6841_v62 }
 0x135   : > { %3216 = vmatpush2.bf16.msra.mxu1 %v6844_v63  ;;  %3298 = vmatprep.subr.bf16.mxu0 %v6849_v2 }
 0x136   : > { %6029 = vmatprep.subr.msk.bf16.mxu1 %vm2381_vm0, %v6850_v3  ;;  %v7215_v3 = vld [vmem:[%s7662_s9 + $0x98] ss:$36 sps:$4 sm:$0xff]  }
 0x137   : > { %v2428_v16 = vpop.f32.mrf.mxu0  ;;  %3105 = vmatmul.mubr.bf16.vlgmr.msra.gmra.mxu0 %v7207_v18 }
 0x138   : > { %v2541_v17 = vpop.f32.mrf.mxu1  ;;  %3218 = vmatmul.mubr.bf16.vlgmr.msra.gmra.mxu1 %v7208_v19  ;;  %v2429_v21 = vadd.f32 %v2428_v16, %v8345_v11  ;;  %3299 = vmatpush1.bf16.msra.mxu0 %v6847_v8  ;;  %v7218_v16 = vld [vmem:[%s7662_s9 + $0xec] ss:$36 sps:$4 sm:$0xff]  }
 0x139   : > { %3424 = vmatpush1.bf16.msra.mxu1 %v2389_v13  ;;  %v2430_v23 = vpop.f32.mrf.mxu0  ;;  %3300 = vmatprep.subr.bf16.mxu0 %v6855_v10  ;;  %v7217_v10 = vld [vmem:[%s7662_s9 + $0xe4] ss:$36 sps:$4 sm:$0xff]  }
 0x13a   : > { %v2543_v24 = vpop.f32.mrf.mxu1  ;;  %3114 = vmatprep.mubr.bf16.mxu0 %v7209_v25  ;;  %v8369_v26 = vadd.f32 %v2541_v17, %v2429_v21  ;;  %v2431_v27 = vadd.f32 %v2430_v23, %v8354_v14  ;;  %3227 = vmatprep.mubr.bf16.mxu1 %v7210_v28  ;;  %v6868_v21 = vld [vmem:[%s9674_s1 + $0x628] ss:$16 sps:$4 sm:$0xff]  }
 0x13b   : > { %3425 = vmatprep.subr.bf16.mxu1 %v6879_v12  ;;  %v2432_v29 = vpop.f32.mrf.mxu0  ;;  %v6870_v12 = vld [vmem:[%s9674_s1 + $0x62c] ss:$16 sps:$4 sm:$0xff]  }
 0x13c   : > { %v2545_v30 = vpop.f32.mrf.mxu1  ;;  %v8376_v32 = vadd.f32 %v2543_v24, %v2431_v27  ;;  %v2433_v33 = vadd.f32 %v2432_v29, %v8345_v11  ;;  %3301 = vmatpush1.bf16.msra.mxu0 %v6853_v15  ;;  %v6873_v24 = vld [vmem:[%s9674_s1 + $0x60c] ss:$16 sps:$4 sm:$0xff]  }
 0x13d   : > { %3426 = vmatpush1.bf16.msra.mxu1 %v6877_v22  ;;  %v2434_v35 = vpop.f32.mrf.mxu0  ;;  %3302 = vmatprep.subr.bf16.mxu0 %v6858_v20 }
 0x13e   : > { %v2547_v36 = vpop.f32.mrf.mxu1  ;;  %v8382_v37 = vadd.f32 %v2545_v30, %v2433_v33  ;;  %v2435_v39 = vadd.f32 %v2434_v35, %v8354_v14  ;;  %v7219_v33 = vld [vmem:[%s7662_s9 + $0xe0] ss:$36 sps:$4 sm:$0xff]   ;;  %v6871_v35 = vld [vmem:[%s9674_s1 + $0x608] ss:$16 sps:$4 sm:$0xff]  }
 0x13f   : > { %v2438_v40 = vpop.f32.mrf.mxu0  ;;  %3115 = vmatmul.mubr.bf16.gmra.mxu0 %v7211_v42 }
 0x140   : > { %v2551_v41 = vpop.f32.mrf.mxu1  ;;  %3228 = vmatmul.mubr.bf16.gmra.mxu1 %v7212_v43  ;;  %v8390_v45 = vadd.f32 %v2547_v36, %v2435_v39  ;;  %v2439_v46 = vadd.f32 %v2438_v40, %v8345_v11  ;;  %3303 = vmatpush1.bf16.msra.mxu0 %v6856_v31  ;;  %v7221_v40 = vld [vmem:[%s7662_s9 + $0x12c] ss:$36 sps:$4 sm:$0xff]  }
 0x141   : > { %3124 = vmatprep.mubr.bf16.mxu0 %v7213_v47  ;;  %v2440_v49 = vpop.f32.mrf.mxu0  ;;  %3304 = vmatprep.subr.bf16.mxu0 %v6861_v34  ;;  %v7220_v34 = vld [vmem:[%s7662_s9 + $0xe8] ss:$36 sps:$4 sm:$0xff]  }
 0x142   : > { %v2553_v50 = vpop.f32.mrf.mxu1  ;;  %3237 = vmatprep.mubr.bf16.mxu1 %v7214_v51  ;;  %v8398_v52 = vadd.f32 %v2551_v41, %v2439_v46  ;;  %v2441_v53 = vadd.f32 %v2440_v49, %v8354_v14  ;;  %v6876_v41 = vld [vmem:[%s9674_s1 + $0x7ec] ss:$16 sps:$4 sm:$0xff]  }
 0x143   : > { %v2442_v54 = vpop.f32.mrf.mxu0 }
 0x144   : > { %v2555_v55 = vpop.f32.mrf.mxu1  ;;  %v8404_v57 = vadd.f32 %v2553_v50, %v2441_v53  ;;  %v2443_v58 = vadd.f32 %v2442_v54, %v8345_v11  ;;  %3305 = vmatpush1.bf16.msra.mxu0 %v6859_v44  ;;  %v7222_v44 = vld [vmem:[%s7662_s9 + $0x134] ss:$36 sps:$4 sm:$0xff]   ;;  %v6882_v54 = vld [vmem:[%s9674_s1 + $0x7cc] ss:$16 sps:$4 sm:$0xff]  }
 0x145   : > { %v2444_v60 = vpop.f32.mrf.mxu0  ;;  %3306 = vmatprep.subr.bf16.mxu0 %v6864_v48  ;;  %v6874_v50 = vld [vmem:[%s9674_s1 + $0x7e8] ss:$16 sps:$4 sm:$0xff]  }
 0x146   : > { %v2557_v62 = vpop.f32.mrf.mxu1  ;;  %v8410_v63 = vadd.f32 %v2555_v55, %v2443_v58  ;;  %v2445_v0 = vadd.f32 %v2444_v60, %v8354_v14 }
 0x147   : > { %v2448_v1 = vpop.f32.mrf.mxu0  ;;  %3125 = vmatmul.mubr.bf16.gmra.mxu0 %v7215_v3 }
 0x148   : > { %v2561_v2 = vpop.f32.mrf.mxu1  ;;  %3238 = vmatmul.mubr.bf16.gmra.mxu1 %v7216_v5  ;;  %v8418_v7 = vadd.f32 %v2557_v62, %v2445_v0  ;;  %v2449_v8 = vadd.f32 %v2448_v1, %v8345_v11  ;;  %3307 = vmatpush1.bf16.msra.mxu0 %v6862_v56  ;;  %v7223_v0 = vld [vmem:[%s7662_s9 + $0x128] ss:$36 sps:$4 sm:$0xff]   ;;  %v7224_v1 = vld [vmem:[%s7662_s9 + $0x130] ss:$36 sps:$4 sm:$0xff]  }
 0x149   : > { %3134 = vmatprep.mubr.bf16.mxu0 %v7217_v10  ;;  %v2450_v13 = vpop.f32.mrf.mxu0  ;;  %3308 = vmatprep.subr.bf16.mxu0 %v6867_v59 }
 0x14a   : > { %v2563_v15 = vpop.f32.mrf.mxu1  ;;  %3247 = vmatprep.mubr.bf16.mxu1 %v7218_v16  ;;  %v8426_v17 = vadd.f32 %v2561_v2, %v2449_v8  ;;  %v2451_v18 = vadd.f32 %v2450_v13, %v8354_v14  ;;  %v6880_v2 = vld [vmem:[%s9674_s1 + $0x7c8] ss:$16 sps:$4 sm:$0xff]   ;;  %v6885_v8 = vld [vmem:[%s9674_s1 + $0x7ac] ss:$16 sps:$4 sm:$0xff]  }
 0x14b   : > { %v2452_v19 = vpop.f32.mrf.mxu0  ;;  %v7226_v13 = vld [vmem:[%s7662_s9 + $0x17c] ss:$36 sps:$4 sm:$0xff]  }
 0x14c   : > { %v2565_v20 = vpop.f32.mrf.mxu1  ;;  %v8432_v22 = vadd.f32 %v2563_v15, %v2451_v18  ;;  %v2453_v23 = vadd.f32 %v2452_v19, %v8345_v11  ;;  %3309 = vmatpush1.bf16.msra.mxu0 %v6865_v6  ;;  %v7225_v6 = vld [vmem:[%s7662_s9 + $0x174] ss:$36 sps:$4 sm:$0xff]  }
 0x14d   : > { %v2454_v25 = vpop.f32.mrf.mxu0  ;;  %3310 = vmatprep.subr.bf16.mxu0 %v6870_v12 }
 0x14e   : > { %v2567_v27 = vpop.f32.mrf.mxu1  ;;  %v8438_v28 = vadd.f32 %v2565_v20, %v2453_v23  ;;  %v2455_v29 = vadd.f32 %v2454_v25, %v8354_v14  ;;  %v6883_v20 = vld [vmem:[%s9674_s1 + $0x7a8] ss:$16 sps:$4 sm:$0xff]  }
 0x14f   : > { %v2458_v30 = vpop.f32.mrf.mxu0  ;;  %3135 = vmatmul.mubr.bf16.gmra.mxu0 %v7219_v33 }
 0x150   : > { %v2571_v31 = vpop.f32.mrf.mxu1  ;;  %3248 = vmatmul.mubr.bf16.gmra.mxu1 %v7220_v34  ;;  %v8446_v36 = vadd.f32 %v2567_v27, %v2455_v29  ;;  %v2459_v39 = vadd.f32 %v2458_v30, %v8345_v11  ;;  %3311 = vmatpush1.bf16.msra.mxu0 %v6868_v21  ;;  %v7227_v34 = vld [vmem:[%s7662_s9 + $0x170] ss:$36 sps:$4 sm:$0xff]  }
 0x151   : > { %3144 = vmatprep.mubr.bf16.mxu0 %v7221_v40  ;;  %v2460_v42 = vpop.f32.mrf.mxu0  ;;  %3312 = vmatprep.subr.bf16.mxu0 %v6873_v24  ;;  %v6888_v24 = vld [vmem:[%s9674_s1 + $0x78c] ss:$16 sps:$4 sm:$0xff]  }
 0x152   : > { %v2573_v43 = vpop.f32.mrf.mxu1  ;;  %3257 = vmatprep.mubr.bf16.mxu1 %v7222_v44  ;;  %v8454_v46 = vadd.f32 %v2571_v31, %v2459_v39  ;;  %v2461_v47 = vadd.f32 %v2460_v42, %v8354_v14  ;;  %v6886_v39 = vld [vmem:[%s9674_s1 + $0x788] ss:$16 sps:$4 sm:$0xff]   ;;  %v7229_v42 = vld [vmem:[%s7662_s9 + $0x1bc] ss:$36 sps:$4 sm:$0xff]  }
 0x153   : > { %v2462_v48 = vpop.f32.mrf.mxu0 }
 0x154   : > { %v2575_v49 = vpop.f32.mrf.mxu1  ;;  %v8460_v51 = vadd.f32 %v2573_v43, %v2461_v47  ;;  %v2463_v53 = vadd.f32 %v2462_v48, %v8345_v11  ;;  %3313 = vmatpush1.bf16.msra.mxu0 %v6871_v35  ;;  %v7228_v35 = vld [vmem:[%s7662_s9 + $0x178] ss:$36 sps:$4 sm:$0xff]   ;;  %v7230_v48 = vld [vmem:[%s7662_s9 + $0x1c4] ss:$36 sps:$4 sm:$0xff]  }
 0x155   : > { %v2464_v55 = vpop.f32.mrf.mxu0  ;;  %3314 = vmatprep.subr.bf16.mxu0 %v6876_v41  ;;  %v6891_v43 = vld [vmem:[%s9674_s1 + $0x76c] ss:$16 sps:$4 sm:$0xff]  }
 0x156   : > { %v2577_v56 = vpop.f32.mrf.mxu1  ;;  %v8466_v58 = vadd.f32 %v2575_v49, %v2463_v53  ;;  %v2465_v59 = vadd.f32 %v2464_v55, %v8354_v14  ;;  %v6889_v55 = vld [vmem:[%s9674_s1 + $0x768] ss:$16 sps:$4 sm:$0xff]  }
 0x157   : > { %v2468_v60 = vpop.f32.mrf.mxu0  ;;  %3145 = vmatmul.mubr.bf16.gmra.mxu0 %v7223_v0 }
 0x158   : > { %v2581_v62 = vpop.f32.mrf.mxu1  ;;  %3258 = vmatmul.mubr.bf16.gmra.mxu1 %v7224_v1  ;;  %v8474_v3 = vadd.f32 %v2577_v56, %v2465_v59  ;;  %v2469_v5 = vadd.f32 %v2468_v60, %v8345_v11  ;;  %3315 = vmatpush2.bf16.msra.mxu0 %v6874_v50  ;;  %v6894_v60 = vld [vmem:[%s9674_s1 + $0x74c] ss:$16 sps:$4 sm:$0xff]  }
 0x159   : > { %3154 = vmatprep.mubr.bf16.mxu0 %v7225_v6  ;;  %v2470_v10 = vpop.f32.mrf.mxu0  ;;  %3316 = vmatprep.subr.bf16.mxu0 %v6882_v54 }
 0x15a   : > { %v2583_v12 = vpop.f32.mrf.mxu1  ;;  %3267 = vmatprep.mubr.bf16.mxu1 %v7226_v13  ;;  %v8482_v15 = vadd.f32 %v2581_v62, %v2469_v5  ;;  %v2471_v16 = vadd.f32 %v2470_v10, %v8354_v14  ;;  %v7232_v10 = vld [vmem:[%s7662_s9 + $0x1c0] ss:$36 sps:$4 sm:$0xff]  }
 0x15b   : > { %v2472_v18 = vpop.f32.mrf.mxu0 }
 0x15c   : > { %v2585_v19 = vpop.f32.mrf.mxu1  ;;  %v8488_v21 = vadd.f32 %v2583_v12, %v2471_v16  ;;  %v2473_v23 = vadd.f32 %v2472_v18, %v8345_v11  ;;  %3317 = vmatpush2.bf16.msra.mxu0 %v6880_v2  ;;  %v6892_v16 = vld [vmem:[%s9674_s1 + $0x748] ss:$16 sps:$4 sm:$0xff]  }
 0x15d   : > { %v2474_v25 = vpop.f32.mrf.mxu0  ;;  %3318 = vmatprep.subr.bf16.mxu0 %v6885_v8  ;;  %v7231_v8 = vld [vmem:[%s7662_s9 + $0x1b8] ss:$36 sps:$4 sm:$0xff]   ;;  %v7233_v18 = vld [vmem:[%s7662_s9 + $0x204] ss:$36 sps:$4 sm:$0xff]  }
 0x15e   : > { %v2587_v27 = vpop.f32.mrf.mxu1  ;;  %v8494_v29 = vadd.f32 %v2585_v19, %v2473_v23  ;;  %v2475_v30 = vadd.f32 %v2474_v25, %v8354_v14  ;;  %v7234_v23 = vld [vmem:[%s7662_s9 + $0x20c] ss:$36 sps:$4 sm:$0xff]  }
 0x15f   : > { %v2478_v31 = vpop.f32.mrf.mxu0  ;;  %3155 = vmatmul.mubr.bf16.gmra.mxu0 %v7227_v34 }
 0x160   : > { %v2591_v33 = vpop.f32.mrf.mxu1  ;;  %3268 = vmatmul.mubr.bf16.gmra.mxu1 %v7228_v35  ;;  %v8502_v40 = vadd.f32 %v2587_v27, %v2475_v30  ;;  %v2479_v41 = vadd.f32 %v2478_v31, %v8345_v11  ;;  %3319 = vmatpush2.bf16.msra.mxu0 %v6883_v20  ;;  %v6895_v35 = vld [vmem:[%s9674_s1 + $0x728] ss:$16 sps:$4 sm:$0xff]  }
 0x161   : > { %3164 = vmatprep.mubr.bf16.mxu0 %v7229_v42  ;;  %v2480_v44 = vpop.f32.mrf.mxu0  ;;  %3320 = vmatprep.subr.bf16.mxu0 %v6888_v24  ;;  %v6897_v24 = vld [vmem:[%s9674_s1 + $0x72c] ss:$16 sps:$4 sm:$0xff]  }
 0x162   : > { %v2593_v47 = vpop.f32.mrf.mxu1  ;;  %3277 = vmatprep.mubr.bf16.mxu1 %v7230_v48  ;;  %v8510_v49 = vadd.f32 %v2591_v33, %v2479_v41  ;;  %v2481_v50 = vadd.f32 %v2480_v44, %v8354_v14  ;;  %v6900_v42 = vld [vmem:[%s9674_s1 + $0x70c] ss:$16 sps:$4 sm:$0xff]  }
 0x163   : > { %v2482_v53 = vpop.f32.mrf.mxu0 }
 0x164   : > { %v2595_v54 = vpop.f32.mrf.mxu1  ;;  %v8516_v56 = vadd.f32 %v2593_v47, %v2481_v50  ;;  %v2483_v59 = vadd.f32 %v2482_v53, %v8345_v11  ;;  %3321 = vmatpush2.bf16.msra.mxu0 %v6886_v39  ;;  %v7235_v50 = vld [vmem:[%s7662_s9 + $0x200] ss:$36 sps:$4 sm:$0xff]   ;;  %v7236_v53 = vld [vmem:[%s7662_s9 + $0x208] ss:$36 sps:$4 sm:$0xff]  }
 0x165   : > { %v2484_v62 = vpop.f32.mrf.mxu0  ;;  %3322 = vmatprep.subr.bf16.mxu0 %v6891_v43 }
 0x166   : > { %v2597_v0 = vpop.f32.mrf.mxu1  ;;  %v8522_v1 = vadd.f32 %v2595_v54, %v2483_v59  ;;  %v2485_v2 = vadd.f32 %v2484_v62, %v8354_v14  ;;  %v6898_v59 = vld [vmem:[%s9674_s1 + $0x708] ss:$16 sps:$4 sm:$0xff]  }
 0x167   : > { %v2488_v5 = vpop.f32.mrf.mxu0  ;;  %3165 = vmatmul.mubr.bf16.gmra.mxu0 %v7231_v8 }
 0x168   : > { %9699 = vst [vmem:[#allocation12_spill] sm:$0xff] %v8522_v1  ;;  %v2601_v6 = vpop.f32.mrf.mxu1  ;;  %3278 = vmatmul.mubr.bf16.gmra.mxu1 %v7232_v10  ;;  %v8527_v12 = vadd.f32 %v2597_v0, %v2485_v2  ;;  %v2489_v13 = vadd.f32 %v2488_v5, %v8345_v11  ;;  %3323 = vmatpush2.bf16.msra.mxu0 %v6889_v55  ;;  %v6903_v2 = vld [vmem:[#allocation2 + $0xe4] ss:$16 sps:$4 sm:$0xff]  }
 0x169   : > { %3174 = vmatprep.mubr.bf16.mxu0 %v7233_v18  ;;  %v2490_v19 = vpop.f32.mrf.mxu0  ;;  %3324 = vmatprep.subr.bf16.mxu0 %v6894_v60  ;;  %v7237_v60 = vld [vmem:[%s7662_s9 + $0x1c] ss:$36 sps:$4 sm:$0xff]  }
 0x16a   : > { %9700 = vst [vmem:[#allocation13_spill] sm:$0xff] %v8527_v12  ;;  %v2603_v20 = vpop.f32.mrf.mxu1  ;;  %3287 = vmatprep.mubr.bf16.mxu1 %v7234_v23  ;;  %v8538_v25 = vadd.f32 %v2601_v6, %v2489_v13  ;;  %v2491_v27 = vadd.f32 %v2490_v19, %v8354_v14 }
 0x16b   : > { %v2492_v30 = vpop.f32.mrf.mxu0 }
 0x16c   : > { %v2605_v31 = vpop.f32.mrf.mxu1  ;;  %v8541_v33 = vadd.f32 %v2603_v20, %v2491_v27  ;;  %v2493_v34 = vadd.f32 %v2492_v30, %v8345_v11  ;;  %3325 = vmatpush2.bf16.msra.mxu0 %v6892_v16  ;;  %v6901_v20 = vld [vmem:[#allocation2 + $0xe0] ss:$16 sps:$4 sm:$0xff]   ;;  %v6906_v27 = vld [vmem:[#allocation2 + $0xc4] ss:$16 sps:$4 sm:$0xff]  }
 0x16d   : > { %v2494_v39 = vpop.f32.mrf.mxu0  ;;  %3326 = vmatprep.subr.bf16.mxu0 %v6897_v24 }
 0x16e   : > { %v2607_v41 = vpop.f32.mrf.mxu1  ;;  %v8550_v43 = vadd.f32 %v2605_v31, %v2493_v34  ;;  %v2495_v44 = vadd.f32 %v2494_v39, %v8354_v14  ;;  %v7238_v34 = vld [vmem:[%s7662_s9 + $0x18] ss:$36 sps:$4 sm:$0xff]  }
 0x16f   : > { %v2498_v47 = vpop.f32.mrf.mxu0  ;;  %3175 = vmatmul.mubr.bf16.gmra.mxu0 %v7235_v50  ;;  %v6909_v50 = vld [vmem:[#allocation2 + $0xa4] ss:$16 sps:$4 sm:$0xff]  }
 0x170   : > { %9701 = vst [vmem:[#allocation14_spill] sm:$0xff] %v8550_v43  ;;  %v2611_v48 = vpop.f32.mrf.mxu1  ;;  %3288 = vmatmul.mubr.bf16.gmra.mxu1 %v7236_v53  ;;  %v8555_v54 = vadd.f32 %v2607_v41, %v2495_v44  ;;  %v2499_v55 = vadd.f32 %v2498_v47, %v8345_v11  ;;  %3327 = vmatpush2.bf16.msra.mxu0 %v6895_v35  ;;  %v7239_v35 = vld [vmem:[%s7662_s9 + $0x20] ss:$36 sps:$4 sm:$0xff]  }
 0x171   : > { %3330 = vmatprep.mubr.bf16.mxu0 %v7237_v60  ;;  %v2500_v62 = vpop.f32.mrf.mxu0  ;;  %3328 = vmatprep.subr.bf16.mxu0 %v6900_v42  ;;  %v7240_v41 = vld [vmem:[%s7662_s9 + $0x64] ss:$36 sps:$4 sm:$0xff]  }
 0x172   : > { %9702 = vst [vmem:[#allocation15_spill] sm:$0xff] %v8555_v54  ;;  %v2613_v0 = vpop.f32.mrf.mxu1  ;;  %3443 = vmatprep.mubr.bf16.mxu1 %v9684_v38  ;;  %v8563_v5 = vadd.f32 %v2611_v48, %v2499_v55  ;;  %v2501_v6 = vadd.f32 %v2500_v62, %v8354_v14  ;;  %v6907_v62 = vld [vmem:[#allocation2 + $0xa0] ss:$16 sps:$4 sm:$0xff]   ;;  %v7254_v54 = vld [vmem:[%s7662_s9 + $0x188] ss:$36 sps:$4 sm:$0xff]  }
 0x173   : > { %v2502_v8 = vpop.f32.mrf.mxu0 }
 0x174   : > { %v2615_v10 = vpop.f32.mrf.mxu1  ;;  %v8566_v13 = vadd.f32 %v2613_v0, %v2501_v6  ;;  %v2503_v16 = vadd.f32 %v2502_v8, %v8345_v11  ;;  %3329 = vmatpush2.bf16.msra.mxu0 %v6898_v59  ;;  %v6912_v0 = vld [vmem:[#allocation2 + $0x84] ss:$16 sps:$4 sm:$0xff]   ;;  %v7242_v8 = vld [vmem:[%s7662_s9 + $0x68] ss:$36 sps:$4 sm:$0xff]  }
 0x175   : > { %v2504_v18 = vpop.f32.mrf.mxu0  ;;  %4410 = vmatprep.subr.bf16.mxu0 %v6903_v2  ;;  %v7241_v6 = vld [vmem:[%s7662_s9 + $0x60] ss:$36 sps:$4 sm:$0xff]  }
 0x176   : > { %v2617_v19 = vpop.f32.mrf.mxu1  ;;  %v8569_v23 = vadd.f32 %v2615_v10, %v2503_v16  ;;  %v2505_v24 = vadd.f32 %v2504_v18, %v8354_v14  ;;  %v6904_v14 = vld [vmem:[#allocation2 + $0xc0] ss:$16 sps:$4 sm:$0xff]  }
 0x177   : > { %v2654_v30 = vpop.f32.mrf.mxu0  ;;  %3331 = vmatmul.mubr.bf16.vlgmr.msra.gmra.mxu0 %v7238_v34  ;;  %v7243_v16 = vld [vmem:[%s7662_s9 + $0xac] ss:$36 sps:$4 sm:$0xff]  }
 0x178   : > { %9703 = vst [vmem:[#allocation16_spill] sm:$0xff] %v8569_v23  ;;  %v2767_v31 = vpop.f32.mrf.mxu1  ;;  %6030 = vmatmul.mubr.msk.bf16.vlgmr.msra.gmra.mxu1 %vm2356_vm1, %v7239_v35  ;;  %v8575_v39 = vadd.f32 %v2617_v19, %v2505_v24  ;;  %v2655_v11 = vadd.f32 %v2654_v30, %v8369_v26  ;;  %3340 = vmatprep.mubr.bf16.mxu0 %v7240_v41  ;;  %v6915_v30 = vld [vmem:[#allocation2 + $0x64] ss:$16 sps:$4 sm:$0xff]   ;;  %v6913_v41 = vld [vmem:[#allocation2 + $0x60] ss:$16 sps:$4 sm:$0xff]  }
 0x179   : > { %3453 = vmatprep.mubr.bf16.mxu1 %v9684_v38  ;;  %v2656_v42 = vpop.f32.mrf.mxu0  ;;  %4411 = vmatpush1.bf16.msra.mxu0 %v6901_v20  ;;  %v6910_v20 = vld [vmem:[#allocation2 + $0x80] ss:$16 sps:$4 sm:$0xff]  }
 0x17a   : > { %9704 = vst [vmem:[#allocation17_spill] sm:$0xff] %v8575_v39  ;;  %v2769_v44 = vpop.f32.mrf.mxu1  ;;  %v8580_v47 = vadd.f32 %v2767_v31, %v2655_v11  ;;  %v2657_v48 = vadd.f32 %v2656_v42, %v8376_v32  ;;  %4412 = vmatprep.subr.bf16.mxu0 %v6906_v27  ;;  %v6999_v42 = vld [vmem:[#allocation2 + $0x2e4] ss:$16 sps:$4 sm:$0xff]  }
 0x17b   : > { %v8583_v53 = vpop.f32.mrf.mxu0  ;;  %4523 = vmatprep.subr.bf16.mxu1 %v6999_v42 }
 0x17c   : > { %v8585_v26 = vpop.f32.mrf.mxu1  ;;  %v8587_v55 = vadd.f32 %v2769_v44, %v2657_v48  ;;  %v6997_v44 = vld [vmem:[#allocation2 + $0x2e0] ss:$16 sps:$4 sm:$0xff]  }
 0x17d   : > { %v8589_v59 = vpop.f32.mrf.mxu0  ;;  %4413 = vmatpush1.bf16.msra.mxu0 %v6904_v14  ;;  %4524 = vmatpush1.bf16.msra.mxu1 %v6997_v44  ;;  %v6924_v44 = vld [vmem:[#allocation2 + $0x4] ss:$16 sps:$4 sm:$0xff]  }
 0x17e   : > { %v8591_v60 = vpop.f32.mrf.mxu1  ;;  %4414 = vmatprep.subr.bf16.mxu0 %v6909_v50  ;;  %v7244_v50 = vld [vmem:[%s7662_s9 + $0xa8] ss:$36 sps:$4 sm:$0xff]  }
 0x17f   : > { %v2664_v2 = vpop.f32.mrf.mxu0  ;;  %3341 = vmatmul.mubr.bf16.gmra.mxu0 %v7241_v6 }
 0x180   : > { %v2777_v32 = vpop.f32.mrf.mxu1  ;;  %6031 = vmatmul.mubr.msk.bf16.gmra.mxu1 %vm2356_vm1, %v7242_v8  ;;  %v2665_v10 = vadd.f32 %v2664_v2, %v8398_v52  ;;  %3350 = vmatprep.mubr.bf16.mxu0 %v7243_v16  ;;  %v7246_v2 = vld [vmem:[%s7662_s9 + $0xf4] ss:$36 sps:$4 sm:$0xff]   ;;  %v6916_v8 = vld [vmem:[#allocation2 + $0x40] ss:$16 sps:$4 sm:$0xff]  }
 0x181   : > { %3463 = vmatprep.mubr.bf16.mxu1 %v9684_v38  ;;  %v2666_v18 = vpop.f32.mrf.mxu0  ;;  %4415 = vmatpush1.bf16.msra.mxu0 %v6907_v62  ;;  %v7245_v62 = vld [vmem:[%s7662_s9 + $0xb0] ss:$36 sps:$4 sm:$0xff]  }
 0x182   : > { %v2779_v19 = vpop.f32.mrf.mxu1  ;;  %v8599_v24 = vadd.f32 %v2777_v32, %v2665_v10  ;;  %v2667_v27 = vadd.f32 %v2666_v18, %v8404_v57  ;;  %4416 = vmatprep.subr.bf16.mxu0 %v6912_v0  ;;  %v6918_v57 = vld [vmem:[#allocation2 + $0x44] ss:$16 sps:$4 sm:$0xff]  }
 0x183   : > { %v8602_v31 = vpop.f32.mrf.mxu0  ;;  %v7002_v10 = vld [vmem:[#allocation2 + $0x2c4] ss:$16 sps:$4 sm:$0xff]  }
 0x184   : > { %v8604_v34 = vpop.f32.mrf.mxu1  ;;  %v8606_v52 = vadd.f32 %v2779_v19, %v2667_v27  ;;  %v6921_v19 = vld [vmem:[#allocation2 + $0x24] ss:$16 sps:$4 sm:$0xff]   ;;  %4525 = vmatprep.subr.bf16.mxu1 %v7002_v10  ;;  %v6922_v10 = vld [vmem:[#allocation2] ss:$16 sps:$4 sm:$0xff]  }
 0x185   : > { %v8608_v35 = vpop.f32.mrf.mxu0  ;;  %4417 = vmatpush1.bf16.msra.mxu0 %v6910_v20  ;;  %v7000_v20 = vld [vmem:[#allocation2 + $0x2c0] ss:$16 sps:$4 sm:$0xff]  }
 0x186   : > { %v8610_v11 = vpop.f32.mrf.mxu1  ;;  %4418 = vmatprep.subr.bf16.mxu0 %v6915_v30  ;;  %4526 = vmatpush1.bf16.msra.mxu1 %v7000_v20 }
 0x187   : > { %v2674_v14 = vpop.f32.mrf.mxu0  ;;  %3351 = vmatmul.mubr.bf16.gmra.mxu0 %v7244_v50 }
 0x188   : > { %v2787_v48 = vpop.f32.mrf.mxu1  ;;  %6032 = vmatmul.mubr.msk.bf16.gmra.mxu1 %vm2356_vm1, %v7245_v62  ;;  %v2675_v0 = vadd.f32 %v2674_v14, %v8426_v17  ;;  %3360 = vmatprep.mubr.bf16.mxu0 %v7246_v2  ;;  %v7003_v14 = vld [vmem:[#allocation2 + $0x2a0] ss:$16 sps:$4 sm:$0xff]  }
 0x189   : > { %3473 = vmatprep.mubr.bf16.mxu1 %v9684_v38  ;;  %v2676_v32 = vpop.f32.mrf.mxu0  ;;  %4419 = vmatpush1.bf16.msra.mxu0 %v6913_v41  ;;  %v7247_v62 = vld [vmem:[%s7662_s9 + $0xf0] ss:$36 sps:$4 sm:$0xff]  }
 0x18a   : > { %v2789_v6 = vpop.f32.mrf.mxu1  ;;  %v8618_v16 = vadd.f32 %v2787_v48, %v2675_v0  ;;  %v2677_v18 = vadd.f32 %v2676_v32, %v8432_v22  ;;  %4420 = vmatprep.subr.bf16.mxu0 %v6918_v57  ;;  %v6919_v22 = vld [vmem:[#allocation2 + $0x20] ss:$16 sps:$4 sm:$0xff]   ;;  %v7005_v57 = vld [vmem:[#allocation2 + $0x2a4] ss:$16 sps:$4 sm:$0xff]   ;;  %v7248_v0 = vld [vmem:[%s7662_s9 + $0xf8] ss:$36 sps:$4 sm:$0xff]  }
 0x18b   : > { %v8621_v17 = vpop.f32.mrf.mxu0  ;;  %v7249_v32 = vld [vmem:[%s7662_s9 + $0x13c] ss:$36 sps:$4 sm:$0xff]   ;;  %4527 = vmatprep.subr.bf16.mxu1 %v7005_v57 }
 0x18c   : > { %v8623_v27 = vpop.f32.mrf.mxu1  ;;  %v8625_v30 = vadd.f32 %v2789_v6, %v2677_v18  ;;  %v7008_v18 = vld [vmem:[#allocation2 + $0x284] ss:$16 sps:$4 sm:$0xff]   ;;  %4528 = vmatpush1.bf16.msra.mxu1 %v7003_v14 }
 0x18d   : > { %v8627_v41 = vpop.f32.mrf.mxu0  ;;  %4421 = vmatpush1.bf16.msra.mxu0 %v6916_v8  ;;  %4529 = vmatprep.subr.bf16.mxu1 %v7008_v18  ;;  %v6930_v14 = vld [vmem:[#allocation2 + $0x1c4] ss:$16 sps:$4 sm:$0xff]  }
 0x18e   : > { %v8629_v42 = vpop.f32.mrf.mxu1  ;;  %4422 = vmatprep.subr.bf16.mxu0 %v6921_v19  ;;  %v7252_v18 = vld [vmem:[%s7662_s9 + $0x184] ss:$36 sps:$4 sm:$0xff]  }
 0x18f   : > { %v2684_v48 = vpop.f32.mrf.mxu0  ;;  %3361 = vmatmul.mubr.bf16.gmra.mxu0 %v7247_v62  ;;  %v6927_v62 = vld [vmem:[#allocation2 + $0x1e4] ss:$16 sps:$4 sm:$0xff]  }
 0x190   : > { %v2797_v50 = vpop.f32.mrf.mxu1  ;;  %6033 = vmatmul.mubr.msk.bf16.gmra.mxu1 %vm2356_vm1, %v7248_v0  ;;  %v2685_v2 = vadd.f32 %v2684_v48, %v8454_v46  ;;  %3370 = vmatprep.mubr.bf16.mxu0 %v7249_v32  ;;  %v7006_v0 = vld [vmem:[#allocation2 + $0x280] ss:$16 sps:$4 sm:$0xff]  }
 0x191   : > { %3483 = vmatprep.mubr.bf16.mxu1 %v9684_v38  ;;  %v2686_v6 = vpop.f32.mrf.mxu0  ;;  %4423 = vmatpush1.bf16.msra.mxu0 %v6919_v22 }
 0x192   : > { %v2799_v8 = vpop.f32.mrf.mxu1  ;;  %v8637_v19 = vadd.f32 %v2797_v50, %v2685_v2  ;;  %v2687_v20 = vadd.f32 %v2686_v6, %v8460_v51  ;;  %4424 = vmatprep.subr.bf16.mxu0 %v6924_v44  ;;  %v6925_v51 = vld [vmem:[#allocation2 + $0x1e0] ss:$16 sps:$4 sm:$0xff]   ;;  %v7011_v44 = vld [vmem:[#allocation2 + $0x264] ss:$16 sps:$4 sm:$0xff]   ;;  %4530 = vmatpush1.bf16.msra.mxu1 %v7006_v0 }
 0x193   : > { %v8640_v46 = vpop.f32.mrf.mxu0  ;;  %v7009_v50 = vld [vmem:[#allocation2 + $0x260] ss:$16 sps:$4 sm:$0xff]   ;;  %4531 = vmatprep.subr.bf16.mxu1 %v7011_v44  ;;  %v7014_v0 = vld [vmem:[#allocation2 + $0x244] ss:$16 sps:$4 sm:$0xff]  }
 0x194   : > { %v8642_v48 = vpop.f32.mrf.mxu1  ;;  %v8644_v32 = vadd.f32 %v2799_v8, %v2687_v20 }
 0x195   : > { %v8646_v22 = vpop.f32.mrf.mxu0  ;;  %4425 = vmatpush1.bf16.msra.mxu0 %v6922_v10 }
 0x196   : > { %v8648_v57 = vpop.f32.mrf.mxu1  ;;  %4426 = vmatprep.subr.bf16.mxu0 %v6927_v62  ;;  %v6928_v62 = vld [vmem:[#allocation2 + $0x1c0] ss:$16 sps:$4 sm:$0xff]   ;;  %4532 = vmatpush1.bf16.msra.mxu1 %v7009_v50  ;;  %v6936_v50 = vld [vmem:[#allocation2 + $0x184] ss:$16 sps:$4 sm:$0xff]  }
 0x197   : > { %v2694_v2 = vpop.f32.mrf.mxu0  ;;  %3371 = vmatmul.mubr.bf16.gmra.mxu0 %v7250_v4  ;;  %v6933_v4 = vld [vmem:[#allocation2 + $0x1a4] ss:$16 sps:$4 sm:$0xff]   ;;  %4533 = vmatprep.subr.bf16.mxu1 %v7014_v0  ;;  %v9705_v0 = vmov 0  }
 0x198   : > { %v2807_v6 = vpop.f32.mrf.mxu1  ;;  %6034 = vmatmul.mubr.msk.bf16.gmra.mxu1 %vm2356_vm1, %v7251_v9  ;;  %v2695_v8 = vadd.f32 %v2694_v2, %v8482_v15  ;;  %3380 = vmatprep.mubr.bf16.mxu0 %v7252_v18  ;;  %v7012_v9 = vld [vmem:[#allocation2 + $0x240] ss:$16 sps:$4 sm:$0xff]  }
 0x199   : > { %3493 = vmatprep.mubr.bf16.mxu1 %v9684_v38  ;;  %v2696_v10 = vpop.f32.mrf.mxu0  ;;  %4427 = vmatpush2.bf16.msra.mxu0 %v6925_v51  ;;  %v7253_v38 = vld [vmem:[%s7662_s9 + $0x180] ss:$36 sps:$4 sm:$0xff]  }
 0x19a   : > { %v2809_v20 = vpop.f32.mrf.mxu1  ;;  %v8656_v39 = vadd.f32 %v2807_v6, %v2695_v8  ;;  %v2697_v23 = vadd.f32 %v2696_v10, %v8488_v21  ;;  %4428 = vmatprep.subr.bf16.mxu0 %v6930_v14  ;;  %v6931_v21 = vld [vmem:[#allocation2 + $0x1a0] ss:$16 sps:$4 sm:$0xff]   ;;  %v7017_v14 = vld [vmem:[#allocation2 + $0x224] ss:$16 sps:$4 sm:$0xff]   ;;  %4534 = vmatpush1.bf16.msra.mxu1 %v7012_v9 }
 0x19b   : > { %v8659_v15 = vpop.f32.mrf.mxu0  ;;  %v7015_v6 = vld [vmem:[#allocation2 + $0x220] ss:$16 sps:$4 sm:$0xff]   ;;  %4535 = vmatprep.subr.bf16.mxu1 %v7017_v14  ;;  %v7020_v9 = vld [vmem:[#allocation2 + $0x204] ss:$16 sps:$4 sm:$0xff]  }
 0x19c   : > { %v8661_v2 = vpop.f32.mrf.mxu1  ;;  %v8663_v18 = vadd.f32 %v2809_v20, %v2697_v23  ;;  %v7255_v20 = vld [vmem:[%s7662_s9 + $0x1cc] ss:$36 sps:$4 sm:$0xff]  }
 0x19d   : > { %v8665_v51 = vpop.f32.mrf.mxu0  ;;  %4429 = vmatpush2.bf16.msra.mxu0 %v6928_v62 }
 0x19e   : > { %v8667_v44 = vpop.f32.mrf.mxu1  ;;  %4430 = vmatprep.subr.bf16.mxu0 %v6933_v4  ;;  %v6934_v4 = vld [vmem:[#allocation2 + $0x180] ss:$16 sps:$4 sm:$0xff]   ;;  %4536 = vmatpush1.bf16.msra.mxu1 %v7015_v6  ;;  %v6942_v6 = vld [vmem:[#allocation2 + $0x144] ss:$16 sps:$4 sm:$0xff]  }
 0x19f   : > { %v2704_v8 = vpop.f32.mrf.mxu0  ;;  %3381 = vmatmul.mubr.bf16.gmra.mxu0 %v7253_v38  ;;  %v6939_v38 = vld [vmem:[#allocation2 + $0x164] ss:$16 sps:$4 sm:$0xff]   ;;  %4537 = vmatprep.subr.bf16.mxu1 %v7020_v9 }
 0x1a0   : > { %v2817_v10 = vpop.f32.mrf.mxu1  ;;  %6035 = vmatmul.mubr.msk.bf16.gmra.mxu1 %vm2356_vm1, %v7254_v54  ;;  %v2705_v23 = vadd.f32 %v2704_v8, %v8510_v49  ;;  %3390 = vmatprep.mubr.bf16.mxu0 %v7255_v20  ;;  %v7018_v54 = vld [vmem:[#allocation2 + $0x200] ss:$16 sps:$4 sm:$0xff]  }
 0x1a1   : > { %3503 = vmatprep.mubr.bf16.mxu1 %v9705_v0  ;;  %v2706_v62 = vpop.f32.mrf.mxu0  ;;  %4431 = vmatpush2.bf16.msra.mxu0 %v6931_v21 }
 0x1a2   : > { %v2819_v43 = vpop.f32.mrf.mxu1  ;;  %v8675_v12 = vadd.f32 %v2817_v10, %v2705_v23  ;;  %v2707_v1 = vadd.f32 %v2706_v62, %v8516_v56  ;;  %4432 = vmatprep.subr.bf16.mxu0 %v6936_v50  ;;  %v6937_v56 = vld [vmem:[#allocation2 + $0x160] ss:$16 sps:$4 sm:$0xff]   ;;  %v7023_v50 = vld [vmem:[#allocation2 + $0x3e4] ss:$16 sps:$4 sm:$0xff]   ;;  %4538 = vmatpush1.bf16.msra.mxu1 %v7018_v54 }
 0x1a3   : > { %v8678_v49 = vpop.f32.mrf.mxu0  ;;  %v7021_v10 = vld [vmem:[#allocation2 + $0x3e0] ss:$16 sps:$4 sm:$0xff]   ;;  %4539 = vmatprep.subr.bf16.mxu1 %v7023_v50  ;;  %v7026_v54 = vld [vmem:[#allocation2 + $0x3c4] ss:$16 sps:$4 sm:$0xff]  }
 0x1a4   : > { %9706 = vst [vmem:[#allocation18_spill] sm:$0xff] %v8675_v12  ;;  %v8680_v8 = vpop.f32.mrf.mxu1  ;;  %v8682_v20 = vadd.f32 %v2819_v43, %v2707_v1  ;;  %v7256_v12 = vld [vmem:[%s7662_s9 + $0x1c8] ss:$36 sps:$4 sm:$0xff]   ;;  %v7258_v43 = vld [vmem:[%s7662_s9 + $0x214] ss:$36 sps:$4 sm:$0xff]  }
 0x1a5   : > { %9707 = vst [vmem:[#allocation19_spill] sm:$0xff] %v8680_v8  ;;  %v8684_v21 = vpop.f32.mrf.mxu0  ;;  %4433 = vmatpush2.bf16.msra.mxu0 %v6934_v4  ;;  %v7257_v8 = vld [vmem:[%s7662_s9 + $0x1d0] ss:$36 sps:$4 sm:$0xff]  }
 0x1a6   : > { %9708 = vst [vmem:[#allocation20_spill] sm:$0xff] %v8682_v20  ;;  %v8686_v14 = vpop.f32.mrf.mxu1  ;;  %4434 = vmatprep.subr.bf16.mxu0 %v6939_v38  ;;  %v6940_v38 = vld [vmem:[#allocation2 + $0x140] ss:$16 sps:$4 sm:$0xff]   ;;  %4540 = vmatpush2.bf16.msra.mxu1 %v7021_v10 }
 0x1a7   : > { %9709 = vst [vmem:[#allocation21_spill] sm:$0xff] %v8686_v14  ;;  %v2714_v23 = vpop.f32.mrf.mxu0  ;;  %3391 = vmatmul.mubr.bf16.gmra.mxu0 %v7256_v12  ;;  %v6945_v12 = vld [vmem:[#allocation2 + $0x124] ss:$16 sps:$4 sm:$0xff]   ;;  %4541 = vmatprep.subr.bf16.mxu1 %v7026_v54  ;;  %v7027_v10 = vld [vmem:[#allocation2 + $0x3a0] ss:$16 sps:$4 sm:$0xff]  }
 0x1a8   : > { %v2827_v62 = vpop.f32.mrf.mxu1  ;;  %6036 = vmatmul.mubr.msk.bf16.gmra.mxu1 %vm2356_vm1, %v7257_v8  ;;  %v2715_v1 = vadd.f32 %v2714_v23, %v8538_v25  ;;  %3400 = vmatprep.mubr.bf16.mxu0 %v7258_v43  ;;  %v7024_v8 = vld [vmem:[#allocation2 + $0x3c0] ss:$16 sps:$4 sm:$0xff]  }
 0x1a9   : > { %3513 = vmatprep.mubr.bf16.mxu1 %v9705_v0  ;;  %v2716_v4 = vpop.f32.mrf.mxu0  ;;  %4435 = vmatpush2.bf16.msra.mxu0 %v6937_v56 }
 0x1aa   : > { %v2829_v9 = vpop.f32.mrf.mxu1  ;;  %v8694_v20 = vadd.f32 %v2827_v62, %v2715_v1  ;;  %v2717_v14 = vadd.f32 %v2716_v4, %v8541_v33  ;;  %4436 = vmatprep.subr.bf16.mxu0 %v6942_v6  ;;  %v6943_v62 = vld [vmem:[#allocation2 + $0x120] ss:$16 sps:$4 sm:$0xff]   ;;  %v7029_v33 = vld [vmem:[#allocation2 + $0x3a4] ss:$16 sps:$4 sm:$0xff]   ;;  %4542 = vmatpush2.bf16.msra.mxu1 %v7024_v8 }
 0x1ab   : > { %v8697_v25 = vpop.f32.mrf.mxu0  ;;  %v6948_v6 = vld [vmem:[#allocation2 + $0x104] ss:$16 sps:$4 sm:$0xff]   ;;  %4543 = vmatprep.subr.bf16.mxu1 %v7029_v33 }
 0x1ac   : > { %9710 = vst [vmem:[#allocation22_spill] sm:$0xff] %v8694_v20  ;;  %v8699_v23 = vpop.f32.mrf.mxu1  ;;  %v8701_v0 = vadd.f32 %v2829_v9, %v2717_v14  ;;  %v7259_v4 = vld [vmem:[%s7662_s9 + $0x210] ss:$36 sps:$4 sm:$0xff]   ;;  %v7260_v20 = vld [vmem:[%s7662_s9 + $0x218] ss:$36 sps:$4 sm:$0xff]   ;;  %v9686_v9 = vsub.s32 2, %v8311_v61 }
 0x1ad   : > { %9711 = vst [vmem:[#allocation23_spill] sm:$0xff] %v8699_v23  ;;  %v8703_v56 = vpop.f32.mrf.mxu0  ;;  %4437 = vmatpush2.bf16.msra.mxu0 %v6940_v38  ;;  %v9687_v23 = vsub.s32 3, %v8311_v61  ;;  %s9633_s9 = scalar_lea.sflag [#allocation4], %s302_s18 }
 0x1ae   : > { %9712 = vst [vmem:[#allocation24_spill] sm:$0xff] %v8701_v0  ;;  %9713 = vst [vmem:[#allocation25_spill] sm:$0xff] %v8703_v56  ;;  %v8705_v50 = vpop.f32.mrf.mxu1  ;;  %4438 = vmatprep.subr.bf16.mxu0 %v6945_v12  ;;  %v6946_v0 = vld [vmem:[#allocation2 + $0x100] ss:$16 sps:$4 sm:$0xff]   ;;  %v7032_v12 = vld [vmem:[#allocation2 + $0x384] ss:$16 sps:$4 sm:$0xff]   ;;  %4544 = vmatpush2.bf16.msra.mxu1 %v7027_v10 }
 0x1af   : > { %9714 = vst [vmem:[#allocation26_spill] sm:$0xff] %v8705_v50  ;;  %v2724_v1 = vpop.f32.mrf.mxu0  ;;  %3401 = vmatmul.mubr.bf16.gmra.mxu0 %v7259_v4  ;;  %v6951_v4 = vld [vmem:[#allocation2 + $0xec] ss:$16 sps:$4 sm:$0xff]   ;;  %4545 = vmatprep.subr.bf16.mxu1 %v7032_v12  ;;  %v7035_v10 = vld [vmem:[#allocation2 + $0x364] ss:$16 sps:$4 sm:$0xff]  }
 0x1b0   : > { %v2837_v43 = vpop.f32.mrf.mxu1  ;;  %6037 = vmatmul.mubr.msk.bf16.gmra.mxu1 %vm2356_vm1, %v7260_v20  ;;  %v2725_v14 = vadd.f32 %v2724_v1, %v8563_v5  ;;  %v7030_v20 = vld [vmem:[#allocation2 + $0x380] ss:$16 sps:$4 sm:$0xff]  }
 0x1b1   : > { %v2726_v54 = vpop.f32.mrf.mxu0  ;;  %4439 = vmatpush2.bf16.msra.mxu0 %v6943_v62  ;;  %v7261_v62 = vld [vmem:[%s9675_s2] sm:$0xf] }
 0x1b2   : > { %v2839_v38 = vpop.f32.mrf.mxu1  ;;  %v8712_v50 = vadd.f32 %v2837_v43, %v2725_v14  ;;  %v2727_v8 = vadd.f32 %v2726_v54, %v8566_v13  ;;  %4440 = vmatprep.subr.bf16.mxu0 %v6948_v6  ;;  %v8727_v13 = vrot.slane %v7261_v62, %v9686_v9  ;;  %v2659_v43 = vadd.f32 %v8583_v53, %v8382_v37  ;;  %v7033_v54 = vld [vmem:[#allocation2 + $0x360] ss:$16 sps:$4 sm:$0xff]  }
 0x1b3   : > { %v8716_v56 = vpop.f32.mrf.mxu0  ;;  %v8737_v14 = vrot.slane %v7261_v62, %v9687_v23  ;;  %4546 = vmatpush2.bf16.msra.mxu1 %v7030_v20  ;;  %v7036_v20 = vld [vmem:[#allocation2 + $0x340] ss:$16 sps:$4 sm:$0xff]  }
 0x1b4   : > { %v8718_v5 = vpop.f32.mrf.mxu1  ;;  %v8720_v33 = vadd.f32 %v2839_v38, %v2727_v8  ;;  %4547 = vmatprep.subr.bf16.mxu1 %v7035_v10  ;;  %v2661_v8 = vadd.f32 %v8589_v59, %v8390_v45  ;;  %v2772_v37 = vadd.f32 %v8585_v26, %v2659_v43 }
 0x1b5   : > { %v8729_v1 = vpop.f32.mrf.mxu0  ;;  %4441 = vmatpush2.bf16.msra.mxu0 %v6946_v0 }
 0x1b6   : > { %9715 = vst [vmem:[#allocation27_spill] sm:$0xff] %v8720_v33  ;;  %v8731_v6 = vpop.f32.mrf.mxu1  ;;  %4636 = vmatprep.subr.bf16.mxu0 %v6951_v4  ;;  %v2774_v45 = vadd.f32 %v8591_v60, %v2661_v8  ;;  %v2671_v60 = vadd.f32 %v8608_v35, %v8418_v7  ;;  %v6949_v35 = vld [vmem:[#allocation2 + $0xe8] ss:$16 sps:$4 sm:$0xff]  }
 0x1b7   : > { %9716 = vst [vmem:[#allocation28_spill] sm:$0xff] %v8731_v6  ;;  %v2880_v38 = vpop.f32.mrf.mxu0  ;;  %v7038_v6 = vld [vmem:[#allocation2 + $0x344] ss:$16 sps:$4 sm:$0xff]   ;;  %4548 = vmatpush2.bf16.msra.mxu1 %v7033_v54 }
 0x1b8   : > { %v2993_v12 = vpop.f32.mrf.mxu1  ;;  %v2881_v53 = vadd.f32 %v2880_v38, %v8580_v47  ;;  %4549 = vmatprep.subr.bf16.mxu1 %v7038_v6  ;;  %v7041_v47 = vld [vmem:[#allocation2 + $0x324] ss:$16 sps:$4 sm:$0xff]   ;;  %v7039_v6 = vld [vmem:[#allocation2 + $0x320] ss:$16 sps:$4 sm:$0xff]  }
 0x1b9   : > { %v8742_v9 = vadd.f32 %v2993_v12, %v8727_v13  ;;  %v2882_v0 = vpop.f32.mrf.mxu0 }
 0x1ba   : > { %v2995_v33 = vpop.f32.mrf.mxu1  ;;  %v2883_v59 = vadd.f32 %v2882_v0, %v8587_v55  ;;  %v3524_v43 = vmax.f32 %v2881_v53, 0.0 }
 0x1bb   : > { %v8747_v4 = vadd.f32 %v2995_v33, %v8737_v14  ;;  %v2884_v62 = vpop.f32.mrf.mxu0  ;;  %v2669_v33 = vadd.f32 %v8602_v31, %v8410_v63  ;;  %4550 = vmatpush2.bf16.msra.mxu1 %v7036_v20  ;;  %v7044_v31 = vld [vmem:[#allocation2 + $0x304] ss:$16 sps:$4 sm:$0xff]  }
 0x1bc   : > { %v2997_v10 = vpop.f32.mrf.mxu1  ;;  %v2885_v12 = vadd.f32 %v2884_v62, %v2772_v37  ;;  %4551 = vmatprep.subr.bf16.mxu1 %v7041_v47  ;;  %v3525_v0 = vmax.f32 %v2883_v59, 0.0  ;;  %v6954_v47 = vld [vmem:[#allocation2 + $0xcc] ss:$16 sps:$4 sm:$0xff]  }
 0x1bd   : > { %v8752_v23 = vadd.f32 %v2997_v10, %v8727_v13  ;;  %v2886_v61 = vpop.f32.mrf.mxu0 }
 0x1be   : > { %v8754_v26 = vpop.f32.mrf.mxu1  ;;  %v3528_v54 = vmax.f32 %v2885_v12, 0.0  ;;  %v2887_v38 = vadd.f32 %v2886_v61, %v2774_v45  ;;  %v2782_v61 = vadd.f32 %v8604_v34, %v2669_v33  ;;  %v7042_v45 = vld [vmem:[#allocation2 + $0x300] ss:$16 sps:$4 sm:$0xff]  }
 0x1bf   : > { %9717 = vst [vmem:[#allocation29_spill] sm:$0xff] %v8752_v23  ;;  %v2890_v55 = vpop.f32.mrf.mxu0  ;;  %4552 = vmatpush2.bf16.msra.mxu1 %v7039_v6  ;;  %v7047_v6 = vld [vmem:[#allocation2 + $0x2ec] ss:$16 sps:$4 sm:$0xff]  }
 0x1c0   : > { %v3003_v8 = vpop.f32.mrf.mxu1  ;;  %v8760_v37 = vpack.c.bf16 %v3528_v54, %v3524_v43  ;;  %v3529_v62 = vmax.f32 %v2887_v38, 0.0  ;;  %v2891_v53 = vadd.f32 %v2890_v55, %v8599_v24  ;;  %4553 = vmatprep.subr.bf16.mxu1 %v7044_v31  ;;  %v2784_v43 = vadd.f32 %v8610_v11, %v2671_v60 }
 0x1c1   : > { %v8763_v10 = vadd.f32 %v3003_v8, %v8727_v13  ;;  %v2892_v23 = vpop.f32.mrf.mxu0  ;;  %v2679_v55 = vadd.f32 %v8621_v17, %v8438_v28 }
 0x1c2   : > { %v3005_v63 = vpop.f32.mrf.mxu1  ;;  %v8770_v7 = vpack.c.bf16 %v3529_v62, %v3525_v0  ;;  %v2893_v54 = vadd.f32 %v2892_v23, %v8606_v52  ;;  %v3532_v8 = vmax.f32 %v2891_v53, 0.0  ;;  %v6952_v52 = vld [vmem:[#allocation2 + $0xc8] ss:$16 sps:$4 sm:$0xff]   ;;  %v2681_v23 = vadd.f32 %v8627_v41, %v8446_v36 }
 0x1c3   : > { %v8768_v20 = vadd.f32 %v3005_v63, %v8737_v14  ;;  %v2894_v59 = vpop.f32.mrf.mxu0  ;;  %4554 = vmatpush2.bf16.msra.mxu1 %v7042_v45  ;;  %v6957_v63 = vld [vmem:[#allocation2 + $0xac] ss:$16 sps:$4 sm:$0xff]  }
 0x1c4   : > { %v3007_v12 = vpop.f32.mrf.mxu1  ;;  %v2895_v38 = vadd.f32 %v2894_v59, %v2782_v61  ;;  %4442 = vmatprep.mubr.bf16.mxu0 %v8770_v7  ;;  %4749 = vmatprep.subr.bf16.mxu1 %v7047_v6  ;;  %v3533_v31 = vmax.f32 %v2893_v54, 0.0  ;;  %v6960_v54 = vld [vmem:[#allocation2 + $0x8c] ss:$16 sps:$4 sm:$0xff]  }
 0x1c5   : > { %v8775_v34 = vadd.f32 %v3007_v12, %v8727_v13  ;;  %v2896_v24 = vpop.f32.mrf.mxu0  ;;  %4443 = vmatmul.mubr.bf16.vlgmr.msra.gmra.mxu0 %v8760_v37  ;;  %v6955_v12 = vld [vmem:[#allocation2 + $0xa8] ss:$16 sps:$4 sm:$0xff]  }
 0x1c6   : > { %v8778_v33 = vpop.f32.mrf.mxu1  ;;  %v3536_v0 = vmax.f32 %v2895_v38, 0.0  ;;  %v2897_v11 = vadd.f32 %v2896_v24, %v2784_v43  ;;  %4637 = vmatpush1.bf16.msra.mxu0 %v6949_v35  ;;  %v2792_v35 = vadd.f32 %v8623_v27, %v2679_v55  ;;  %v2794_v38 = vadd.f32 %v8629_v42, %v2681_v23  ;;  %v6958_v42 = vld [vmem:[#allocation2 + $0x88] ss:$16 sps:$4 sm:$0xff]  }
 0x1c7   : > { %v2900_v60 = vpop.f32.mrf.mxu0  ;;  %4638 = vmatprep.subr.bf16.mxu0 %v6954_v47 }
 0x1c8   : > { %v3013_v62 = vpop.f32.mrf.mxu1  ;;  %v8785_v61 = vpack.c.bf16 %v3536_v0, %v3532_v8  ;;  %v3537_v59 = vmax.f32 %v2897_v11, 0.0  ;;  %v2901_v45 = vadd.f32 %v2900_v60, %v8618_v16  ;;  %v2689_v8 = vadd.f32 %v8640_v46, %v8466_v58 }
 0x1c9   : > { %v8788_v28 = vadd.f32 %v3013_v62, %v8727_v13  ;;  %v2902_v17 = vpop.f32.mrf.mxu0  ;;  %v6963_v62 = vld [vmem:[#allocation2 + $0x6c] ss:$16 sps:$4 sm:$0xff]  }
 0x1ca   : > { %v3015_v53 = vpop.f32.mrf.mxu1  ;;  %4639 = vmatpush1.bf16.msra.mxu0 %v6952_v52  ;;  %v8795_v41 = vpack.c.bf16 %v3537_v59, %v3533_v31  ;;  %v2903_v24 = vadd.f32 %v2902_v17, %v8625_v30  ;;  %v3540_v0 = vmax.f32 %v2901_v45, 0.0  ;;  %v2691_v30 = vadd.f32 %v8646_v22, %v8474_v3  ;;  %v6961_v22 = vld [vmem:[#allocation2 + $0x68] ss:$16 sps:$4 sm:$0xff]  }
 0x1cb   : > { %v8793_v36 = vadd.f32 %v3015_v53, %v8737_v14  ;;  %v2904_v47 = vpop.f32.mrf.mxu0  ;;  %4640 = vmatprep.subr.bf16.mxu0 %v6957_v63  ;;  %v2802_v53 = vadd.f32 %v8642_v48, %v2689_v8 }
 0x1cc   : > { %v3017_v43 = vpop.f32.mrf.mxu1  ;;  %v2905_v6 = vadd.f32 %v2904_v47, %v2792_v35  ;;  %4452 = vmatprep.mubr.bf16.mxu0 %v8795_v41  ;;  %v3541_v63 = vmax.f32 %v2903_v24, 0.0 }
 0x1cd   : > { %v8800_v27 = vadd.f32 %v3017_v43, %v8727_v13  ;;  %v2906_v16 = vpop.f32.mrf.mxu0  ;;  %4453 = vmatmul.mubr.bf16.gmra.mxu0 %v8785_v61  ;;  %v6966_v43 = vld [vmem:[#allocation2 + $0x4c] ss:$16 sps:$4 sm:$0xff]  }
 0x1ce   : > { %v8803_v55 = vpop.f32.mrf.mxu1  ;;  %v3544_v11 = vmax.f32 %v2905_v6, 0.0  ;;  %v2907_v52 = vadd.f32 %v2906_v16, %v2794_v38  ;;  %4641 = vmatpush1.bf16.msra.mxu0 %v6955_v12  ;;  %v2699_v16 = vadd.f32 %v8659_v15, %v8494_v29 }
 0x1cf   : > { %v2910_v23 = vpop.f32.mrf.mxu0  ;;  %4642 = vmatprep.subr.bf16.mxu0 %v6960_v54  ;;  %v2804_v54 = vadd.f32 %v8648_v57, %v2691_v30  ;;  %v6964_v57 = vld [vmem:[#allocation2 + $0x48] ss:$16 sps:$4 sm:$0xff]   ;;  %v6969_v30 = vld [vmem:[#allocation2 + $0x2c] ss:$16 sps:$4 sm:$0xff]  }
 0x1d0   : > { %v3023_v60 = vpop.f32.mrf.mxu1  ;;  %v8810_v31 = vpack.c.bf16 %v3544_v11, %v3540_v0  ;;  %v3545_v59 = vmax.f32 %v2907_v52, 0.0  ;;  %v2911_v35 = vadd.f32 %v2910_v23, %v8637_v19 }
 0x1d1   : > { %v8813_v17 = vadd.f32 %v3023_v60, %v8727_v13  ;;  %v2912_v58 = vpop.f32.mrf.mxu0 }
 0x1d2   : > { %v3025_v46 = vpop.f32.mrf.mxu1  ;;  %4643 = vmatpush1.bf16.msra.mxu0 %v6958_v42  ;;  %v8820_v3 = vpack.c.bf16 %v3545_v59, %v3541_v63  ;;  %v2913_v38 = vadd.f32 %v2912_v58, %v8644_v32  ;;  %v3548_v8 = vmax.f32 %v2911_v35, 0.0  ;;  %v2701_v32 = vadd.f32 %v8665_v51, %v8502_v40  ;;  %v6967_v51 = vld [vmem:[#allocation2 + $0x28] ss:$16 sps:$4 sm:$0xff]  }
 0x1d3   : > { %v8818_v45 = vadd.f32 %v3025_v46, %v8737_v14  ;;  %v2914_v12 = vpop.f32.mrf.mxu0  ;;  %4644 = vmatprep.subr.bf16.mxu0 %v6963_v62  ;;  %v2812_v59 = vadd.f32 %v8661_v2, %v2699_v16 }
 0x1d4   : > { %v3027_v47 = vpop.f32.mrf.mxu1  ;;  %v2915_v24 = vadd.f32 %v2914_v12, %v2802_v53  ;;  %4462 = vmatprep.mubr.bf16.mxu0 %v8820_v3  ;;  %v3549_v23 = vmax.f32 %v2913_v38, 0.0  ;;  %v2814_v12 = vadd.f32 %v8667_v44, %v2701_v32  ;;  %v9718_v38 = vld [vmem:[#allocation12_spill] sm:$0xff] }
 0x1d5   : > { %v8825_v48 = vadd.f32 %v3027_v47, %v8727_v13  ;;  %v2916_v19 = vpop.f32.mrf.mxu0  ;;  %4463 = vmatmul.mubr.bf16.gmra.mxu0 %v8810_v31  ;;  %v6970_v44 = vld [vmem:[#allocation2 + $0x8] ss:$16 sps:$4 sm:$0xff]   ;;  %v6975_v32 = vld [vmem:[#allocation2 + $0x1ec] ss:$16 sps:$4 sm:$0xff]  }
 0x1d6   : > { %v8828_v6 = vpop.f32.mrf.mxu1  ;;  %v3552_v0 = vmax.f32 %v2915_v24, 0.0  ;;  %v2917_v11 = vadd.f32 %v2916_v19, %v2804_v54  ;;  %4645 = vmatpush1.bf16.msra.mxu0 %v6961_v22  ;;  %v6972_v22 = vld [vmem:[#allocation2 + $0xc] ss:$16 sps:$4 sm:$0xff]   ;;  %v2709_v24 = vadd.f32 %v8678_v49, %v9718_v38 }
 0x1d7   : > { %v2920_v52 = vpop.f32.mrf.mxu0  ;;  %4646 = vmatprep.subr.bf16.mxu0 %v6966_v43 }
 0x1d8   : > { %v3033_v42 = vpop.f32.mrf.mxu1  ;;  %v8835_v60 = vpack.c.bf16 %v3552_v0, %v3548_v8  ;;  %v3553_v62 = vmax.f32 %v2917_v11, 0.0  ;;  %v2921_v58 = vadd.f32 %v2920_v52, %v8656_v39 }
 0x1d9   : > { %v8838_v63 = vadd.f32 %v3033_v42, %v8727_v13  ;;  %v2922_v29 = vpop.f32.mrf.mxu0 }
 0x1da   : > { %v3035_v15 = vpop.f32.mrf.mxu1  ;;  %4647 = vmatpush1.bf16.msra.mxu0 %v6964_v57  ;;  %v8845_v40 = vpack.c.bf16 %v3553_v62, %v3549_v23  ;;  %v2923_v47 = vadd.f32 %v2922_v29, %v8663_v18  ;;  %v3556_v19 = vmax.f32 %v2921_v58, 0.0  ;;  %v9719_v18 = vld [vmem:[#allocation13_spill] sm:$0xff]  ;;  %v9720_v29 = vld [vmem:[#allocation19_spill] sm:$0xff] }
 0x1db   : > { %v8843_v46 = vadd.f32 %v3035_v15, %v8737_v14  ;;  %v2924_v53 = vpop.f32.mrf.mxu0  ;;  %4648 = vmatprep.subr.bf16.mxu0 %v6969_v30  ;;  %v2711_v0 = vadd.f32 %v8684_v21, %v9719_v18  ;;  %v2822_v15 = vadd.f32 %v9720_v29, %v2709_v24 }
 0x1dc   : > { %v3037_v35 = vpop.f32.mrf.mxu1  ;;  %v2925_v43 = vadd.f32 %v2924_v53, %v2812_v59  ;;  %4472 = vmatprep.mubr.bf16.mxu0 %v8845_v40  ;;  %v3557_v52 = vmax.f32 %v2923_v47, 0.0  ;;  %v9721_v59 = vld [vmem:[#allocation18_spill] sm:$0xff]  ;;  %v9722_v47 = vld [vmem:[#allocation21_spill] sm:$0xff] }
 0x1dd   : > { %v8850_v2 = vadd.f32 %v3037_v35, %v8727_v13  ;;  %v2926_v39 = vpop.f32.mrf.mxu0  ;;  %4473 = vmatmul.mubr.bf16.gmra.mxu0 %v8835_v60  ;;  %v6973_v53 = vld [vmem:[#allocation2 + $0x1e8] ss:$16 sps:$4 sm:$0xff]  }
 0x1de   : > { %v8853_v54 = vpop.f32.mrf.mxu1  ;;  %v3560_v16 = vmax.f32 %v2925_v43, 0.0  ;;  %v2927_v8 = vadd.f32 %v2926_v39, %v2814_v12  ;;  %4649 = vmatpush1.bf16.msra.mxu0 %v6967_v51  ;;  %v6978_v12 = vld [vmem:[#allocation2 + $0x1cc] ss:$16 sps:$4 sm:$0xff]   ;;  %v2824_v43 = vadd.f32 %v9722_v47, %v2711_v0  ;;  %v6976_v0 = vld [vmem:[#allocation2 + $0x1c8] ss:$16 sps:$4 sm:$0xff]  }
 0x1df   : > { %v2930_v11 = vpop.f32.mrf.mxu0  ;;  %4650 = vmatprep.subr.bf16.mxu0 %v6972_v22  ;;  %v9723_v39 = vld [vmem:[#allocation20_spill] sm:$0xff] }
 0x1e0   : > { %v3043_v57 = vpop.f32.mrf.mxu1  ;;  %v8860_v42 = vpack.c.bf16 %v3560_v16, %v3556_v19  ;;  %v3561_v30 = vmax.f32 %v2927_v8, 0.0  ;;  %v2931_v58 = vadd.f32 %v2930_v11, %v9721_v59 }
 0x1e1   : > { %v8863_v23 = vadd.f32 %v3043_v57, %v8727_v13  ;;  %v2932_v49 = vpop.f32.mrf.mxu0 }
 0x1e2   : > { %v3045_v62 = vpop.f32.mrf.mxu1  ;;  %4651 = vmatpush1.bf16.msra.mxu0 %v6970_v44  ;;  %v8870_v21 = vpack.c.bf16 %v3561_v30, %v3557_v52  ;;  %v2933_v38 = vadd.f32 %v2932_v49, %v9723_v39  ;;  %v9726_v44 = vld [vmem:[#allocation14_spill] sm:$0xff]  ;;  %v3564_v11 = vmax.f32 %v2931_v58, 0.0  ;;  %v9727_v52 = vld [vmem:[#allocation15_spill] sm:$0xff]  ;;  %v9728_v30 = vld [vmem:[#allocation25_spill] sm:$0xff] }
 0x1e3   : > { %v8868_v51 = vadd.f32 %v3045_v62, %v8737_v14  ;;  %v2934_v35 = vpop.f32.mrf.mxu0  ;;  %4652 = vmatprep.subr.bf16.mxu0 %v6975_v32  ;;  %v2719_v18 = vadd.f32 %v8697_v25, %v9726_v44  ;;  %v2721_v49 = vadd.f32 %v9728_v30, %v9727_v52  ;;  %v9729_v39 = vld [vmem:[#allocation23_spill] sm:$0xff]  ;;  %v9732_v30 = vld [vmem:[#allocation24_spill] sm:$0xff] }
 0x1e4   : > { %v3047_v22 = vpop.f32.mrf.mxu1  ;;  %v2935_v19 = vadd.f32 %v2934_v35, %v2822_v15  ;;  %4482 = vmatprep.mubr.bf16.mxu0 %v8870_v21  ;;  %v6981_v15 = vld [vmem:[#allocation2 + $0x1ac] ss:$16 sps:$4 sm:$0xff]   ;;  %v3565_v59 = vmax.f32 %v2933_v38, 0.0 }
 0x1e5   : > { %v8875_v24 = vadd.f32 %v3047_v22, %v8727_v13  ;;  %v2936_v16 = vpop.f32.mrf.mxu0  ;;  %4483 = vmatmul.mubr.bf16.gmra.mxu0 %v8860_v42 }
 0x1e6   : > { %v8878_v8 = vpop.f32.mrf.mxu1  ;;  %v3568_v57 = vmax.f32 %v2935_v19, 0.0  ;;  %v2937_v32 = vadd.f32 %v2936_v16, %v2824_v43  ;;  %4653 = vmatpush2.bf16.msra.mxu0 %v6973_v53  ;;  %v2832_v43 = vadd.f32 %v9729_v39, %v2719_v18  ;;  %v9730_v53 = vld [vmem:[#allocation22_spill] sm:$0xff] }
 0x1e7   : > { %9724 = vst [vmem:[#allocation12_spill] sm:$0xff] %v8875_v24  ;;  %9725 = vst [vmem:[#allocation13_spill] sm:$0xff] %v8878_v8  ;;  %v2940_v62 = vpop.f32.mrf.mxu0  ;;  %4654 = vmatprep.subr.bf16.mxu0 %v6978_v12  ;;  %v6979_v12 = vld [vmem:[#allocation2 + $0x1a8] ss:$16 sps:$4 sm:$0xff]  }
 0x1e8   : > { %v3053_v29 = vpop.f32.mrf.mxu1  ;;  %v8885_v35 = vpack.c.bf16 %v3568_v57, %v3564_v11  ;;  %v3569_v22 = vmax.f32 %v2937_v32, 0.0  ;;  %v2941_v19 = vadd.f32 %v2940_v62, %v9730_v53  ;;  %v6984_v57 = vld [vmem:[#allocation2 + $0x18c] ss:$16 sps:$4 sm:$0xff]  }
 0x1e9   : > { %v8888_v47 = vadd.f32 %v3053_v29, %v8727_v13  ;;  %v2942_v25 = vpop.f32.mrf.mxu0  ;;  %v9731_v32 = vld [vmem:[#allocation26_spill] sm:$0xff] }
 0x1ea   : > { %v3055_v58 = vpop.f32.mrf.mxu1  ;;  %4655 = vmatpush2.bf16.msra.mxu0 %v6976_v0  ;;  %v8895_v44 = vpack.c.bf16 %v3569_v22, %v3565_v59  ;;  %v2834_v52 = vadd.f32 %v9731_v32, %v2721_v49  ;;  %v2943_v29 = vadd.f32 %v2942_v25, %v9732_v30  ;;  %v9735_v0 = vld [vmem:[#allocation16_spill] sm:$0xff]  ;;  %v9736_v25 = vld [vmem:[#allocation17_spill] sm:$0xff] }
 0x1eb   : > { %v8893_v16 = vadd.f32 %v3055_v58, %v8737_v14  ;;  %v2944_v38 = vpop.f32.mrf.mxu0  ;;  %4656 = vmatprep.subr.bf16.mxu0 %v6981_v15  ;;  %v2729_v59 = vadd.f32 %v8716_v56, %v9735_v0  ;;  %v3572_v15 = vmax.f32 %v2941_v19, 0.0  ;;  %v6982_v49 = vld [vmem:[#allocation2 + $0x188] ss:$16 sps:$4 sm:$0xff]   ;;  %v6990_v0 = vld [vmem:[#allocation2 + $0x14c] ss:$16 sps:$4 sm:$0xff]  }
 0x1ec   : > { %v3057_v11 = vpop.f32.mrf.mxu1  ;;  %v2945_v24 = vadd.f32 %v2944_v38, %v2832_v43  ;;  %4492 = vmatprep.mubr.bf16.mxu0 %v8895_v44  ;;  %v2731_v43 = vadd.f32 %v8729_v1, %v9736_v25  ;;  %v3573_v32 = vmax.f32 %v2943_v29, 0.0 }
 0x1ed   : > { %v8900_v18 = vadd.f32 %v3057_v11, %v8727_v13  ;;  %v2946_v62 = vpop.f32.mrf.mxu0  ;;  %4493 = vmatmul.mubr.bf16.gmra.mxu0 %v8885_v35  ;;  %v6987_v11 = vld [vmem:[#allocation2 + $0x16c] ss:$16 sps:$4 sm:$0xff]  }
 0x1ee   : > { %v8903_v58 = vpop.f32.mrf.mxu1  ;;  %v3576_v22 = vmax.f32 %v2945_v24, 0.0  ;;  %v2947_v39 = vadd.f32 %v2946_v62, %v2834_v52  ;;  %4657 = vmatpush2.bf16.msra.mxu0 %v6979_v12  ;;  %v2842_v24 = vadd.f32 %v8718_v5, %v2729_v59 }
 0x1ef   : > { %9733 = vst [vmem:[#allocation19_spill] sm:$0xff] %v8900_v18  ;;  %9734 = vst [vmem:[#allocation18_spill] sm:$0xff] %v8903_v58  ;;  %v2950_v53 = vpop.f32.mrf.mxu0  ;;  %4658 = vmatprep.subr.bf16.mxu0 %v6984_v57  ;;  %v6985_v57 = vld [vmem:[#allocation2 + $0x168] ss:$16 sps:$4 sm:$0xff]  }
 0x1f0   : > { %v3063_v38 = vpop.f32.mrf.mxu1  ;;  %v8910_v30 = vpack.c.bf16 %v3576_v22, %v3572_v15  ;;  %v3577_v18 = vmax.f32 %v2947_v39, 0.0  ;;  %v2951_v12 = vadd.f32 %v2950_v53, %v8712_v50  ;;  %v9737_v15 = vld [vmem:[#allocation28_spill] sm:$0xff]  ;;  %v9738_v39 = vld [vmem:[#allocation27_spill] sm:$0xff] }
 0x1f1   : > { %v8913_v58 = vadd.f32 %v3063_v38, %v8727_v13  ;;  %v2952_v56 = vpop.f32.mrf.mxu0  ;;  %v2844_v22 = vadd.f32 %v9737_v15, %v2731_v43 }
 0x1f2   : > { %v3065_v19 = vpop.f32.mrf.mxu1  ;;  %4659 = vmatpush2.bf16.msra.mxu0 %v6982_v49  ;;  %v8920_v1 = vpack.c.bf16 %v3577_v18, %v3573_v32  ;;  %v2953_v25 = vadd.f32 %v2952_v56, %v9738_v39  ;;  %v3580_v18 = vmax.f32 %v2951_v12, 0.0  ;;  %v6993_v56 = vld [vmem:[#allocation2 + $0x12c] ss:$16 sps:$4 sm:$0xff]  }
 0x1f3   : > { %v8918_v52 = vadd.f32 %v3065_v19, %v8737_v14  ;;  %v2954_v29 = vpop.f32.mrf.mxu0  ;;  %4660 = vmatprep.subr.bf16.mxu0 %v6987_v11  ;;  %v6988_v11 = vld [vmem:[#allocation2 + $0x148] ss:$16 sps:$4 sm:$0xff]  }
 0x1f4   : > { %v3067_v62 = vpop.f32.mrf.mxu1  ;;  %v2955_v38 = vadd.f32 %v2954_v29, %v2842_v24  ;;  %4502 = vmatprep.mubr.bf16.mxu0 %v8920_v1  ;;  %v3581_v19 = vmax.f32 %v2953_v25, 0.0  ;;  %v6996_v25 = vld [vmem:[#allocation2 + $0x10c] ss:$16 sps:$4 sm:$0xff]  }
 0x1f5   : > { %v8925_v5 = vadd.f32 %v3067_v62, %v8727_v13  ;;  %v2956_v50 = vpop.f32.mrf.mxu0  ;;  %4503 = vmatmul.mubr.bf16.gmra.mxu0 %v8910_v30 }
 0x1f6   : > { %v8928_v59 = vpop.f32.mrf.mxu1  ;;  %v3584_v49 = vmax.f32 %v2955_v38, 0.0  ;;  %v2957_v53 = vadd.f32 %v2956_v50, %v2844_v22  ;;  %4661 = vmatpush2.bf16.msra.mxu0 %v6985_v57  ;;  %v6991_v57 = vld [vmem:[#allocation2 + $0x128] ss:$16 sps:$4 sm:$0xff]  }
 0x1f7   : > { %9739 = vst [vmem:[#allocation21_spill] sm:$0xff] %v8925_v5  ;;  %9740 = vst [vmem:[#allocation20_spill] sm:$0xff] %v8928_v59  ;;  %v3106_v32 = vpop.f32.mrf.mxu0  ;;  %4662 = vmatprep.subr.bf16.mxu0 %v6990_v0 }
 0x1f8   : > { %v3219_v43 = vpop.f32.mrf.mxu1  ;;  %v8931_v24 = vpack.c.bf16 %v3584_v49, %v3580_v18  ;;  %v3585_v13 = vmax.f32 %v2957_v53, 0.0  ;;  %v3107_v29 = vadd.f32 %v3106_v32, %v8742_v9 }
 0x1f9   : > { %v3108_v62 = vpop.f32.mrf.mxu0 }
 0x1fa   : > { %v3221_v15 = vpop.f32.mrf.mxu1  ;;  %v8934_v39 = vadd.f32 %v3219_v43, %v3107_v29  ;;  %v3109_v12 = vadd.f32 %v3108_v62, %v8747_v4  ;;  %4663 = vmatpush2.bf16.msra.mxu0 %v6988_v11  ;;  %v8937_v22 = vpack.c.bf16 %v3585_v13, %v3581_v19  ;;  %v6994_v4 = vld [vmem:[#allocation2 + $0x108] ss:$16 sps:$4 sm:$0xff]  }
 0x1fb   : > { %v8939_v38 = vpop.f32.mrf.mxu0  ;;  %4664 = vmatprep.subr.bf16.mxu0 %v6993_v56 }
 0x1fc   : > { %v8941_v0 = vpop.f32.mrf.mxu1  ;;  %v8943_v50 = vadd.f32 %v3221_v15, %v3109_v12  ;;  %4512 = vmatprep.mubr.bf16.mxu0 %v8937_v22 }
 0x1fd   : > { %v8946_v9 = vpop.f32.mrf.mxu0  ;;  %4513 = vmatmul.mubr.bf16.gmra.mxu0 %v8931_v24 }
 0x1fe   : > { %v8948_v18 = vpop.f32.mrf.mxu1  ;;  %4665 = vmatpush2.bf16.msra.mxu0 %v6991_v57  ;;  %4668 = vmatprep.mubr.bf16.mxu0 %v8770_v7 }
 0x1ff   : > { %v3116_v49 = vpop.f32.mrf.mxu0  ;;  %4666 = vmatprep.subr.bf16.mxu0 %v6996_v25 }
 0x200   : > { %v3229_v53 = vpop.f32.mrf.mxu1  ;;  %v3117_v11 = vadd.f32 %v3116_v49, %v8763_v10 }
 0x201   : > { %v3118_v32 = vpop.f32.mrf.mxu0 }
 0x202   : > { %v3231_v43 = vpop.f32.mrf.mxu1  ;;  %v8953_v56 = vadd.f32 %v3229_v53, %v3117_v11  ;;  %v3119_v19 = vadd.f32 %v3118_v32, %v8768_v20  ;;  %4667 = vmatpush2.bf16.msra.mxu0 %v6994_v4 }
 0x203   : > { %v8956_v13 = vpop.f32.mrf.mxu0 }
 0x204   : > { %v8958_v29 = vpop.f32.mrf.mxu1  ;;  %v8960_v62 = vadd.f32 %v3231_v43, %v3119_v19 }
 0x205   : > { %v8962_v7 = vpop.f32.mrf.mxu0  ;;  %4669 = vmatmul.mubr.bf16.vlgmr.msra.gmra.mxu0 %v8760_v37 }
 0x206   : > { %v8964_v15 = vpop.f32.mrf.mxu1  ;;  %4678 = vmatprep.mubr.bf16.mxu0 %v8795_v41 }
 0x207   : > { %v3126_v10 = vpop.f32.mrf.mxu0 }
 0x208   : > { %v3239_v12 = vpop.f32.mrf.mxu1  ;;  %v3127_v57 = vadd.f32 %v3126_v10, %v8788_v28 }
 0x209   : > { %v3128_v20 = vpop.f32.mrf.mxu0 }
 0x20a   : > { %v3241_v25 = vpop.f32.mrf.mxu1  ;;  %v8969_v4 = vadd.f32 %v3239_v12, %v3127_v57  ;;  %v3129_v49 = vadd.f32 %v3128_v20, %v8793_v36 }
 0x20b   : > { %v8972_v53 = vpop.f32.mrf.mxu0 }
 0x20c   : > { %v8974_v11 = vpop.f32.mrf.mxu1  ;;  %v8976_v32 = vadd.f32 %v3241_v25, %v3129_v49 }
 0x20d   : > { %v8978_v43 = vpop.f32.mrf.mxu0  ;;  %4679 = vmatmul.mubr.bf16.gmra.mxu0 %v8785_v61 }
 0x20e   : > { %v8980_v37 = vpop.f32.mrf.mxu1  ;;  %4688 = vmatprep.mubr.bf16.mxu0 %v8820_v3 }
 0x20f   : > { %v3136_v28 = vpop.f32.mrf.mxu0 }
 0x210   : > { %v3249_v41 = vpop.f32.mrf.mxu1  ;;  %v3137_v19 = vadd.f32 %v3136_v28, %v8813_v17 }
 0x211   : > { %v3138_v10 = vpop.f32.mrf.mxu0 }
 0x212   : > { %v3251_v36 = vpop.f32.mrf.mxu1  ;;  %v8985_v12 = vadd.f32 %v3249_v41, %v3137_v19  ;;  %v3139_v57 = vadd.f32 %v3138_v10, %v8818_v45 }
 0x213   : > { %v8988_v20 = vpop.f32.mrf.mxu0 }
 0x214   : > { %v8990_v25 = vpop.f32.mrf.mxu1  ;;  %v8992_v49 = vadd.f32 %v3251_v36, %v3139_v57 }
 0x215   : > { %v8994_v5 = vpop.f32.mrf.mxu0  ;;  %4689 = vmatmul.mubr.bf16.gmra.mxu0 %v8810_v31 }
 0x216   : > { %v8996_v61 = vpop.f32.mrf.mxu1  ;;  %4698 = vmatprep.mubr.bf16.mxu0 %v8845_v40 }
 0x217   : > { %v3146_v17 = vpop.f32.mrf.mxu0 }
 0x218   : > { %v3259_v3 = vpop.f32.mrf.mxu1  ;;  %v3147_v28 = vadd.f32 %v3146_v17, %v8838_v63 }
 0x219   : > { %v3148_v41 = vpop.f32.mrf.mxu0 }
 0x21a   : > { %v3261_v45 = vpop.f32.mrf.mxu1  ;;  %v9001_v19 = vadd.f32 %v3259_v3, %v3147_v28  ;;  %v3149_v10 = vadd.f32 %v3148_v41, %v8843_v46 }
 0x21b   : > { %v9004_v36 = vpop.f32.mrf.mxu0 }
 0x21c   : > { %v9006_v57 = vpop.f32.mrf.mxu1  ;;  %v9008_v59 = vadd.f32 %v3261_v45, %v3149_v10 }
 0x21d   : > { %v9010_v8 = vpop.f32.mrf.mxu0  ;;  %4699 = vmatmul.mubr.bf16.gmra.mxu0 %v8835_v60 }
 0x21e   : > { %9741 = vst [vmem:[#allocation14_spill] sm:$0xff] %v9008_v59  ;;  %v9012_v31 = vpop.f32.mrf.mxu1  ;;  %4708 = vmatprep.mubr.bf16.mxu0 %v8870_v21 }
 0x21f   : > { %9742 = vst [vmem:[#allocation15_spill] sm:$0xff] %v9012_v31  ;;  %v3156_v63 = vpop.f32.mrf.mxu0 }
 0x220   : > { %v3269_v40 = vpop.f32.mrf.mxu1  ;;  %v3157_v17 = vadd.f32 %v3156_v63, %v8863_v23 }
 0x221   : > { %v3158_v3 = vpop.f32.mrf.mxu0 }
 0x222   : > { %v3271_v46 = vpop.f32.mrf.mxu1  ;;  %v9017_v28 = vadd.f32 %v3269_v40, %v3157_v17  ;;  %v3159_v41 = vadd.f32 %v3158_v3, %v8868_v51 }
 0x223   : > { %v9020_v45 = vpop.f32.mrf.mxu0 }
 0x224   : > { %v9022_v10 = vpop.f32.mrf.mxu1  ;;  %v9024_v59 = vadd.f32 %v3271_v46, %v3159_v41 }
 0x225   : > { %v9026_v31 = vpop.f32.mrf.mxu0  ;;  %4709 = vmatmul.mubr.bf16.gmra.mxu0 %v8860_v42 }
 0x226   : > { %9743 = vst [vmem:[#allocation25_spill] sm:$0xff] %v9024_v59  ;;  %v9028_v60 = vpop.f32.mrf.mxu1  ;;  %4718 = vmatprep.mubr.bf16.mxu0 %v8895_v44 }
 0x227   : > { %9744 = vst [vmem:[#allocation23_spill] sm:$0xff] %v9028_v60  ;;  %v3166_v23 = vpop.f32.mrf.mxu0 }
 0x228   : > { %v3279_v21 = vpop.f32.mrf.mxu1  ;;  %v3167_v63 = vadd.f32 %v3166_v23, %v8888_v47 }
 0x229   : > { %v3168_v40 = vpop.f32.mrf.mxu0 }
 0x22a   : > { %v3281_v51 = vpop.f32.mrf.mxu1  ;;  %v9033_v17 = vadd.f32 %v3279_v21, %v3167_v63  ;;  %v3169_v3 = vadd.f32 %v3168_v40, %v8893_v16 }
 0x22b   : > { %v9036_v46 = vpop.f32.mrf.mxu0 }
 0x22c   : > { %v9038_v41 = vpop.f32.mrf.mxu1  ;;  %v9040_v59 = vadd.f32 %v3281_v51, %v3169_v3 }
 0x22d   : > { %v9042_v60 = vpop.f32.mrf.mxu0  ;;  %4719 = vmatmul.mubr.bf16.gmra.mxu0 %v8885_v35 }
 0x22e   : > { %9745 = vst [vmem:[#allocation22_spill] sm:$0xff] %v9040_v59  ;;  %v9044_v42 = vpop.f32.mrf.mxu1  ;;  %4728 = vmatprep.mubr.bf16.mxu0 %v8920_v1  ;;  %v9751_v1 = vld [vmem:[#allocation29_spill] sm:$0xff] }
 0x22f   : > { %9746 = vst [vmem:[#allocation26_spill] sm:$0xff] %v9044_v42  ;;  %v3176_v47 = vpop.f32.mrf.mxu0 }
 0x230   : > { %v3289_v44 = vpop.f32.mrf.mxu1  ;;  %v3177_v23 = vadd.f32 %v3176_v47, %v8913_v58  ;;  %v3000_v58 = vadd.f32 %v8754_v26, %v8737_v14  ;;  %v3111_v47 = vadd.f32 %v8939_v38, %v9751_v1 }
 0x231   : > { %v3178_v21 = vpop.f32.mrf.mxu0 }
 0x232   : > { %v3291_v16 = vpop.f32.mrf.mxu1  ;;  %v9049_v63 = vadd.f32 %v3289_v44, %v3177_v23  ;;  %v3179_v40 = vadd.f32 %v3178_v21, %v8918_v52  ;;  %v3113_v23 = vadd.f32 %v8946_v9, %v3000_v58  ;;  %v3121_v9 = vadd.f32 %v8956_v13, %v8775_v34 }
 0x233   : > { %v9052_v51 = vpop.f32.mrf.mxu0 }
 0x234   : > { %9747 = vst [vmem:[#allocation24_spill] sm:$0xff] %v9049_v63  ;;  %v9054_v3 = vpop.f32.mrf.mxu1  ;;  %v9056_v59 = vadd.f32 %v3291_v16, %v3179_v40  ;;  %v3226_v26 = vadd.f32 %v8948_v18, %v3113_v23 }
 0x235   : > { %9748 = vst [vmem:[#allocation16_spill] sm:$0xff] %v9054_v3  ;;  %v9058_v42 = vpop.f32.mrf.mxu0  ;;  %4729 = vmatmul.mubr.bf16.gmra.mxu0 %v8910_v30 }
 0x236   : > { %9749 = vst [vmem:[#allocation17_spill] sm:$0xff] %v9056_v59  ;;  %v9060_v35 = vpop.f32.mrf.mxu1  ;;  %4738 = vmatprep.mubr.bf16.mxu0 %v8937_v22  ;;  %v3010_v22 = vadd.f32 %v8778_v33, %v8737_v14  ;;  %v3234_v33 = vadd.f32 %v8958_v29, %v3121_v9  ;;  %v3131_v29 = vadd.f32 %v8972_v53, %v8800_v27  ;;  %v7048_v27 = vld [vmem:[#allocation2 + $0x2c8] ss:$16 sps:$4 sm:$0xff]  }
 0x237   : > { %9750 = vst [vmem:[#allocation28_spill] sm:$0xff] %v9060_v35  ;;  %v3332_v52 = vpop.f32.mrf.mxu0  ;;  %v3224_v35 = vadd.f32 %v8941_v0, %v3111_v47 }
 0x238   : > { %v3445_v44 = vpop.f32.mrf.mxu1  ;;  %v3333_v21 = vadd.f32 %v3332_v52, %v8934_v39  ;;  %v3244_v53 = vadd.f32 %v8974_v11, %v3131_v29  ;;  %v7051_v11 = vld [vmem:[#allocation2 + $0x2a8] ss:$16 sps:$4 sm:$0xff]  }
 0x239   : > { %v3334_v16 = vpop.f32.mrf.mxu0 }
 0x23a   : > { %v3447_v40 = vpop.f32.mrf.mxu1  ;;  %v3335_v30 = vadd.f32 %v3334_v16, %v8943_v50  ;;  %v3446_v63 = vadd.f32 %v3445_v44, %v3333_v21  ;;  %v3123_v50 = vadd.f32 %v8962_v7, %v3010_v22  ;;  %v7045_v22 = vld [vmem:[#allocation2 + $0x2e8] ss:$16 sps:$4 sm:$0xff]  }
 0x23b   : > { %v3336_v59 = vpop.f32.mrf.mxu0 }
 0x23c   : > { %v3449_v3 = vpop.f32.mrf.mxu1  ;;  %v3337_v38 = vadd.f32 %v3336_v59, %v3224_v35  ;;  %v3448_v1 = vadd.f32 %v3447_v40, %v3335_v30  ;;  %v3526_v18 = vmax.f32 %v3446_v63, 0.0  ;;  %v3236_v7 = vadd.f32 %v8964_v15, %v3123_v50 }
 0x23d   : > { %v3338_v58 = vpop.f32.mrf.mxu0  ;;  %4739 = vmatmul.mubr.bf16.gmra.mxu0 %v8931_v24 }
 0x23e   : > { %v3451_v39 = vpop.f32.mrf.mxu1  ;;  %v3450_v0 = vadd.f32 %v3449_v3, %v3337_v38  ;;  %v3339_v47 = vadd.f32 %v3338_v58, %v3226_v26  ;;  %v3527_v13 = vmax.f32 %v3448_v1, 0.0 }
 0x23f   : > { %v3342_v52 = vpop.f32.mrf.mxu0 }
 0x240   : > { %v3455_v16 = vpop.f32.mrf.mxu1  ;;  %v3530_v44 = vmax.f32 %v3450_v0, 0.0  ;;  %v3452_v59 = vadd.f32 %v3451_v39, %v3339_v47  ;;  %v3343_v35 = vadd.f32 %v3342_v52, %v8953_v56  ;;  %v3020_v56 = vadd.f32 %v8803_v55, %v8737_v14  ;;  %v7050_v39 = vld [vmem:[#allocation2 + $0x2cc] ss:$16 sps:$4 sm:$0xff]  }
 0x241   : > { %v3344_v23 = vpop.f32.mrf.mxu0 }
 0x242   : > { %v3457_v34 = vpop.f32.mrf.mxu1  ;;  %v9081_v21 = vpack.c.bf16 %v3530_v44, %v3526_v18  ;;  %v3531_v24 = vmax.f32 %v3452_v59, 0.0  ;;  %v3345_v3 = vadd.f32 %v3344_v23, %v8960_v62  ;;  %v3456_v26 = vadd.f32 %v3455_v16, %v3343_v35  ;;  %v7053_v35 = vld [vmem:[#allocation2 + $0x2ac] ss:$16 sps:$4 sm:$0xff]  }
 0x243   : > { %v3346_v40 = vpop.f32.mrf.mxu0  ;;  %v3133_v15 = vadd.f32 %v8978_v43, %v3020_v56 }
 0x244   : > { %v3459_v30 = vpop.f32.mrf.mxu1  ;;  %v3347_v63 = vadd.f32 %v3346_v40, %v3234_v33  ;;  %v9085_v38 = vpack.c.bf16 %v3531_v24, %v3527_v13  ;;  %v3458_v1 = vadd.f32 %v3457_v34, %v3345_v3  ;;  %v3534_v52 = vmax.f32 %v3456_v26, 0.0 }
 0x245   : > { %v3348_v9 = vpop.f32.mrf.mxu0  ;;  %v3246_v3 = vadd.f32 %v8980_v37, %v3133_v15  ;;  %v3141_v26 = vadd.f32 %v8988_v20, %v8825_v48  ;;  %v7054_v20 = vld [vmem:[#allocation2 + $0x288] ss:$16 sps:$4 sm:$0xff]  }
 0x246   : > { %v3461_v58 = vpop.f32.mrf.mxu1  ;;  %v3460_v62 = vadd.f32 %v3459_v30, %v3347_v63  ;;  %v3349_v0 = vadd.f32 %v3348_v9, %v3236_v7  ;;  %4555 = vmatprep.mubr.bf16.mxu1 %v9085_v38  ;;  %v3535_v33 = vmax.f32 %v3458_v1, 0.0  ;;  %v3030_v7 = vadd.f32 %v8828_v6, %v8737_v14 }
 0x247   : > { %v3352_v47 = vpop.f32.mrf.mxu0  ;;  %4556 = vmatmul.mubr.bf16.vlgmr.msra.gmra.mxu1 %v9081_v21 }
 0x248   : > { %v3465_v50 = vpop.f32.mrf.mxu1  ;;  %v3538_v16 = vmax.f32 %v3460_v62, 0.0  ;;  %v3462_v55 = vadd.f32 %v3461_v58, %v3349_v0  ;;  %v3353_v18 = vadd.f32 %v3352_v47, %v8969_v4  ;;  %4750 = vmatpush1.bf16.msra.mxu1 %v7045_v22  ;;  %v3143_v37 = vadd.f32 %v8994_v5, %v3030_v7 }
 0x249   : > { %v3354_v44 = vpop.f32.mrf.mxu0  ;;  %4751 = vmatprep.subr.bf16.mxu1 %v7050_v39  ;;  %v3254_v0 = vadd.f32 %v8990_v25, %v3141_v26  ;;  %v7057_v25 = vld [vmem:[#allocation2 + $0x268] ss:$16 sps:$4 sm:$0xff]  }
 0x24a   : > { %v3467_v59 = vpop.f32.mrf.mxu1  ;;  %v9096_v23 = vpack.c.bf16 %v3538_v16, %v3534_v52  ;;  %v3539_v43 = vmax.f32 %v3462_v55, 0.0  ;;  %v3355_v34 = vadd.f32 %v3354_v44, %v8976_v32  ;;  %v3466_v40 = vadd.f32 %v3465_v50, %v3353_v18  ;;  %v7056_v32 = vld [vmem:[#allocation2 + $0x28c] ss:$16 sps:$4 sm:$0xff]  }
 0x24b   : > { %v3356_v13 = vpop.f32.mrf.mxu0  ;;  %v7059_v50 = vld [vmem:[#allocation2 + $0x26c] ss:$16 sps:$4 sm:$0xff]  }
 0x24c   : > { %v3469_v24 = vpop.f32.mrf.mxu1  ;;  %v3357_v4 = vadd.f32 %v3356_v13, %v3244_v53  ;;  %4752 = vmatpush1.bf16.msra.mxu1 %v7048_v27  ;;  %v9100_v30 = vpack.c.bf16 %v3539_v43, %v3535_v33  ;;  %v3468_v56 = vadd.f32 %v3467_v59, %v3355_v34  ;;  %v3542_v1 = vmax.f32 %v3466_v40, 0.0 }
 0x24d   : > { %v3358_v63 = vpop.f32.mrf.mxu0  ;;  %4753 = vmatprep.subr.bf16.mxu1 %v7053_v35  ;;  %v3256_v53 = vadd.f32 %v8996_v61, %v3143_v37  ;;  %v3040_v35 = vadd.f32 %v8853_v54, %v8737_v14  ;;  %v3151_v33 = vadd.f32 %v9004_v36, %v8850_v2  ;;  %v7060_v36 = vld [vmem:[#allocation2 + $0x248] ss:$16 sps:$4 sm:$0xff]  }
 0x24e   : > { %v3471_v22 = vpop.f32.mrf.mxu1  ;;  %v3470_v29 = vadd.f32 %v3469_v24, %v3357_v4  ;;  %v3359_v9 = vadd.f32 %v3358_v63, %v3246_v3  ;;  %4565 = vmatprep.mubr.bf16.mxu1 %v9100_v30  ;;  %v3543_v52 = vmax.f32 %v3468_v56, 0.0 }
 0x24f   : > { %v3362_v58 = vpop.f32.mrf.mxu0  ;;  %4566 = vmatmul.mubr.bf16.gmra.mxu1 %v9096_v23  ;;  %v3153_v61 = vadd.f32 %v9010_v8, %v3040_v35  ;;  %v3264_v26 = vadd.f32 %v9006_v57, %v3151_v33  ;;  %v7063_v57 = vld [vmem:[#allocation2 + $0x228] ss:$16 sps:$4 sm:$0xff]  }
 0x250   : > { %v3475_v39 = vpop.f32.mrf.mxu1  ;;  %v3546_v6 = vmax.f32 %v3470_v29, 0.0  ;;  %v3472_v62 = vadd.f32 %v3471_v22, %v3359_v9  ;;  %v3363_v48 = vadd.f32 %v3362_v58, %v8985_v12  ;;  %4754 = vmatpush1.bf16.msra.mxu1 %v7051_v11  ;;  %v9752_v9 = vld [vmem:[#allocation14_spill] sm:$0xff] }
 0x251   : > { %v3364_v15 = vpop.f32.mrf.mxu0  ;;  %4755 = vmatprep.subr.bf16.mxu1 %v7056_v32  ;;  %v7065_v32 = vld [vmem:[#allocation2 + $0x22c] ss:$16 sps:$4 sm:$0xff]  }
 0x252   : > { %v3477_v47 = vpop.f32.mrf.mxu1  ;;  %v9111_v16 = vpack.c.bf16 %v3546_v6, %v3542_v1  ;;  %v3547_v5 = vmax.f32 %v3472_v62, 0.0  ;;  %v3365_v55 = vadd.f32 %v3364_v15, %v8992_v49  ;;  %v3476_v44 = vadd.f32 %v3475_v39, %v3363_v48  ;;  %v7062_v49 = vld [vmem:[#allocation2 + $0x24c] ss:$16 sps:$4 sm:$0xff]   ;;  %v9753_v1 = vld [vmem:[#allocation15_spill] sm:$0xff] }
 0x253   : > { %v3366_v18 = vpop.f32.mrf.mxu0  ;;  %v3266_v6 = vadd.f32 %v9753_v1, %v3153_v61  ;;  %v9755_v15 = vld [vmem:[#allocation12_spill] sm:$0xff] }
 0x254   : > { %v3479_v27 = vpop.f32.mrf.mxu1  ;;  %v3367_v12 = vadd.f32 %v3366_v18, %v3254_v0  ;;  %4756 = vmatpush1.bf16.msra.mxu1 %v7054_v20  ;;  %v9115_v59 = vpack.c.bf16 %v3547_v5, %v3543_v52  ;;  %v3478_v13 = vadd.f32 %v3477_v47, %v3365_v55  ;;  %v3550_v11 = vmax.f32 %v3476_v44, 0.0  ;;  %v9754_v20 = vld [vmem:[#allocation13_spill] sm:$0xff]  ;;  %v7068_v5 = vld [vmem:[#allocation2 + $0x20c] ss:$16 sps:$4 sm:$0xff]  }
 0x255   : > { %v3368_v43 = vpop.f32.mrf.mxu0  ;;  %4757 = vmatprep.subr.bf16.mxu1 %v7059_v50  ;;  %v3050_v0 = vadd.f32 %v9754_v20, %v8737_v14  ;;  %v3161_v47 = vadd.f32 %v9020_v45, %v9755_v15  ;;  %v7072_v15 = vld [vmem:[#allocation2 + $0x3c8] ss:$16 sps:$4 sm:$0xff]  }
 0x256   : > { %v3481_v34 = vpop.f32.mrf.mxu1  ;;  %v3480_v24 = vadd.f32 %v3479_v27, %v3367_v12  ;;  %v3369_v3 = vadd.f32 %v3368_v43, %v3256_v53  ;;  %4575 = vmatprep.mubr.bf16.mxu1 %v9115_v59  ;;  %v3551_v56 = vmax.f32 %v3478_v13, 0.0  ;;  %v7066_v43 = vld [vmem:[#allocation2 + $0x208] ss:$16 sps:$4 sm:$0xff]  }
 0x257   : > { %v3372_v40 = vpop.f32.mrf.mxu0  ;;  %4576 = vmatmul.mubr.bf16.gmra.mxu1 %v9111_v16  ;;  %v3163_v53 = vadd.f32 %v9026_v31, %v3050_v0 }
 0x258   : > { %v3485_v4 = vpop.f32.mrf.mxu1  ;;  %v3554_v54 = vmax.f32 %v3480_v24, 0.0  ;;  %v3482_v7 = vadd.f32 %v3481_v34, %v3369_v3  ;;  %v3373_v2 = vadd.f32 %v3372_v40, %v9001_v19  ;;  %4758 = vmatpush1.bf16.msra.mxu1 %v7057_v25  ;;  %v3274_v34 = vadd.f32 %v9022_v10, %v3161_v47  ;;  %v7071_v24 = vld [vmem:[#allocation2 + $0x3ec] ss:$16 sps:$4 sm:$0xff]   ;;  %v9756_v40 = vld [vmem:[#allocation25_spill] sm:$0xff]  ;;  %v7069_v10 = vld [vmem:[#allocation2 + $0x3e8] ss:$16 sps:$4 sm:$0xff]  }
 0x259   : > { %v3374_v63 = vpop.f32.mrf.mxu0  ;;  %4759 = vmatprep.subr.bf16.mxu1 %v7062_v49 }
 0x25a   : > { %v3487_v22 = vpop.f32.mrf.mxu1  ;;  %v9126_v29 = vpack.c.bf16 %v3554_v54, %v3550_v11  ;;  %v3555_v8 = vmax.f32 %v3482_v7, 0.0  ;;  %v3375_v37 = vadd.f32 %v3374_v63, %v9752_v9  ;;  %v3486_v62 = vadd.f32 %v3485_v4, %v3373_v2  ;;  %v9757_v7 = vld [vmem:[#allocation23_spill] sm:$0xff]  ;;  %v9758_v63 = vld [vmem:[#allocation18_spill] sm:$0xff] }
 0x25b   : > { %v3376_v58 = vpop.f32.mrf.mxu0  ;;  %v3276_v2 = vadd.f32 %v9757_v7, %v3163_v53 }
 0x25c   : > { %v3489_v39 = vpop.f32.mrf.mxu1  ;;  %v3377_v19 = vadd.f32 %v3376_v58, %v3264_v26  ;;  %4760 = vmatpush1.bf16.msra.mxu1 %v7060_v36  ;;  %v9130_v48 = vpack.c.bf16 %v3555_v8, %v3551_v56  ;;  %v3488_v55 = vadd.f32 %v3487_v22, %v3375_v37  ;;  %v3558_v25 = vmax.f32 %v3486_v62, 0.0  ;;  %v7074_v37 = vld [vmem:[#allocation2 + $0x3cc] ss:$16 sps:$4 sm:$0xff]  }
 0x25d   : > { %v3378_v50 = vpop.f32.mrf.mxu0  ;;  %4761 = vmatprep.subr.bf16.mxu1 %v7065_v32  ;;  %v3060_v22 = vadd.f32 %v9758_v63, %v8737_v14  ;;  %v9759_v32 = vld [vmem:[#allocation19_spill] sm:$0xff]  ;;  %v7078_v63 = vld [vmem:[#allocation2 + $0x388] ss:$16 sps:$4 sm:$0xff]  }
 0x25e   : > { %v3491_v52 = vpop.f32.mrf.mxu1  ;;  %v3490_v18 = vadd.f32 %v3489_v39, %v3377_v19  ;;  %v3379_v27 = vadd.f32 %v3378_v50, %v3266_v6  ;;  %4585 = vmatprep.mubr.bf16.mxu1 %v9130_v48  ;;  %v3559_v3 = vmax.f32 %v3488_v55, 0.0  ;;  %v3171_v56 = vadd.f32 %v9036_v46, %v9759_v32 }
 0x25f   : > { %v3382_v44 = vpop.f32.mrf.mxu0  ;;  %4586 = vmatmul.mubr.bf16.gmra.mxu1 %v9126_v29  ;;  %v3173_v6 = vadd.f32 %v9042_v60, %v3060_v22  ;;  %v9765_v22 = vld [vmem:[#allocation16_spill] sm:$0xff] }
 0x260   : > { %v3495_v12 = vpop.f32.mrf.mxu1  ;;  %v3562_v35 = vmax.f32 %v3490_v18, 0.0  ;;  %v3492_v33 = vadd.f32 %v3491_v52, %v3379_v27  ;;  %v3383_v45 = vadd.f32 %v3382_v44, %v9017_v28  ;;  %4762 = vmatpush1.bf16.msra.mxu1 %v7063_v57  ;;  %v3284_v47 = vadd.f32 %v9038_v41, %v3171_v56  ;;  %v9760_v27 = vld [vmem:[#allocation22_spill] sm:$0xff] }
 0x261   : > { %v3384_v49 = vpop.f32.mrf.mxu0  ;;  %4763 = vmatprep.subr.bf16.mxu1 %v7068_v5  ;;  %v7077_v5 = vld [vmem:[#allocation2 + $0x3ac] ss:$16 sps:$4 sm:$0xff]   ;;  %v7075_v41 = vld [vmem:[#allocation2 + $0x3a8] ss:$16 sps:$4 sm:$0xff]  }
 0x262   : > { %v3497_v13 = vpop.f32.mrf.mxu1  ;;  %v9141_v61 = vpack.c.bf16 %v3562_v35, %v3558_v25  ;;  %v3563_v31 = vmax.f32 %v3492_v33, 0.0  ;;  %v3385_v4 = vadd.f32 %v3384_v49, %v9756_v40  ;;  %v3496_v28 = vadd.f32 %v3495_v12, %v3383_v45  ;;  %v9761_v25 = vld [vmem:[#allocation26_spill] sm:$0xff]  ;;  %v9763_v49 = vld [vmem:[#allocation21_spill] sm:$0xff] }
 0x263   : > { %v3386_v11 = vpop.f32.mrf.mxu0  ;;  %v3286_v35 = vadd.f32 %v9761_v25, %v3173_v6 }
 0x264   : > { %v3499_v54 = vpop.f32.mrf.mxu1  ;;  %v9145_v36 = vpack.c.bf16 %v3563_v31, %v3559_v3  ;;  %v3387_v26 = vadd.f32 %v3386_v11, %v3274_v34  ;;  %4764 = vmatpush1.bf16.msra.mxu1 %v7066_v43  ;;  %v3498_v58 = vadd.f32 %v3497_v13, %v3385_v4  ;;  %v3566_v57 = vmax.f32 %v3496_v28, 0.0  ;;  %v9762_v43 = vld [vmem:[#allocation20_spill] sm:$0xff] }
 0x265   : > { %v3388_v8 = vpop.f32.mrf.mxu0  ;;  %4765 = vmatprep.subr.bf16.mxu1 %v7071_v24  ;;  %v3070_v34 = vadd.f32 %v9762_v43, %v8737_v14  ;;  %v3181_v13 = vadd.f32 %v9052_v51, %v9763_v49  ;;  %v7080_v31 = vld [vmem:[#allocation2 + $0x38c] ss:$16 sps:$4 sm:$0xff]  }
 0x266   : > { %v3501_v9 = vpop.f32.mrf.mxu1  ;;  %v3500_v39 = vadd.f32 %v3499_v54, %v3387_v26  ;;  %v3389_v1 = vadd.f32 %v3388_v8, %v3276_v2  ;;  %4595 = vmatprep.mubr.bf16.mxu1 %v9145_v36  ;;  %v3567_v55 = vmax.f32 %v3498_v58, 0.0 }
 0x267   : > { %v3392_v62 = vpop.f32.mrf.mxu0  ;;  %4596 = vmatmul.mubr.bf16.gmra.mxu1 %v9141_v61  ;;  %v3183_v54 = vadd.f32 %v9058_v42, %v3070_v34  ;;  %v3294_v32 = vadd.f32 %v9765_v22, %v3181_v13  ;;  %v7097_v13 = vld [vmem:[#allocation5 + $0x68] sm:$0xff]   ;;  %v7107_v22 = vld [vmem:[#allocation5 + $0x40] sm:$0xff]  }
 0x268   : > { %v3505_v19 = vpop.f32.mrf.mxu1  ;;  %v3570_v20 = vmax.f32 %v3500_v39, 0.0  ;;  %v3502_v0 = vadd.f32 %v3501_v9, %v3389_v1  ;;  %v3393_v46 = vadd.f32 %v3392_v62, %v9033_v17  ;;  %4766 = vmatpush2.bf16.msra.mxu1 %v7069_v10  ;;  %v9764_v10 = vld [vmem:[#allocation24_spill] sm:$0xff]  ;;  %v9766_v39 = vld [vmem:[#allocation17_spill] sm:$0xff] }
 0x269   : > { %v3394_v50 = vpop.f32.mrf.mxu0  ;;  %4767 = vmatprep.subr.bf16.mxu1 %v7074_v37  ;;  %v7083_v9 = vld [vmem:[#allocation2 + $0x36c] ss:$16 sps:$4 sm:$0xff]  }
 0x26a   : > { %v3507_v52 = vpop.f32.mrf.mxu1  ;;  %v9156_v18 = vpack.c.bf16 %v3570_v20, %v3566_v57  ;;  %v3571_v60 = vmax.f32 %v3502_v0, 0.0  ;;  %v3395_v53 = vadd.f32 %v3394_v50, %v9760_v27  ;;  %v3506_v17 = vadd.f32 %v3505_v19, %v3393_v46  ;;  %v7093_v19 = vld [vmem:[#allocation5 + $0x78] sm:$0xff]   ;;  %v9767_v57 = vld [vmem:[#allocation28_spill] sm:$0xff] }
 0x26b   : > { %v3396_v44 = vpop.f32.mrf.mxu0  ;;  %v3296_v20 = vadd.f32 %v9767_v57, %v3183_v54  ;;  %v7094_v50 = vld [vmem:[#allocation5 + $0x38] sm:$0xff]   ;;  %6205 = vmatprep.subr.bf16.mxu0 %v7093_v19  ;;  %v7100_v54 = vld [vmem:[#allocation5 + $0x20] sm:$0xff]  }
 0x26c   : > { %v3509_v12 = vpop.f32.mrf.mxu1  ;;  %v9160_v33 = vpack.c.bf16 %v3571_v60, %v3567_v55  ;;  %v3397_v45 = vadd.f32 %v3396_v44, %v3284_v47  ;;  %4768 = vmatpush2.bf16.msra.mxu1 %v7072_v15  ;;  %v3508_v40 = vadd.f32 %v3507_v52, %v3395_v53  ;;  %v3574_v28 = vmax.f32 %v3506_v17, 0.0  ;;  %v7081_v47 = vld [vmem:[#allocation2 + $0x368] ss:$16 sps:$4 sm:$0xff]   ;;  %6206 = vmatpush3.bf16.msra.mxu0 %v7094_v50  ;;  %v7095_v44 = vld [vmem:[#allocation5 + $0x70] sm:$0xff]  }
 0x26d   : > { %v3398_v24 = vpop.f32.mrf.mxu0  ;;  %4769 = vmatprep.subr.bf16.mxu1 %v7077_v5  ;;  %v7086_v5 = vld [vmem:[#allocation2 + $0x34c] ss:$16 sps:$4 sm:$0xff]   ;;  %v7084_v17 = vld [vmem:[#allocation2 + $0x348] ss:$16 sps:$4 sm:$0xff]   ;;  %6207 = vmatprep.subr.bf16.mxu0 %v7095_v44 }
 0x26e   : > { %v3511_v3 = vpop.f32.mrf.mxu1  ;;  %v3510_v4 = vadd.f32 %v3509_v12, %v3397_v45  ;;  %v3399_v11 = vadd.f32 %v3398_v24, %v3286_v35  ;;  %4605 = vmatprep.mubr.bf16.mxu1 %v9160_v33  ;;  %v3575_v37 = vmax.f32 %v3508_v40, 0.0  ;;  %v7096_v45 = vld [vmem:[#allocation5 + $0x30] sm:$0xff]   ;;  %v7092_v40 = vld [vmem:[#allocation2 + $0x30c] ss:$16 sps:$4 sm:$0xff]  }
 0x26f   : > { %v3402_v7 = vpop.f32.mrf.mxu0  ;;  %4606 = vmatmul.mubr.bf16.gmra.mxu1 %v9156_v18  ;;  %v7117_v19 = vld [vmem:[#allocation5 + $0xd8] sm:$0xff]   ;;  %v7122_v50 = vld [vmem:[#allocation5 + $0x88] sm:$0xff]  }
 0x270   : > { %v3515_v2 = vpop.f32.mrf.mxu1  ;;  %v3578_v14 = vmax.f32 %v3510_v4, 0.0  ;;  %v3512_v26 = vadd.f32 %v3511_v3, %v3399_v11  ;;  %v3403_v51 = vadd.f32 %v3402_v7, %v9764_v10  ;;  %4770 = vmatpush2.bf16.msra.mxu1 %v7075_v41  ;;  %v7089_v41 = vld [vmem:[#allocation2 + $0x32c] ss:$16 sps:$4 sm:$0xff]   ;;  %6208 = vmatpush3.bf16.msra.mxu0 %v7096_v45  ;;  %v7087_v3 = vld [vmem:[#allocation2 + $0x328] ss:$16 sps:$4 sm:$0xff]   ;;  %v7099_v4 = vld [vmem:[#allocation5 + $0x60] sm:$0xff]  }
 0x271   : > { %v3404_v56 = vpop.f32.mrf.mxu0  ;;  %4771 = vmatprep.subr.bf16.mxu1 %v7080_v31  ;;  %v7098_v31 = vld [vmem:[#allocation5 + $0x28] sm:$0xff]   ;;  %6209 = vmatprep.subr.bf16.mxu0 %v7097_v13  ;;  %v7101_v7 = vld [vmem:[#allocation5 + $0x58] sm:$0xff]   ;;  %v9268_v13 = vld [vmem:[%s9677_s4] sm:$0xf] }
 0x272   : > { %v3517_v8 = vpop.f32.mrf.mxu1  ;;  %v9171_v58 = vpack.c.bf16 %v3578_v14, %v3574_v28  ;;  %v3579_v42 = vmax.f32 %v3512_v26, 0.0  ;;  %v3405_v1 = vadd.f32 %v3404_v56, %v9766_v39  ;;  %v3516_v46 = vadd.f32 %v3515_v2, %v3403_v51  ;;  %v7090_v11 = vld [vmem:[#allocation2 + $0x308] ss:$16 sps:$4 sm:$0xff]   ;;  %v7103_v14 = vld [vmem:[#allocation5 + $0x50] sm:$0xff]  }
 0x273   : > { %v3406_v6 = vpop.f32.mrf.mxu0  ;;  %v7102_v2 = vld [vmem:[#allocation5 + $0x18] sm:$0xff]   ;;  %v7104_v26 = vld [vmem:[#allocation5 + $0x10] sm:$0xff]   ;;  %v7106_v51 = vld [vmem:[#allocation5 + $0x8] sm:$0xff]  }
 0x274   : > { %v3519_v62 = vpop.f32.mrf.mxu1  ;;  %v9175_v0 = vpack.c.bf16 %v3579_v42, %v3575_v37  ;;  %v3407_v15 = vadd.f32 %v3406_v6, %v3294_v32  ;;  %4772 = vmatpush2.bf16.msra.mxu1 %v7078_v63  ;;  %v3518_v55 = vadd.f32 %v3517_v8, %v3405_v1  ;;  %v3582_v12 = vmax.f32 %v3516_v46, 0.0  ;;  %6210 = vmatpush3.bf16.msra.mxu0 %v7098_v31  ;;  %v7109_v8 = vld [vmem:[#allocation5 + $0xf8] sm:$0xff]   ;;  %v7111_v37 = vld [vmem:[#allocation5 + $0xf0] sm:$0xff]   ;;  %v7113_v39 = vld [vmem:[#allocation5 + $0xe8] sm:$0xff]  }
 0x275   : > { %v3408_v52 = vpop.f32.mrf.mxu0  ;;  %4773 = vmatprep.subr.bf16.mxu1 %v7083_v9  ;;  %6211 = vmatprep.subr.bf16.mxu0 %v7099_v4  ;;  %v7110_v9 = vld [vmem:[#allocation5 + $0xb8] sm:$0xff]   ;;  %v7112_v42 = vld [vmem:[#allocation5 + $0xb0] sm:$0xff]   ;;  %v7114_v1 = vld [vmem:[#allocation5 + $0xa8] sm:$0xff]  }
 0x276   : > { %v3520_v60 = vadd.f32 %v3519_v62, %v3407_v15  ;;  %v3409_v27 = vadd.f32 %v3408_v52, %v3296_v20  ;;  %4615 = vmatprep.mubr.bf16.mxu1 %v9175_v0  ;;  %v3521_v53 = vpop.f32.mrf.mxu1  ;;  %v3583_v43 = vmax.f32 %v3518_v55, 0.0  ;;  %v7115_v6 = vld [vmem:[#allocation5 + $0xe0] sm:$0xff]   ;;  %v7118_v57 = vld [vmem:[#allocation5 + $0x98] sm:$0xff]   ;;  %v7120_v46 = vld [vmem:[#allocation5 + $0x90] sm:$0xff]  }
 0x277   : > { %4616 = vmatmul.mubr.bf16.gmra.mxu1 %v9171_v58  ;;  %v7116_v62 = vld [vmem:[#allocation5 + $0xa0] sm:$0xff]  }
 0x278   : > { %v3586_v25 = vmax.f32 %v3520_v60, 0.0  ;;  %v3522_v35 = vadd.f32 %v3521_v53, %v3409_v27  ;;  %4774 = vmatpush2.bf16.msra.mxu1 %v7081_v47  ;;  %6212 = vmatpush3.bf16.msra.mxu0 %v7100_v54  ;;  %v7121_v47 = vld [vmem:[#allocation5 + $0xc8] sm:$0xff]   ;;  %v7124_v55 = vld [vmem:[#allocation5 + $0x80] sm:$0xff]  }
 0x279   : > { %4775 = vmatprep.subr.bf16.mxu1 %v7086_v5  ;;  %6213 = vmatprep.subr.bf16.mxu0 %v7101_v7  ;;  %v7123_v5 = vld [vmem:[#allocation5 + $0xc0] sm:$0xff]  }
 0x27a   : > { %v9179_v34 = vpack.c.bf16 %v3586_v25, %v3582_v12  ;;  %v3587_v49 = vmax.f32 %v3522_v35, 0.0 }
 0x27c   : > { %v9181_v24 = vpack.c.bf16 %v3587_v49, %v3583_v43  ;;  %4776 = vmatpush2.bf16.msra.mxu1 %v7084_v17  ;;  %6214 = vmatpush3.bf16.msra.mxu0 %v7102_v2 }
 0x27d   : > { %4777 = vmatprep.subr.bf16.mxu1 %v7089_v41  ;;  %6215 = vmatprep.subr.bf16.mxu0 %v7103_v14 }
 0x27e   : > { %4625 = vmatprep.mubr.bf16.mxu1 %v9181_v24 }
 0x27f   : > { %4626 = vmatmul.mubr.bf16.gmra.mxu1 %v9179_v34 }
 0x280   : > { %4778 = vmatpush2.bf16.msra.mxu1 %v7087_v3  ;;  %4781 = vmatprep.mubr.bf16.mxu1 %v9085_v38  ;;  %v7105_v38 = vld [vmem:[#allocation5 + $0x48] sm:$0xff]   ;;  %v9768_v3 = vld [vmem:[#allocation11_spill] sm:$0xff] }
 0x281   : > { %4779 = vmatprep.subr.bf16.mxu1 %v7092_v40  ;;  %6216 = vmatpush3.bf16.msra.mxu0 %v7104_v26  ;;  %v9769_v31 = vsub.s32 1, %v9768_v3  ;;  %v9770_v4 = vsub.s32 0, %v9768_v3 }
 0x282   : > { %6217 = vmatprep.subr.bf16.mxu0 %v7105_v38 }
 0x283   : > { %v9275_v40 = vrot.slane %v9268_v13, %v9769_v31 }
 0x284   : > { %4780 = vmatpush2.bf16.msra.mxu1 %v7090_v11  ;;  %v9280_v11 = vrot.slane %v9268_v13, %v9770_v4 }
 0x285   : > { %v9186_v28 = vpop.f32.mrf.mxu0  ;;  %6218 = vmatpush3.bf16.msra.mxu0 %v7106_v51  ;;  %6269 = vmatprep.subr.bf16.mxu1 %v7109_v8 }
 0x286   : > { %6219 = vmatprep.subr.bf16.mxu0 %v7107_v22  ;;  %v4445_v38 = vadd.f32 %v9186_v28, %v9280_v11 }
 0x287   : > { %4782 = vmatmul.mubr.bf16.vlgmr.msra.gmra.mxu1 %v9081_v21  ;;  %v9190_v10 = vpop.f32.mrf.mxu0  ;;  %v7108_v21 = vld [vmem:[#allocation5] sm:$0xff]  }
 0x288   : > { %4791 = vmatprep.mubr.bf16.mxu1 %v9100_v30  ;;  %6270 = vmatpush3.bf16.msra.mxu1 %v7110_v9  ;;  %v4447_v14 = vadd.f32 %v9190_v10, %v9275_v40 }
 0x289   : > { %v9192_v63 = vpop.f32.mrf.mxu0  ;;  %6220 = vmatpush3.bf16.msra.mxu0 %v7108_v21  ;;  %6271 = vmatprep.subr.bf16.mxu1 %v7111_v37 }
 0x28a   : > { %v4449_v26 = vadd.f32 %v9192_v63, %v9280_v11 }
 0x28b   : > { %v9196_v32 = vpop.f32.mrf.mxu0 }
 0x28c   : > { %6272 = vmatpush3.bf16.msra.mxu1 %v7112_v42  ;;  %v4451_v22 = vadd.f32 %v9196_v32, %v9275_v40 }
 0x28d   : > { %v9198_v30 = vpop.f32.mrf.mxu0  ;;  %6273 = vmatprep.subr.bf16.mxu1 %v7113_v39 }
 0x28f   : > { %4792 = vmatmul.mubr.bf16.gmra.mxu1 %v9096_v23  ;;  %v9202_v56 = vpop.f32.mrf.mxu0 }
 0x290   : > { %4801 = vmatprep.mubr.bf16.mxu1 %v9115_v59  ;;  %6274 = vmatpush3.bf16.msra.mxu1 %v7114_v1  ;;  %v4457_v28 = vadd.f32 %v9202_v56, %v9275_v40 }
 0x291   : > { %v9204_v23 = vpop.f32.mrf.mxu0  ;;  %6275 = vmatprep.subr.bf16.mxu1 %v7115_v6 }
 0x292   : > { %v4459_v32 = vadd.f32 %v9204_v23, %v9280_v11 }
 0x293   : > { %v9208_v59 = vpop.f32.mrf.mxu0 }
 0x294   : > { %6276 = vmatpush3.bf16.msra.mxu1 %v7116_v62 }
 0x295   : > { %6277 = vmatprep.subr.bf16.mxu1 %v7117_v19 }
 0x297   : > { %4802 = vmatmul.mubr.bf16.gmra.mxu1 %v9111_v16  ;;  %v9210_v16 = vpop.f32.mrf.mxu0 }
 0x298   : > { %4811 = vmatprep.mubr.bf16.mxu1 %v9130_v48  ;;  %6278 = vmatpush3.bf16.msra.mxu1 %v7118_v57 }
 0x299   : > { %v9214_v48 = vpop.f32.mrf.mxu0 }
 0x29f   : > { %4812 = vmatmul.mubr.bf16.gmra.mxu1 %v9126_v29  ;;  %v9216_v29 = vpop.f32.mrf.mxu0 }
 0x2a0   : > { %4821 = vmatprep.mubr.bf16.mxu1 %v9145_v36 }
 0x2a1   : > { %v9220_v36 = vpop.f32.mrf.mxu0 }
 0x2a7   : > { %4822 = vmatmul.mubr.bf16.gmra.mxu1 %v9141_v61  ;;  %v9222_v61 = vpop.f32.mrf.mxu0 }
 0x2a8   : > { %4831 = vmatprep.mubr.bf16.mxu1 %v9160_v33 }
 0x2a9   : > { %v9226_v33 = vpop.f32.mrf.mxu0 }
 0x2af   : > { %4832 = vmatmul.mubr.bf16.gmra.mxu1 %v9156_v18  ;;  %v9228_v18 = vpop.f32.mrf.mxu0 }
 0x2b0   : > { %4841 = vmatprep.mubr.bf16.mxu1 %v9175_v0  ;;  %v7119_v0 = vld [vmem:[#allocation5 + $0xd0] sm:$0xff]  }
 0x2b1   : > { %v9231_v20 = vpop.f32.mrf.mxu0  ;;  %6279 = vmatprep.subr.bf16.mxu1 %v7119_v0 }
 0x2b2   : > { %6280 = vmatpush3.bf16.msra.mxu1 %v7120_v46  ;;  %v4455_v46 = vadd.f32 %v9198_v30, %v9280_v11 }
 0x2b3   : > { %v9233_v15 = vpop.f32.mrf.mxu0  ;;  %6281 = vmatprep.subr.bf16.mxu1 %v7121_v47 }
 0x2b6   : > { %6282 = vmatpush3.bf16.msra.mxu1 %v7122_v50 }
 0x2b7   : > { %4842 = vmatmul.mubr.bf16.gmra.mxu1 %v9171_v58  ;;  %v9235_v58 = vpop.f32.mrf.mxu0  ;;  %6283 = vmatprep.subr.bf16.mxu1 %v7123_v5  ;;  %v4461_v5 = vadd.f32 %v9208_v59, %v9275_v40  ;;  %v4467_v59 = vadd.f32 %v9214_v48, %v9275_v40 }
 0x2b8   : > { %4851 = vmatprep.mubr.bf16.mxu1 %v9181_v24 }
 0x2b9   : > { %v9237_v52 = vpop.f32.mrf.mxu0 }
 0x2ba   : > { %6284 = vmatpush3.bf16.msra.mxu1 %v7124_v55 }
 0x2bb   : > { %v9239_v60 = vpop.f32.mrf.mxu0 }
 0x2bd   : > { %v9241_v27 = vpop.f32.mrf.mxu0 }
 0x2bf   : > { %4852 = vmatmul.mubr.bf16.gmra.mxu1 %v9179_v34  ;;  %v9243_v53 = vpop.f32.mrf.mxu0 }
 0x2c1   : > { %v9245_v44 = vpop.f32.mrf.mxu0 }
 0x2c3   : > { %v9247_v12 = vpop.f32.mrf.mxu0 }
 0x2c5   : > { %v9249_v25 = vpop.f32.mrf.mxu0 }
 0x2c7   : > { %v9251_v35 = vpop.f32.mrf.mxu0 }
 0x2c9   : > { %v9253_v17 = vpop.f32.mrf.mxu0 }
 0x2cb   : > { %v9255_v45 = vpop.f32.mrf.mxu0 }
 0x2cd   : > { %v9257_v41 = vpop.f32.mrf.mxu0 }
 0x2cf   : > { %v9259_v43 = vpop.f32.mrf.mxu0 }
 0x2d1   : > { %v9261_v34 = vpop.f32.mrf.mxu0 }
 0x2d3   : > { %v9263_v49 = vpop.f32.mrf.mxu0 }
 0x2d5   : > { %v9270_v24 = vpop.f32.mrf.mxu0 }
 0x2d7   : > { %v9282_v7 = vpop.f32.mrf.mxu0 }
 0x2d9   : > { %v9292_v9 = vpop.f32.mrf.mxu0 }
 0x2db   : > { %v9294_v19 = vpop.f32.mrf.mxu0 }
 0x2dd   : > { %v9304_v4 = vpop.f32.mrf.mxu0 }
 0x307   : > { %v4557_v54 = vpop.f32.mrf.mxu1 }
 0x308   : > { %v4558_v37 = vadd.f32 %v4557_v54, %v4445_v38 }
 0x309   : > { %v4559_v2 = vpop.f32.mrf.mxu1 }
 0x30a   : > { %v4560_v21 = vadd.f32 %v4559_v2, %v4447_v14  ;;  %v4862_v63 = vmax.f32 %v4558_v37, 0.0  ;;  %v4465_v37 = vadd.f32 %v9210_v16, %v9280_v11 }
 0x30b   : > { %v4561_v51 = vpop.f32.mrf.mxu1 }
 0x30c   : > { %v4562_v8 = vadd.f32 %v4561_v51, %v4449_v26  ;;  %v4863_v10 = vmax.f32 %v4560_v21, 0.0  ;;  %v9306_v51 = vpop.f32.mrf.mxu0  ;;  %v4469_v21 = vadd.f32 %v9216_v29, %v9280_v11 }
 0x30d   : > { %v4563_v42 = vpop.f32.mrf.mxu1 }
 0x30e   : > { %v4564_v39 = vadd.f32 %v4563_v42, %v4451_v22  ;;  %v4866_v1 = vmax.f32 %v4562_v8, 0.0 }
 0x30f   : > { %v4567_v6 = vpop.f32.mrf.mxu1 }
 0x310   : > { %v4867_v62 = vmax.f32 %v4564_v39, 0.0  ;;  %v4926_v47 = vpack.c.bf16 %v4866_v1, %v4862_v63  ;;  %v4568_v54 = vadd.f32 %v4567_v6, %v4455_v46  ;;  %v4471_v1 = vadd.f32 %v9220_v36, %v9275_v40 }
 0x311   : > { %v4569_v57 = vpop.f32.mrf.mxu1  ;;  %v4477_v36 = vadd.f32 %v9226_v33, %v9275_v40 }
 0x312   : > { %v4927_v0 = vpack.c.bf16 %v4867_v62, %v4863_v10  ;;  %v4570_v55 = vadd.f32 %v4569_v57, %v4457_v28  ;;  %v4870_v30 = vmax.f32 %v4568_v54, 0.0  ;;  %v9316_v62 = vpop.f32.mrf.mxu0 }
 0x313   : > { %v4571_v50 = vpop.f32.mrf.mxu1 }
 0x314   : > { %v4572_v31 = vadd.f32 %v4571_v50, %v4459_v32  ;;  %5253 = vmatprep.mubr.bf16.mxu0 %v4927_v0  ;;  %v4871_v26 = vmax.f32 %v4570_v55, 0.0  ;;  %v9318_v46 = vpop.f32.mrf.mxu0  ;;  %v4479_v50 = vadd.f32 %v9228_v18, %v9280_v11  ;;  %v4475_v55 = vadd.f32 %v9222_v61, %v9280_v11 }
 0x315   : > { %v4573_v2 = vpop.f32.mrf.mxu1  ;;  %5254 = vmatmul.mubr.bf16.vlgmr.msra.gmra.mxu0 %v4926_v47 }
 0x316   : > { %v4574_v56 = vadd.f32 %v4573_v2, %v4461_v5  ;;  %v4874_v14 = vmax.f32 %v4572_v31, 0.0  ;;  %v4481_v2 = vadd.f32 %v9231_v20, %v9275_v40  ;;  %v4487_v20 = vadd.f32 %v9235_v58, %v9275_v40 }
 0x317   : > { %v4577_v23 = vpop.f32.mrf.mxu1 }
 0x318   : > { %v4875_v38 = vmax.f32 %v4574_v56, 0.0  ;;  %v4930_v42 = vpack.c.bf16 %v4874_v14, %v4870_v30  ;;  %v4578_v63 = vadd.f32 %v4577_v23, %v4465_v37  ;;  %v9328_v23 = vpop.f32.mrf.mxu0  ;;  %v4489_v37 = vadd.f32 %v9237_v52, %v9280_v11 }
 0x319   : > { %v4579_v22 = vpop.f32.mrf.mxu1 }
 0x31a   : > { %v4931_v8 = vpack.c.bf16 %v4875_v38, %v4871_v26  ;;  %v4580_v6 = vadd.f32 %v4579_v22, %v4467_v59  ;;  %v4878_v16 = vmax.f32 %v4578_v63, 0.0 }
 0x31b   : > { %v4581_v39 = vpop.f32.mrf.mxu1 }
 0x31c   : > { %v4582_v10 = vadd.f32 %v4581_v39, %v4469_v21  ;;  %5261 = vmatprep.mubr.bf16.mxu0 %v4931_v8  ;;  %v4879_v32 = vmax.f32 %v4580_v6, 0.0  ;;  %v9330_v21 = vpop.f32.mrf.mxu0  ;;  %v4485_v39 = vadd.f32 %v9233_v15, %v9280_v11 }
 0x31d   : > { %v4583_v57 = vpop.f32.mrf.mxu1  ;;  %5262 = vmatmul.mubr.bf16.gmra.mxu0 %v4930_v42 }
 0x31e   : > { %v4584_v48 = vadd.f32 %v4583_v57, %v4471_v1  ;;  %v4882_v28 = vmax.f32 %v4582_v10, 0.0  ;;  %v4491_v10 = vadd.f32 %v9239_v60, %v9275_v40  ;;  %v4497_v60 = vadd.f32 %v9243_v53, %v9275_v40 }
 0x31f   : > { %v4587_v29 = vpop.f32.mrf.mxu1 }
 0x320   : > { %v4883_v0 = vmax.f32 %v4584_v48, 0.0  ;;  %v4934_v31 = vpack.c.bf16 %v4882_v28, %v4878_v16  ;;  %v4588_v26 = vadd.f32 %v4587_v29, %v4475_v55  ;;  %v9340_v48 = vpop.f32.mrf.mxu0  ;;  %v4495_v55 = vadd.f32 %v9241_v27, %v9280_v11 }
 0x321   : > { %v4589_v47 = vpop.f32.mrf.mxu1 }
 0x322   : > { %v4935_v5 = vpack.c.bf16 %v4883_v0, %v4879_v32  ;;  %v4590_v56 = vadd.f32 %v4589_v47, %v4477_v36  ;;  %v4886_v61 = vmax.f32 %v4588_v26, 0.0  ;;  %v9342_v47 = vpop.f32.mrf.mxu0 }
 0x323   : > { %v4591_v54 = vpop.f32.mrf.mxu1 }
 0x324   : > { %v4592_v14 = vadd.f32 %v4591_v54, %v4479_v50  ;;  %5269 = vmatprep.mubr.bf16.mxu0 %v4935_v5  ;;  %v4887_v22 = vmax.f32 %v4590_v56, 0.0  ;;  %v4499_v50 = vadd.f32 %v9245_v44, %v9280_v11  ;;  %v9352_v26 = vpop.f32.mrf.mxu0 }
 0x325   : > { %v4593_v38 = vpop.f32.mrf.mxu1  ;;  %5270 = vmatmul.mubr.bf16.gmra.mxu0 %v4934_v31 }
 0x326   : > { %v4594_v33 = vadd.f32 %v4593_v38, %v4481_v2  ;;  %v4890_v30 = vmax.f32 %v4592_v14, 0.0  ;;  %v4501_v2 = vadd.f32 %v9247_v12, %v9275_v40  ;;  %v4507_v12 = vadd.f32 %v9251_v35, %v9275_v40 }
 0x327   : > { %v4597_v18 = vpop.f32.mrf.mxu1 }
 0x328   : > { %v4891_v59 = vmax.f32 %v4594_v33, 0.0  ;;  %v4938_v1 = vpack.c.bf16 %v4890_v30, %v4886_v61  ;;  %v4598_v28 = vadd.f32 %v4597_v18, %v4485_v39 }
 0x329   : > { %v4599_v8 = vpop.f32.mrf.mxu1 }
 0x32a   : > { %v4939_v42 = vpack.c.bf16 %v4891_v59, %v4887_v22  ;;  %v4600_v63 = vadd.f32 %v4599_v8, %v4487_v20  ;;  %v4894_v15 = vmax.f32 %v4598_v28, 0.0  ;;  %v9354_v59 = vpop.f32.mrf.mxu0  ;;  %v4509_v8 = vadd.f32 %v9253_v17, %v9280_v11 }
 0x32b   : > { %v4601_v6 = vpop.f32.mrf.mxu1 }
 0x32c   : > { %v4602_v57 = vadd.f32 %v4601_v6, %v4489_v37  ;;  %5277 = vmatprep.mubr.bf16.mxu0 %v4939_v42  ;;  %v4895_v0 = vmax.f32 %v4600_v63, 0.0  ;;  %v4505_v37 = vadd.f32 %v9249_v25, %v9280_v11  ;;  %v9364_v63 = vpop.f32.mrf.mxu0 }
 0x32d   : > { %v4603_v29 = vpop.f32.mrf.mxu1  ;;  %5278 = vmatmul.mubr.bf16.gmra.mxu0 %v4938_v1  ;;  %v4511_v1 = vadd.f32 %v9255_v45, %v9275_v40  ;;  %v4517_v45 = vadd.f32 %v9259_v43, %v9275_v40  ;;  %v9771_v43 = vsub.s32 3, %v9768_v3 }
 0x32e   : > { %v4604_v58 = vadd.f32 %v4603_v29, %v4491_v10  ;;  %v4898_v32 = vmax.f32 %v4602_v57, 0.0 }
 0x32f   : > { %v4607_v52 = vpop.f32.mrf.mxu1 }
 0x330   : > { %v4899_v16 = vmax.f32 %v4604_v58, 0.0  ;;  %v4942_v31 = vpack.c.bf16 %v4898_v32, %v4894_v15  ;;  %v4608_v38 = vadd.f32 %v4607_v52, %v4495_v55  ;;  %v9366_v52 = vpop.f32.mrf.mxu0 }
 0x331   : > { %v4609_v36 = vpop.f32.mrf.mxu1 }
 0x332   : > { %v4943_v5 = vpack.c.bf16 %v4899_v16, %v4895_v0  ;;  %v4610_v56 = vadd.f32 %v4609_v36, %v4497_v60  ;;  %v4902_v27 = vmax.f32 %v4608_v38, 0.0  ;;  %v4519_v16 = vadd.f32 %v9261_v34, %v9280_v11 }
 0x333   : > { %v4611_v54 = vpop.f32.mrf.mxu1  ;;  %v4515_v36 = vadd.f32 %v9257_v41, %v9280_v11  ;;  %v9381_v34 = vrot.slane %v9268_v13, %v9771_v43  ;;  %v9772_v41 = vsub.s32 2, %v9768_v3 }
 0x334   : > { %v4612_v14 = vadd.f32 %v4611_v54, %v4499_v50  ;;  %5285 = vmatprep.mubr.bf16.mxu0 %v4943_v5  ;;  %v4903_v18 = vmax.f32 %v4610_v56, 0.0  ;;  %v4521_v5 = vadd.f32 %v9263_v49, %v9275_v40  ;;  %v9376_v54 = vpop.f32.mrf.mxu0 }
 0x335   : > { %v4613_v33 = vpop.f32.mrf.mxu1  ;;  %5286 = vmatmul.mubr.bf16.gmra.mxu0 %v4942_v31  ;;  %v9386_v11 = vrot.slane %v9268_v13, %v9772_v41 }
 0x336   : > { %v4614_v53 = vadd.f32 %v4613_v33, %v4501_v2  ;;  %v4906_v30 = vmax.f32 %v4612_v14, 0.0 }
 0x337   : > { %v4617_v44 = vpop.f32.mrf.mxu1  ;;  %v4671_v3 = vadd.f32 %v9270_v24, %v9386_v11  ;;  %v4691_v43 = vadd.f32 %v9328_v23, %v9386_v11 }
 0x338   : > { %v4907_v22 = vmax.f32 %v4614_v53, 0.0  ;;  %v4946_v42 = vpack.c.bf16 %v4906_v30, %v4902_v27  ;;  %v4618_v57 = vadd.f32 %v4617_v44, %v4505_v37  ;;  %v9388_v53 = vpop.f32.mrf.mxu0 }
 0x339   : > { %v4619_v61 = vpop.f32.mrf.mxu1 }
 0x33a   : > { %v4947_v20 = vpack.c.bf16 %v4907_v22, %v4903_v18  ;;  %v4620_v6 = vadd.f32 %v4619_v61, %v4507_v12  ;;  %v4910_v25 = vmax.f32 %v4618_v57, 0.0  ;;  %v4673_v18 = vadd.f32 %v9282_v7, %v9381_v34  ;;  %v9398_v37 = vpop.f32.mrf.mxu0 }
 0x33b   : > { %v4621_v39 = vpop.f32.mrf.mxu1  ;;  %v4675_v22 = vadd.f32 %v9292_v9, %v9386_v11  ;;  %v4677_v12 = vadd.f32 %v9294_v19, %v9381_v34  ;;  %v4683_v19 = vadd.f32 %v9306_v51, %v9381_v34 }
 0x33c   : > { %v4622_v10 = vadd.f32 %v4621_v39, %v4509_v8  ;;  %5293 = vmatprep.mubr.bf16.mxu0 %v4947_v20  ;;  %v4911_v58 = vmax.f32 %v4620_v6, 0.0  ;;  %v9400_v57 = vpop.f32.mrf.mxu0 }
 0x33d   : > { %v4623_v28 = vpop.f32.mrf.mxu1  ;;  %5294 = vmatmul.mubr.bf16.gmra.mxu0 %v4946_v42 }
 0x33e   : > { %v4624_v35 = vadd.f32 %v4623_v28, %v4511_v1  ;;  %v4914_v29 = vmax.f32 %v4622_v10, 0.0 }
 0x33f   : > { %v4627_v17 = vpop.f32.mrf.mxu1 }
 0x340   : > { %v4915_v32 = vmax.f32 %v4624_v35, 0.0  ;;  %v4950_v60 = vpack.c.bf16 %v4914_v29, %v4910_v25  ;;  %v4628_v2 = vadd.f32 %v4627_v17, %v4515_v36  ;;  %v4685_v35 = vadd.f32 %v9316_v62, %v9386_v11 }
 0x341   : > { %v4629_v0 = vpop.f32.mrf.mxu1  ;;  %v4681_v17 = vadd.f32 %v9304_v4, %v9386_v11  ;;  %v4687_v25 = vadd.f32 %v9318_v46, %v9381_v34  ;;  %v4693_v46 = vadd.f32 %v9330_v21, %v9381_v34 }
 0x342   : > { %v4951_v15 = vpack.c.bf16 %v4915_v32, %v4911_v58  ;;  %v4630_v55 = vadd.f32 %v4629_v0, %v4517_v45  ;;  %v4918_v30 = vmax.f32 %v4628_v2, 0.0  ;;  %v4695_v2 = vadd.f32 %v9340_v48, %v9386_v11 }
 0x343   : > { %v4631_v50 = vpop.f32.mrf.mxu1 }
 0x344   : > { %v4632_v31 = vadd.f32 %v4631_v50, %v4519_v16  ;;  %5301 = vmatprep.mubr.bf16.mxu0 %v4951_v15  ;;  %v4919_v38 = vmax.f32 %v4630_v55, 0.0  ;;  %v9410_v16 = vpop.f32.mrf.mxu0 }
 0x345   : > { %v4633_v56 = vpop.f32.mrf.mxu1  ;;  %5302 = vmatmul.mubr.bf16.gmra.mxu0 %v4950_v60 }
 0x346   : > { %v4634_v14 = vadd.f32 %v4633_v56, %v4521_v5  ;;  %v4922_v49 = vmax.f32 %v4632_v31, 0.0  ;;  %v9412_v55 = vpop.f32.mrf.mxu0 }
 0x347   : > { %v4783_v40 = vpop.f32.mrf.mxu1 }
 0x348   : > { %v4923_v33 = vmax.f32 %v4634_v14, 0.0  ;;  %v4954_v13 = vpack.c.bf16 %v4922_v49, %v4918_v30  ;;  %v4784_v42 = vadd.f32 %v4783_v40, %v4671_v3  ;;  %v4697_v49 = vadd.f32 %v9342_v47, %v9381_v34 }
 0x349   : > { %v4785_v44 = vpop.f32.mrf.mxu1  ;;  %v4705_v47 = vadd.f32 %v9364_v63, %v9386_v11 }
 0x34a   : > { %v4955_v27 = vpack.c.bf16 %v4923_v33, %v4919_v38  ;;  %v4786_v8 = vadd.f32 %v4785_v44, %v4673_v18  ;;  %v4864_v24 = vmax.f32 %v4784_v42, 0.0  ;;  %v4724_v33 = vpop.f32.mrf.mxu0 }
 0x34b   : > { %v4787_v61 = vpop.f32.mrf.mxu1 }
 0x34c   : > { %v4788_v20 = vadd.f32 %v4787_v61, %v4675_v22  ;;  %5309 = vmatprep.mubr.bf16.mxu0 %v4955_v27  ;;  %v4865_v6 = vmax.f32 %v4786_v8, 0.0  ;;  %v4726_v3 = vpop.f32.mrf.mxu0  ;;  %v4703_v61 = vadd.f32 %v9354_v59, %v9381_v34  ;;  %v4701_v8 = vadd.f32 %v9352_v26, %v9386_v11 }
 0x34d   : > { %v4789_v39 = vpop.f32.mrf.mxu1  ;;  %5310 = vmatmul.mubr.bf16.gmra.mxu0 %v4954_v13 }
 0x34e   : > { %v4790_v7 = vadd.f32 %v4789_v39, %v4677_v12  ;;  %v4868_v1 = vmax.f32 %v4788_v20, 0.0  ;;  %v4707_v39 = vadd.f32 %v9366_v52, %v9381_v34  ;;  %v4715_v52 = vadd.f32 %v9398_v37, %v9386_v11 }
 0x34f   : > { %v4793_v9 = vpop.f32.mrf.mxu1 }
 0x350   : > { %v4869_v10 = vmax.f32 %v4790_v7, 0.0  ;;  %v4928_v58 = vpack.c.bf16 %v4868_v1, %v4864_v24  ;;  %v4794_v15 = vadd.f32 %v4793_v9, %v4681_v17  ;;  %v4730_v9 = vpop.f32.mrf.mxu0  ;;  %v4713_v17 = vadd.f32 %v9388_v53, %v9381_v34 }
 0x351   : > { %v4795_v28 = vpop.f32.mrf.mxu1 }
 0x352   : > { %v4929_v29 = vpack.c.bf16 %v4869_v10, %v4865_v6  ;;  %v4796_v0 = vadd.f32 %v4795_v28, %v4683_v19  ;;  %v4872_v4 = vmax.f32 %v4794_v15, 0.0 }
 0x353   : > { %v4797_v32 = vpop.f32.mrf.mxu1 }
 0x354   : > { %v4798_v45 = vadd.f32 %v4797_v32, %v4685_v35  ;;  %5350 = vmatprep.mubr.bf16.mxu1 %v4929_v29  ;;  %v4873_v50 = vmax.f32 %v4796_v0, 0.0  ;;  %v4732_v35 = vpop.f32.mrf.mxu0  ;;  %v4711_v32 = vadd.f32 %v9376_v54, %v9386_v11 }
 0x355   : > { %v4799_v36 = vpop.f32.mrf.mxu1  ;;  %5351 = vmatmul.mubr.bf16.vlgmr.msra.gmra.mxu1 %v4928_v58 }
 0x356   : > { %v4800_v51 = vadd.f32 %v4799_v36, %v4687_v25  ;;  %v4876_v60 = vmax.f32 %v4798_v45, 0.0  ;;  %v4717_v45 = vadd.f32 %v9400_v57, %v9381_v34  ;;  %v4725_v57 = vadd.f32 %v4724_v33, %v9386_v11 }
 0x357   : > { %v4803_v62 = vpop.f32.mrf.mxu1 }
 0x358   : > { %v4877_v5 = vmax.f32 %v4800_v51, 0.0  ;;  %v4932_v14 = vpack.c.bf16 %v4876_v60, %v4872_v4  ;;  %v4804_v30 = vadd.f32 %v4803_v62, %v4691_v43  ;;  %v4734_v51 = vpop.f32.mrf.mxu0  ;;  %v4721_v43 = vadd.f32 %v9410_v16, %v9386_v11 }
 0x359   : > { %v4805_v31 = vpop.f32.mrf.mxu1  ;;  %v4733_v16 = vadd.f32 %v4732_v35, %v9381_v34 }
 0x35a   : > { %v4933_v56 = vpack.c.bf16 %v4877_v5, %v4873_v50  ;;  %v4806_v40 = vadd.f32 %v4805_v31, %v4693_v46  ;;  %v4880_v13 = vmax.f32 %v4804_v30, 0.0  ;;  %v4736_v31 = vpop.f32.mrf.mxu0 }
 0x35b   : > { %v4807_v41 = vpop.f32.mrf.mxu1 }
 0x35c   : > { %v4808_v38 = vadd.f32 %v4807_v41, %v4695_v2  ;;  %5358 = vmatprep.mubr.bf16.mxu1 %v4933_v56  ;;  %v4881_v48 = vmax.f32 %v4806_v40, 0.0  ;;  %v4723_v2 = vadd.f32 %v9412_v55, %v9381_v34  ;;  %v4740_v30 = vpop.f32.mrf.mxu0 }
 0x35d   : > { %v4809_v44 = vpop.f32.mrf.mxu1  ;;  %5359 = vmatmul.mubr.bf16.gmra.mxu1 %v4932_v14 }
 0x35e   : > { %v4810_v21 = vadd.f32 %v4809_v44, %v4697_v49  ;;  %v4884_v18 = vmax.f32 %v4808_v38, 0.0  ;;  %v4727_v49 = vadd.f32 %v4726_v3, %v9381_v34 }
 0x35f   : > { %v4813_v22 = vpop.f32.mrf.mxu1 }
 0x360   : > { %v4885_v27 = vmax.f32 %v4810_v21, 0.0  ;;  %v4936_v20 = vpack.c.bf16 %v4884_v18, %v4880_v13  ;;  %v4814_v6 = vadd.f32 %v4813_v22, %v4701_v8 }
 0x361   : > { %v4815_v23 = vpop.f32.mrf.mxu1 }
 0x362   : > { %v4937_v12 = vpack.c.bf16 %v4885_v27, %v4881_v48  ;;  %v4816_v7 = vadd.f32 %v4815_v23, %v4703_v61  ;;  %v4888_v29 = vmax.f32 %v4814_v6, 0.0  ;;  %v4742_v27 = vpop.f32.mrf.mxu0  ;;  %v4735_v61 = vadd.f32 %v4734_v51, %v9386_v11 }
 0x363   : > { %v4817_v42 = vpop.f32.mrf.mxu1 }
 0x364   : > { %v4818_v1 = vadd.f32 %v4817_v42, %v4705_v47  ;;  %5366 = vmatprep.mubr.bf16.mxu1 %v4937_v12  ;;  %v4889_v63 = vmax.f32 %v4816_v7, 0.0  ;;  %v4731_v47 = vadd.f32 %v4730_v9, %v9386_v11  ;;  %v4744_v7 = vpop.f32.mrf.mxu0  ;;  %v4743_v9 = vadd.f32 %v4742_v27, %v9381_v34 }
 0x365   : > { %v4819_v10 = vpop.f32.mrf.mxu1  ;;  %5367 = vmatmul.mubr.bf16.gmra.mxu1 %v4936_v20  ;;  %v4737_v20 = vadd.f32 %v4736_v31, %v9381_v34 }
 0x366   : > { %v4820_v59 = vadd.f32 %v4819_v10, %v4707_v39  ;;  %v4892_v24 = vmax.f32 %v4818_v1, 0.0 }
 0x367   : > { %v4823_v28 = vpop.f32.mrf.mxu1 }
 0x368   : > { %v4893_v19 = vmax.f32 %v4820_v59, 0.0  ;;  %v4940_v25 = vpack.c.bf16 %v4892_v24, %v4888_v29  ;;  %v4824_v60 = vadd.f32 %v4823_v28, %v4711_v32 }
 0x369   : > { %v4825_v26 = vpop.f32.mrf.mxu1 }
 0x36a   : > { %v4941_v58 = vpack.c.bf16 %v4893_v19, %v4889_v63  ;;  %v4826_v15 = vadd.f32 %v4825_v26, %v4713_v17  ;;  %v4896_v46 = vmax.f32 %v4824_v60, 0.0  ;;  %v4746_v19 = vpop.f32.mrf.mxu0  ;;  %v4745_v26 = vadd.f32 %v4744_v7, %v9386_v11 }
 0x36b   : > { %v4827_v0 = vpop.f32.mrf.mxu1 }
 0x36c   : > { %v4828_v36 = vadd.f32 %v4827_v0, %v4715_v52  ;;  %5374 = vmatprep.mubr.bf16.mxu1 %v4941_v58  ;;  %v4897_v37 = vmax.f32 %v4826_v15, 0.0  ;;  %v4741_v52 = vadd.f32 %v4740_v30, %v9386_v11 }
 0x36d   : > { %v4829_v62 = vpop.f32.mrf.mxu1  ;;  %5375 = vmatmul.mubr.bf16.gmra.mxu1 %v4940_v25  ;;  %v4747_v25 = vadd.f32 %v4746_v19, %v9381_v34 }
 0x36e   : > { %v4830_v53 = vadd.f32 %v4829_v62, %v4717_v45  ;;  %v4900_v50 = vmax.f32 %v4828_v36, 0.0 }
 0x36f   : > { %v4833_v5 = vpop.f32.mrf.mxu1 }
 0x370   : > { %v4901_v4 = vmax.f32 %v4830_v53, 0.0  ;;  %v4944_v14 = vpack.c.bf16 %v4900_v50, %v4896_v46  ;;  %v4834_v44 = vadd.f32 %v4833_v5, %v4721_v43 }
 0x371   : > { %v4835_v54 = vpop.f32.mrf.mxu1 }
 0x372   : > { %v4945_v56 = vpack.c.bf16 %v4901_v4, %v4897_v37  ;;  %v4836_v40 = vadd.f32 %v4835_v54, %v4723_v2  ;;  %v4904_v13 = vmax.f32 %v4834_v44, 0.0 }
 0x373   : > { %v4837_v41 = vpop.f32.mrf.mxu1 }
 0x374   : > { %v4838_v38 = vadd.f32 %v4837_v41, %v4725_v57  ;;  %5382 = vmatprep.mubr.bf16.mxu1 %v4945_v56  ;;  %v4905_v48 = vmax.f32 %v4836_v40, 0.0 }
 0x375   : > { %v4839_v21 = vpop.f32.mrf.mxu1  ;;  %5383 = vmatmul.mubr.bf16.gmra.mxu1 %v4944_v14 }
 0x376   : > { %v4840_v18 = vadd.f32 %v4839_v21, %v4727_v49  ;;  %v4908_v22 = vmax.f32 %v4838_v38, 0.0 }
 0x377   : > { %v4843_v55 = vpop.f32.mrf.mxu1 }
 0x378   : > { %v4909_v33 = vmax.f32 %v4840_v18, 0.0  ;;  %v4948_v12 = vpack.c.bf16 %v4908_v22, %v4904_v13  ;;  %v4844_v1 = vadd.f32 %v4843_v55, %v4731_v47  ;;  %v9455_v18 = vld [vmem:[%s9679_s6] ss:$0 sm:$0xff] }
 0x379   : > { %v4845_v23 = vpop.f32.mrf.mxu1 }
 0x37a   : > { %v4949_v3 = vpack.c.bf16 %v4909_v33, %v4905_v48  ;;  %v4846_v42 = vadd.f32 %v4845_v23, %v4733_v16  ;;  %v4912_v35 = vmax.f32 %v4844_v1, 0.0 }
 0x37b   : > { %v4847_v8 = vpop.f32.mrf.mxu1 }
 0x37c   : > { %v4848_v39 = vadd.f32 %v4847_v8, %v4735_v61  ;;  %5390 = vmatprep.mubr.bf16.mxu1 %v4949_v3  ;;  %v4913_v28 = vmax.f32 %v4846_v42, 0.0 }
 0x37d   : > { %v4849_v6 = vpop.f32.mrf.mxu1  ;;  %5391 = vmatmul.mubr.bf16.gmra.mxu1 %v4948_v12 }
 0x37e   : > { %v4850_v10 = vadd.f32 %v4849_v6, %v4737_v20  ;;  %v4916_v59 = vmax.f32 %v4848_v39, 0.0 }
 0x37f   : > { %v4853_v24 = vpop.f32.mrf.mxu1 }
 0x380   : > { %v4917_v63 = vmax.f32 %v4850_v10, 0.0  ;;  %v4952_v58 = vpack.c.bf16 %v4916_v59, %v4912_v35  ;;  %v4854_v15 = vadd.f32 %v4853_v24, %v4741_v52 }
 0x381   : > { %v4855_v29 = vpop.f32.mrf.mxu1 }
 0x382   : > { %v4953_v17 = vpack.c.bf16 %v4917_v63, %v4913_v28  ;;  %v4856_v0 = vadd.f32 %v4855_v29, %v4743_v9  ;;  %v4920_v50 = vmax.f32 %v4854_v15, 0.0 }
 0x383   : > { %v4857_v32 = vpop.f32.mrf.mxu1 }
 0x384   : > { %v4858_v45 = vadd.f32 %v4857_v32, %v4745_v26  ;;  %5398 = vmatprep.mubr.bf16.mxu1 %v4953_v17  ;;  %v4921_v62 = vmax.f32 %v4856_v0, 0.0 }
 0x385   : > { %v4859_v36 = vpop.f32.mrf.mxu1  ;;  %5399 = vmatmul.mubr.bf16.gmra.mxu1 %v4952_v58 }
 0x386   : > { %v4860_v51 = vadd.f32 %v4859_v36, %v4747_v25  ;;  %v4924_v60 = vmax.f32 %v4858_v45, 0.0 }
 0x388   : > { %v4925_v53 = vmax.f32 %v4860_v51, 0.0  ;;  %v4956_v37 = vpack.c.bf16 %v4924_v60, %v4920_v50 }
 0x38a   : > { %v4957_v5 = vpack.c.bf16 %v4925_v53, %v4921_v62 }
 0x38c   : > { %5406 = vmatprep.mubr.bf16.mxu1 %v4957_v5 }
 0x38d   : > { %5407 = vmatmul.mubr.bf16.gmra.mxu1 %v4956_v37 }
 0x3d5   : > { %v6221_v11 = vpop.f32.mrf.mxu0 }
 0x3d7   : > { %v6222_v4 = vpop.f32.mrf.mxu0 }
 0x3d8   : > { %v6223_v21 = vadd.f32 %v6222_v4, %v6221_v11 }
 0x3d9   : > { %v6224_v31 = vpop.f32.mrf.mxu0 }
 0x3da   : > { %v5256_v33 = vadd.f32 %v6223_v21, %v9455_v18 }
 0x3db   : > { %v6225_v46 = vpop.f32.mrf.mxu0 }
 0x3dc   : > { %v6226_v27 = vadd.f32 %v6225_v46, %v6224_v31 }
 0x3dd   : > { %v6227_v34 = vpop.f32.mrf.mxu0 }
 0x3de   : > { %v5259_v47 = vadd.f32 %v6226_v27, %v9455_v18 }
 0x3df   : > { %v6228_v54 = vpop.f32.mrf.mxu0 }
 0x3e0   : > { %v6229_v12 = vadd.f32 %v6228_v54, %v6227_v34 }
 0x3e1   : > { %v6230_v2 = vpop.f32.mrf.mxu0 }
 0x3e2   : > { %v5264_v1 = vadd.f32 %v6229_v12, %v9455_v18 }
 0x3e3   : > { %v6231_v57 = vpop.f32.mrf.mxu0 }
 0x3e4   : > { %v6232_v6 = vadd.f32 %v6231_v57, %v6230_v2 }
 0x3e5   : > { %v6233_v56 = vpop.f32.mrf.mxu0 }
 0x3e6   : > { %v5267_v19 = vadd.f32 %v6232_v6, %v9455_v18 }
 0x3e7   : > { %v6234_v43 = vpop.f32.mrf.mxu0 }
 0x3e8   : > { %v6235_v35 = vadd.f32 %v6234_v43, %v6233_v56 }
 0x3e9   : > { %v6236_v14 = vpop.f32.mrf.mxu0 }
 0x3ea   : > { %v5272_v58 = vadd.f32 %v6235_v35, %v9455_v18 }
 0x3eb   : > { %v6237_v41 = vpop.f32.mrf.mxu0 }
 0x3ec   : > { %v6238_v32 = vadd.f32 %v6237_v41, %v6236_v14 }
 0x3ed   : > { %v6239_v49 = vpop.f32.mrf.mxu0 }
 0x3ee   : > { %v5275_v51 = vadd.f32 %v6238_v32, %v9455_v18 }
 0x3ef   : > { %v6240_v40 = vpop.f32.mrf.mxu0 }
 0x3f0   : > { %v6241_v60 = vadd.f32 %v6240_v40, %v6239_v49 }
 0x3f1   : > { %v6242_v38 = vpop.f32.mrf.mxu0 }
 0x3f2   : > { %v5280_v11 = vadd.f32 %v6241_v60, %v9455_v18 }
 0x3f3   : > { %v6243_v30 = vpop.f32.mrf.mxu0 }
 0x3f4   : > { %v6244_v4 = vadd.f32 %v6243_v30, %v6242_v38 }
 0x3f5   : > { %v6245_v44 = vpop.f32.mrf.mxu0 }
 0x3f6   : > { %v5283_v57 = vadd.f32 %v6244_v4, %v9455_v18 }
 0x3f7   : > { %v6246_v22 = vpop.f32.mrf.mxu0 }
 0x3f8   : > { %v6247_v56 = vadd.f32 %v6246_v22, %v6245_v44 }
 0x3f9   : > { %v6248_v23 = vpop.f32.mrf.mxu0 }
 0x3fa   : > { %v5288_v38 = vadd.f32 %v6247_v56, %v9455_v18 }
 0x3fb   : > { %v6249_v20 = vpop.f32.mrf.mxu0 }
 0x3fc   : > { %v6250_v30 = vadd.f32 %v6249_v20, %v6248_v23 }
 0x3fd   : > { %v6251_v59 = vpop.f32.mrf.mxu0 }
 0x3fe   : > { %v5291_v44 = vadd.f32 %v6250_v30, %v9455_v18 }
 0x3ff   : > { %v6252_v9 = vpop.f32.mrf.mxu0 }
 0x400   : > { %v6253_v22 = vadd.f32 %v6252_v9, %v6251_v59 }
 0x401   : > { %v6254_v0 = vpop.f32.mrf.mxu0 }
 0x402   : > { %v5296_v23 = vadd.f32 %v6253_v22, %v9455_v18 }
 0x403   : > { %v6255_v53 = vpop.f32.mrf.mxu0 }
 0x405   : > { %v6257_v46 = vpop.f32.mrf.mxu0 }
 0x407   : > { %v6258_v14 = vpop.f32.mrf.mxu0 }
 0x408   : > { %v6259_v59 = vadd.f32 %v6258_v14, %v6257_v46 }
 0x40a   : > { %v5304_v9 = vadd.f32 %v6259_v59, %v9455_v18 }
 0x415   : > { %v6285_v55 = vpop.f32.mrf.mxu1 }
 0x417   : > { %v6286_v48 = vpop.f32.mrf.mxu1 }
 0x418   : > { %v6287_v13 = vadd.f32 %v6286_v48, %v6285_v55  ;;  %v6260_v55 = vpop.f32.mrf.mxu0 }
 0x419   : > { %v6288_v16 = vpop.f32.mrf.mxu1 }
 0x41a   : > { %v9458_v61 = vadd.f32 %v6287_v13, %v5256_v33 }
 0x41b   : > { %v6289_v3 = vpop.f32.mrf.mxu1 }
 0x41c   : > { %v6290_v8 = vadd.f32 %v6289_v3, %v6288_v16  ;;  %5415 = vmax.xlane.f32.xlu0 %v9458_v61  ;;  %v6261_v16 = vpop.f32.mrf.mxu0 }
 0x41d   : > { %v6291_v42 = vpop.f32.mrf.mxu1 }
 0x41e   : > { %v9462_v39 = vadd.f32 %v6290_v8, %v5259_v47  ;;  %v6256_v8 = vadd.f32 %v6255_v53, %v6254_v0 }
 0x41f   : > { %v6292_v7 = vpop.f32.mrf.mxu1 }
 0x420   : > { %v6293_v10 = vadd.f32 %v6292_v7, %v6291_v42  ;;  %5417 = vmax.xlane.f32.xlu0 %v9462_v39  ;;  %v6263_v42 = vpop.f32.mrf.mxu0 }
 0x421   : > { %v6294_v24 = vpop.f32.mrf.mxu1 }
 0x422   : > { %v9466_v28 = vadd.f32 %v6293_v10, %v5264_v1  ;;  %v5299_v10 = vadd.f32 %v6256_v8, %v9455_v18 }
 0x423   : > { %v6295_v63 = vpop.f32.mrf.mxu1 }
 0x424   : > { %v6296_v29 = vadd.f32 %v6295_v63, %v6294_v24  ;;  %5419 = vmax.xlane.f32.xlu1 %v9466_v28  ;;  %v6264_v63 = vpop.f32.mrf.mxu0 }
 0x425   : > { %v6297_v26 = vpop.f32.mrf.mxu1 }
 0x426   : > { %v9470_v17 = vadd.f32 %v6296_v29, %v5267_v19 }
 0x427   : > { %v6298_v52 = vpop.f32.mrf.mxu1 }
 0x428   : > { %v6299_v25 = vadd.f32 %v6298_v52, %v6297_v26  ;;  %5421 = vmax.xlane.f32.xlu1 %v9470_v17  ;;  %v6262_v26 = vadd.f32 %v6261_v16, %v6260_v55 }
 0x429   : > { %v6300_v45 = vpop.f32.mrf.mxu1 }
 0x42a   : > { %v9474_v15 = vadd.f32 %v6299_v25, %v5272_v58  ;;  %v6266_v58 = vpop.f32.mrf.mxu0 }
 0x42b   : > { %v6301_v36 = vpop.f32.mrf.mxu1 }
 0x42c   : > { %v6302_v62 = vadd.f32 %v6301_v36, %v6300_v45  ;;  %5423 = vmax.xlane.f32.xlu0 %v9474_v15  ;;  %v5307_v45 = vadd.f32 %v6262_v26, %v9455_v18  ;;  %v6265_v36 = vadd.f32 %v6264_v63, %v6263_v42  ;;  %v6267_v60 = vpop.f32.mrf.mxu0 }
 0x42d   : > { %v6303_v50 = vpop.f32.mrf.mxu1 }
 0x42e   : > { %v9478_v5 = vadd.f32 %v6302_v62, %v5275_v51 }
 0x42f   : > { %v6304_v37 = vpop.f32.mrf.mxu1 }
 0x430   : > { %v6305_v31 = vadd.f32 %v6304_v37, %v6303_v50  ;;  %5425 = vmax.xlane.f32.xlu1 %v9478_v5  ;;  %v5312_v37 = vadd.f32 %v6265_v36, %v9455_v18 }
 0x431   : > { %v6306_v34 = vpop.f32.mrf.mxu1 }
 0x432   : > { %v9482_v54 = vadd.f32 %v6305_v31, %v5280_v11  ;;  %v6268_v11 = vadd.f32 %v6267_v60, %v6266_v58 }
 0x433   : > { %v6307_v2 = vpop.f32.mrf.mxu1 }
 0x434   : > { %v6308_v43 = vadd.f32 %v6307_v2, %v6306_v34  ;;  %5427 = vmax.xlane.f32.xlu0 %v9482_v54  ;;  %v5315_v2 = vadd.f32 %v6268_v11, %v9455_v18 }
 0x435   : > { %v6309_v41 = vpop.f32.mrf.mxu1 }
 0x436   : > { %v9486_v49 = vadd.f32 %v6308_v43, %v5283_v57 }
 0x437   : > { %v6310_v40 = vpop.f32.mrf.mxu1 }
 0x438   : > { %v6311_v21 = vadd.f32 %v6310_v40, %v6309_v41  ;;  %5429 = vmax.xlane.f32.xlu1 %v9486_v49 }
 0x439   : > { %v6312_v48 = vpop.f32.mrf.mxu1 }
 0x43a   : > { %v9490_v33 = vadd.f32 %v6311_v21, %v5288_v38 }
 0x43b   : > { %v6313_v27 = vpop.f32.mrf.mxu1 }
 0x43c   : > { %v6314_v13 = vadd.f32 %v6313_v27, %v6312_v48  ;;  %5431 = vmax.xlane.f32.xlu0 %v9490_v33 }
 0x43d   : > { %v6315_v3 = vpop.f32.mrf.mxu1 }
 0x43e   : > { %v9494_v47 = vadd.f32 %v6314_v13, %v5291_v44 }
 0x43f   : > { %v6316_v12 = vpop.f32.mrf.mxu1 }
 0x440   : > { %v6317_v20 = vadd.f32 %v6316_v12, %v6315_v3  ;;  %5433 = vmax.xlane.f32.xlu1 %v9494_v47 }
 0x441   : > { %v6318_v7 = vpop.f32.mrf.mxu1 }
 0x442   : > { %v9498_v1 = vadd.f32 %v6317_v20, %v5296_v23 }
 0x443   : > { %v6319_v6 = vpop.f32.mrf.mxu1 }
 0x444   : > { %v6320_v24 = vadd.f32 %v6319_v6, %v6318_v7  ;;  %5435 = vmax.xlane.f32.xlu0 %v9498_v1 }
 0x445   : > { %v6321_v19 = vpop.f32.mrf.mxu1 }
 0x446   : > { %v9502_v35 = vadd.f32 %v6320_v24, %v5299_v10 }
 0x447   : > { %v6322_v29 = vpop.f32.mrf.mxu1 }
 0x448   : > { %v6323_v52 = vadd.f32 %v6322_v29, %v6321_v19  ;;  %5437 = vmax.xlane.f32.xlu1 %v9502_v35 }
 0x449   : > { %v6324_v32 = vpop.f32.mrf.mxu1 }
 0x44a   : > { %v9506_v25 = vadd.f32 %v6323_v52, %v5304_v9 }
 0x44b   : > { %v6325_v0 = vpop.f32.mrf.mxu1 }
 0x44c   : > { %v6326_v51 = vadd.f32 %v6325_v0, %v6324_v32  ;;  %5439 = vmax.xlane.f32.xlu0 %v9506_v25 }
 0x44d   : > { %v6327_v62 = vpop.f32.mrf.mxu1 }
 0x44e   : > { %v9510_v53 = vadd.f32 %v6326_v51, %v5307_v45 }
 0x44f   : > { %v6328_v50 = vpop.f32.mrf.mxu1 }
 0x450   : > { %v6329_v4 = vadd.f32 %v6328_v50, %v6327_v62  ;;  %5441 = vmax.xlane.f32.xlu1 %v9510_v53 }
 0x451   : > { %v6330_v31 = vpop.f32.mrf.mxu1 }
 0x452   : > { %v9514_v46 = vadd.f32 %v6329_v4, %v5312_v37 }
 0x453   : > { %v6331_v34 = vpop.f32.mrf.mxu1 }
 0x454   : > { %v6332_v57 = vadd.f32 %v6331_v34, %v6330_v31  ;;  %5443 = vmax.xlane.f32.xlu0 %v9514_v46 }
 0x456   : > { %v9518_v56 = vadd.f32 %v6332_v57, %v5315_v2 }
 0x458   : > { %5445 = vmax.xlane.f32.xlu1 %v9518_v56 }
 0x4a5   : > { %v5416_v43 = vpop.xlane.xlu0 %5415 }
 0x4a6   : > { %v5447_v14 = vsub.f32 %v9458_v61, %v5416_v43 }
 0x4a8   : > { %v5463_v41 = vmul.f32 1.442695, %v5447_v14 }
 0x4a9   : > { %v5418_v40 = vpop.xlane.xlu0 %5417 }
 0x4aa   : > { %7125 = vpow2.f32 %v5463_v41  ;;  %v5448_v38 = vsub.f32 %v9462_v39, %v5418_v40 }
 0x4ac   : > { %v5465_v30 = vmul.f32 1.442695, %v5448_v38 }
 0x4ad   : > { %v5420_v21 = vpop.xlane.xlu1 %5419 }
 0x4ae   : > { %7127 = vpow2.f32 %v5465_v30  ;;  %v5449_v18 = vsub.f32 %v9466_v28, %v5420_v21 }
 0x4b0   : > { %v5467_v55 = vmul.f32 1.442695, %v5449_v18 }
 0x4b1   : > { %v5422_v48 = vpop.xlane.xlu1 %5421 }
 0x4b2   : > { %7129 = vpow2.f32 %v5467_v55  ;;  %v5450_v27 = vsub.f32 %v9470_v17, %v5422_v48 }
 0x4b4   : > { %v5469_v44 = vmul.f32 1.442695, %v5450_v27 }
 0x4b5   : > { %v5424_v22 = vpop.xlane.xlu0 %5423 }
 0x4b6   : > { %7131 = vpow2.f32 %v5469_v44  ;;  %v5451_v61 = vsub.f32 %v9474_v15, %v5424_v22 }
 0x4b7   : > { %v9526_v13 = vpop.eup %7125 }
 0x4b8   : > { %v5471_v16 = vmul.f32 1.442695, %v5451_v61  ;;  %5495 = vadd.xlane.f32.xlu0 %v9526_v13 }
 0x4b9   : > { %v5426_v39 = vpop.xlane.xlu1 %5425 }
 0x4ba   : > { %7133 = vpow2.f32 %v5471_v16  ;;  %v5452_v3 = vsub.f32 %v9478_v5, %v5426_v39 }
 0x4bb   : > { %v9530_v28 = vpop.eup %7127 }
 0x4bc   : > { %v5473_v12 = vmul.f32 1.442695, %v5452_v3  ;;  %5497 = vadd.xlane.f32.xlu1 %v9530_v28 }
 0x4bd   : > { %v5428_v17 = vpop.xlane.xlu0 %5427 }
 0x4be   : > { %7135 = vpow2.f32 %v5473_v12  ;;  %v5453_v23 = vsub.f32 %v9482_v54, %v5428_v17 }
 0x4bf   : > { %v9534_v8 = vpop.eup %7129 }
 0x4c0   : > { %v5475_v15 = vmul.f32 1.442695, %v5453_v23  ;;  %5499 = vadd.xlane.f32.xlu0 %v9534_v8 }
 0x4c1   : > { %v5430_v20 = vpop.xlane.xlu1 %5429 }
 0x4c2   : > { %7137 = vpow2.f32 %v5475_v15  ;;  %v5454_v42 = vsub.f32 %v9486_v49, %v5430_v20 }
 0x4c3   : > { %v9538_v7 = vpop.eup %7131 }
 0x4c4   : > { %v5477_v5 = vmul.f32 1.442695, %v5454_v42  ;;  %5501 = vadd.xlane.f32.xlu1 %v9538_v7 }
 0x4c5   : > { %v5432_v6 = vpop.xlane.xlu0 %5431 }
 0x4c6   : > { %7139 = vpow2.f32 %v5477_v5  ;;  %v5455_v10 = vsub.f32 %v9490_v33, %v5432_v6 }
 0x4c7   : > { %v9542_v59 = vpop.eup %7133 }
 0x4c8   : > { %v5479_v54 = vmul.f32 1.442695, %v5455_v10  ;;  %5503 = vadd.xlane.f32.xlu0 %v9542_v59 }
 0x4c9   : > { %v5434_v24 = vpop.xlane.xlu1 %5433 }
 0x4ca   : > { %7141 = vpow2.f32 %v5479_v54  ;;  %v5456_v63 = vsub.f32 %v9494_v47, %v5434_v24 }
 0x4cb   : > { %v9546_v19 = vpop.eup %7135 }
 0x4cc   : > { %v5481_v49 = vmul.f32 1.442695, %v5456_v63  ;;  %5505 = vadd.xlane.f32.xlu1 %v9546_v19 }
 0x4cd   : > { %v5436_v29 = vpop.xlane.xlu0 %5435 }
 0x4ce   : > { %7143 = vpow2.f32 %v5481_v49  ;;  %v5457_v9 = vsub.f32 %v9498_v1, %v5436_v29 }
 0x4cf   : > { %v9550_v26 = vpop.eup %7137 }
 0x4d0   : > { %v5483_v33 = vmul.f32 1.442695, %v5457_v9  ;;  %5507 = vadd.xlane.f32.xlu0 %v9550_v26 }
 0x4d1   : > { %v5438_v52 = vpop.xlane.xlu1 %5437 }
 0x4d2   : > { %7145 = vpow2.f32 %v5483_v33  ;;  %v5458_v58 = vsub.f32 %v9502_v35, %v5438_v52 }
 0x4d3   : > { %v9554_v32 = vpop.eup %7139 }
 0x4d4   : > { %v5485_v47 = vmul.f32 1.442695, %v5458_v58  ;;  %5509 = vadd.xlane.f32.xlu1 %v9554_v32 }
 0x4d5   : > { %v5440_v0 = vpop.xlane.xlu0 %5439 }
 0x4d6   : > { %7147 = vpow2.f32 %v5485_v47  ;;  %v5459_v45 = vsub.f32 %v9506_v25, %v5440_v0 }
 0x4d7   : > { %v9558_v36 = vpop.eup %7141 }
 0x4d8   : > { %v5487_v1 = vmul.f32 1.442695, %v5459_v45  ;;  %5511 = vadd.xlane.f32.xlu0 %v9558_v36 }
 0x4d9   : > { %v5442_v51 = vpop.xlane.xlu1 %5441 }
 0x4da   : > { %7149 = vpow2.f32 %v5487_v1  ;;  %v5460_v60 = vsub.f32 %v9510_v53, %v5442_v51 }
 0x4db   : > { %v9562_v62 = vpop.eup %7143 }
 0x4dc   : > { %v5489_v35 = vmul.f32 1.442695, %v5460_v60  ;;  %5513 = vadd.xlane.f32.xlu1 %v9562_v62 }
 0x4dd   : > { %v5444_v50 = vpop.xlane.xlu0 %5443 }
 0x4de   : > { %7151 = vpow2.f32 %v5489_v35  ;;  %v5461_v37 = vsub.f32 %v9514_v46, %v5444_v50 }
 0x4df   : > { %v9566_v11 = vpop.eup %7145 }
 0x4e0   : > { %v5491_v25 = vmul.f32 1.442695, %v5461_v37  ;;  %5515 = vadd.xlane.f32.xlu0 %v9566_v11 }
 0x4e1   : > { %v5446_v4 = vpop.xlane.xlu1 %5445 }
 0x4e2   : > { %7153 = vpow2.f32 %v5491_v25  ;;  %v5462_v31 = vsub.f32 %v9518_v56, %v5446_v4 }
 0x4e3   : > { %v9570_v34 = vpop.eup %7147 }
 0x4e4   : > { %v5493_v53 = vmul.f32 1.442695, %v5462_v31  ;;  %5517 = vadd.xlane.f32.xlu1 %v9570_v34 }
 0x4e6   : > { %7155 = vpow2.f32 %v5493_v53 }
 0x4e7   : > { %v9573_v2 = vpop.eup %7149 }
 0x4e8   : > { %5519 = vadd.xlane.f32.xlu0 %v9573_v2 }
 0x4eb   : > { %v9576_v46 = vpop.eup %7151 }
 0x4ec   : > { %5521 = vadd.xlane.f32.xlu1 %v9576_v46 }
 0x4ef   : > { %v9579_v57 = vpop.eup %7153 }
 0x4f0   : > { %5523 = vadd.xlane.f32.xlu0 %v9579_v57 }
 0x4f3   : > { %v9582_v56 = vpop.eup %7155 }
 0x4f4   : > { %5525 = vadd.xlane.f32.xlu1 %v9582_v56 }
 0x541   : > { %v5496_v43 = vpop.xlane.xlu0 %5495 }
 0x542   : > { %7157 = vrcp.f32 %v5496_v43 }
 0x545   : > { %v5498_v14 = vpop.xlane.xlu1 %5497 }
 0x546   : > { %7159 = vrcp.f32 %v5498_v14 }
 0x549   : > { %v5500_v41 = vpop.xlane.xlu0 %5499 }
 0x54a   : > { %7161 = vrcp.f32 %v5500_v41 }
 0x54d   : > { %v5502_v40 = vpop.xlane.xlu1 %5501 }
 0x54e   : > { %7163 = vrcp.f32 %v5502_v40 }
 0x54f   : > { %v7158_v38 = vpop.eup %7157 }
 0x550   : > { %v5543_v30 = vmul.f32 %v7158_v38, %v9526_v13 }
 0x551   : > { %v5504_v21 = vpop.xlane.xlu0 %5503 }
 0x552   : > { %5559 = vst [vmem:[%s9589_s20] sm:$0xff] %v5543_v30  ;;  %7165 = vrcp.f32 %v5504_v21 }
 0x553   : > { %v7160_v18 = vpop.eup %7159 }
 0x554   : > { %v5544_v55 = vmul.f32 %v7160_v18, %v9530_v28 }
 0x555   : > { %v5506_v48 = vpop.xlane.xlu1 %5505 }
 0x556   : > { %5560 = vst [vmem:[%s9589_s20 + $0x8] sm:$0xff] %v5544_v55  ;;  %7167 = vrcp.f32 %v5506_v48 }
 0x557   : > { %v7162_v27 = vpop.eup %7161 }
 0x558   : > { %v5545_v44 = vmul.f32 %v7162_v27, %v9534_v8 }
 0x559   : > { %v5508_v22 = vpop.xlane.xlu0 %5507 }
 0x55a   : > { %5561 = vst [vmem:[%s9589_s20 + $0x10] sm:$0xff] %v5545_v44  ;;  %7169 = vrcp.f32 %v5508_v22 }
 0x55b   : > { %v7164_v61 = vpop.eup %7163 }
 0x55c   : > { %v5546_v13 = vmul.f32 %v7164_v61, %v9538_v7 }
 0x55d   : > { %v5510_v16 = vpop.xlane.xlu1 %5509 }
 0x55e   : > { %5562 = vst [vmem:[%s9589_s20 + $0x18] sm:$0xff] %v5546_v13  ;;  %7171 = vrcp.f32 %v5510_v16 }
 0x55f   : > { %v7166_v39 = vpop.eup %7165 }
 0x560   : > { %v5547_v3 = vmul.f32 %v7166_v39, %v9542_v59 }
 0x561   : > { %v5512_v28 = vpop.xlane.xlu0 %5511 }
 0x562   : > { %5563 = vst [vmem:[%s9589_s20 + $0x20] sm:$0xff] %v5547_v3  ;;  %7173 = vrcp.f32 %v5512_v28 }
 0x563   : > { %v7168_v12 = vpop.eup %7167 }
 0x564   : > { %v5548_v17 = vmul.f32 %v7168_v12, %v9546_v19 }
 0x565   : > { %v5514_v23 = vpop.xlane.xlu1 %5513 }
 0x566   : > { %5564 = vst [vmem:[%s9589_s20 + $0x28] sm:$0xff] %v5548_v17  ;;  %7175 = vrcp.f32 %v5514_v23 }
 0x567   : > { %v7170_v8 = vpop.eup %7169 }
 0x568   : > { %v5549_v15 = vmul.f32 %v7170_v8, %v9550_v26 }
 0x569   : > { %v5516_v20 = vpop.xlane.xlu0 %5515 }
 0x56a   : > { %5565 = vst [vmem:[%s9589_s20 + $0x30] sm:$0xff] %v5549_v15  ;;  %7177 = vrcp.f32 %v5516_v20 }
 0x56b   : > { %v7172_v42 = vpop.eup %7171 }
 0x56c   : > { %v5550_v7 = vmul.f32 %v7172_v42, %v9554_v32 }
 0x56d   : > { %v5518_v5 = vpop.xlane.xlu1 %5517 }
 0x56e   : > { %5566 = vst [vmem:[%s9589_s20 + $0x38] sm:$0xff] %v5550_v7  ;;  %7179 = vrcp.f32 %v5518_v5 }
 0x56f   : > { %v7174_v6 = vpop.eup %7173 }
 0x570   : > { %v5551_v10 = vmul.f32 %v7174_v6, %v9558_v36 }
 0x571   : > { %v5520_v59 = vpop.xlane.xlu0 %5519 }
 0x572   : > { %5567 = vst [vmem:[%s9589_s20 + $0x40] sm:$0xff] %v5551_v10  ;;  %7181 = vrcp.f32 %v5520_v59 }
 0x573   : > { %v7176_v54 = vpop.eup %7175 }
 0x574   : > { %v5552_v24 = vmul.f32 %v7176_v54, %v9562_v62 }
 0x575   : > { %v5522_v63 = vpop.xlane.xlu1 %5521 }
 0x576   : > { %5568 = vst [vmem:[%s9589_s20 + $0x48] sm:$0xff] %v5552_v24  ;;  %7183 = vrcp.f32 %v5522_v63 }
 0x577   : > { %v7178_v19 = vpop.eup %7177 }
 0x578   : > { %v5553_v49 = vmul.f32 %v7178_v19, %v9566_v11 }
 0x579   : > { %v5524_v29 = vpop.xlane.xlu0 %5523 }
 0x57a   : > { %5569 = vst [vmem:[%s9589_s20 + $0x50] sm:$0xff] %v5553_v49  ;;  %7185 = vrcp.f32 %v5524_v29 }
 0x57b   : > { %v7180_v9 = vpop.eup %7179 }
 0x57c   : > { %v5554_v26 = vmul.f32 %v7180_v9, %v9570_v34 }
 0x57d   : > { %v5526_v33 = vpop.xlane.xlu1 %5525 }
 0x57e   : > { %5570 = vst [vmem:[%s9589_s20 + $0x58] sm:$0xff] %v5554_v26  ;;  %7187 = vrcp.f32 %v5526_v33 }
 0x57f   : > { %v7182_v52 = vpop.eup %7181 }
 0x580   : > { %v5555_v58 = vmul.f32 %v7182_v52, %v9573_v2 }
 0x582   : > { %5571 = vst [vmem:[%s9589_s20 + $0x60] sm:$0xff] %v5555_v58 }
 0x583   : > { %v7184_v32 = vpop.eup %7183 }
 0x584   : > { %v5556_v47 = vmul.f32 %v7184_v32, %v9576_v46 }
 0x586   : > { %5572 = vst [vmem:[%s9589_s20 + $0x68] sm:$0xff] %v5556_v47 }
 0x587   : > { %v7186_v0 = vpop.eup %7185 }
 0x588   : > { %v5557_v45 = vmul.f32 %v7186_v0, %v9579_v57 }
 0x58a   : > { %5573 = vst [vmem:[%s9589_s20 + $0x70] sm:$0xff] %v5557_v45 }
 0x58b   : > { %v7188_v36 = vpop.eup %7187 }
 0x58c   : > { %v5558_v1 = vmul.f32 %v7188_v36, %v9582_v56 }
 0x58e   : > { %5574 = vst [vmem:[%s9589_s20 + $0x78] sm:$0xff] %v5558_v1 }
 0x58f   : > { %7327 = shalt.err (!%p7324_p3)
}
 0x590   : > { %s7328_s17 = scalar_lea.hbm %s9625_s29, 2048  ;;  %s7332_s19 = scalar_lea.hbm %s9680_s7, 4096 }
 0x591   : > { %p7329_p2 = scmp.ne.s32.totalorder %s9625_s29, %s7328_s17  ;;  %p7333_p6 = scmp.lt.s32.totalorder %s9625_s29, %s9680_s7 }
 0x592   : > { %p7334_p9 = scmp.lt.s32.totalorder %s7332_s19, %s7328_s17 }
 0x593   : > { %p7330_p4 = pnand %p7329_p2, %p7472_p5 }
 0x594   : > { %p7335_p10 = por %p7334_p9, %p7333_p6 }
 0x595   : > { %p7331_p13 = pneg %p7330_p4 }
 0x597   : > { %p7336_p12 = pnand %p7335_p10, %p7331_p13 }
 0x599   : > { %7339 = shalt.err (!%p7336_p12)
}
 0x59a   : > { %s7392_s15 = smov 128   ;;  %s7393_s23 = smov 8  }
 0x59b   : > { %6342 = dma.vmem_to_hbm [thread:$0]  (%p7472_p5), %s9627_s22, 2048, %s9625_s29, %s9633_s9, %s7392_s15, %s7392_s15, %s7393_s23  }
 0x59c PF: > { %p6359_p7 = scmp.ge.s32.totalorder %s7382_s27, 2  ;;  %s5604_s28 = sand.u32 1, %s7370_s24  }
 0x59d   : > { %p9773_p8 = scmp.ne.s32.totalorder %s9691_s12, 0  ;;  %s5605_s13 = scalar_lea.sflag [#allocation4], %s5604_s28 }
 0x59f   : > { %p6352_p11 = pnand %p6359_p7, %p9773_p8 }
 0x5a1   : > { %p6353_p0 = pneg %p6352_p11 }
 0x5a3   : > { %7365 = dma.done.wait (%p6353_p0), %s5605_s13, 2048  }
 0x5a4   : > { %7367 = vsyncadd (%p6353_p0), %s5605_s13, 4294965248  ;;  %p19_p1 = scmp.ge.s32.totalorder %s7459_s30, 4   ;;  %s9774_s24 = smov %s7374_s25 }
 0x5a5   : > { %s9775_s25 = smov %s7378_s26  ;;  %s9776_s26 = smov %s7470_s10 }
 0x5a6   : > { %s9777_s27 = smov %s7459_s30  ;;  %21 = sbr.rel (!%p19_p1) target bundleno = 5 (0x5), region = 92 }
 0x5ab   :  { %5610 = vsyncpa [#allocation3], 1 }
 0x5ac   :  { %5612 = vsyncpa [#allocation3 + $0x1], 1 }
 0x5ad   :  { %5613 = vsyncpa [#allocation6], 1 }
 0x5ae   :  { %5614 = vsyncpa [#allocation4], 1 }
 0x5af   :  { %5616 = vsyncpa [#allocation4 + $0x1], 1 }

</bundles_post_ra>
